<compile_context>
chip_gen: v7x
topology: tpu7x:2x2x1
jax: 0.10.0
libtpu: 0.0.40
codegen_flags: <defaults>
</compile_context>

<pallas_src>
import math
from functools import partial

import jax
import jax.numpy as jnp
from jax.experimental import pallas as pl
from jax.experimental.pallas import tpu as pltpu


# ----------------------------- Pallas kernel ------------------------------ #

def _layer_norm(x, g, b, eps=1e-5):
    # x: (B, S, E) f32; g, b: (1, E) f32 (broadcast over leading dims)
    mu = jnp.mean(x, axis=-1, keepdims=True)
    xc = x - mu
    var = jnp.mean(xc * xc, axis=-1, keepdims=True)
    return xc * jax.lax.rsqrt(var + eps) * g + b


def d4c_kernel(emsize, nhead, nlayers,
               # inputs
               src_ref, mask_ref,
               in_w_ref, in_b_ref, out_w_ref, out_b_ref,
               ln1_g_ref, ln1_b_ref,
               ff1_w_ref, ff1_b_ref, ff2_w_ref, ff2_b_ref,
               ln2_g_ref, ln2_b_ref,
               mlp1_w_ref, mlp1_b_ref, mlp2_w_ref, mlp2_b_ref,
               h2t_w_ref, h2t_b_ref,
               # outputs
               rating_ref, ctx_ref, word_ref):
    E, H = emsize, nhead
    Dh = E // H
    scale = 1.0 / math.sqrt(Dh)
    bf16 = jnp.bfloat16

    x = src_ref[...].astype(jnp.float32)                    # (TB, S, E) f32
    TB, S, _ = x.shape

    # Hoist the mask broadcast out of the (unrolled) layer loop.
    mask_b = jnp.broadcast_to(mask_ref[...], (H * TB, S, S))  # (H*TB, S, S)

    # ------------- transformer encoder: post-norm, ReLU FFN ---------------- #
    # Activations stay 3-D; the 'bse,ef->bsf' contractions lower to a single
    # rank-3 dot_general per projection (fused over batch*seq rows), which
    # keeps the MXU fed without an in-kernel sublane-restructuring reshape of
    # the residual stream.
    for l in range(nlayers):
        # ---- fused QKV: one (TB*S rows, E) x (E, 3E) projection on the MXU
        qkv = jnp.einsum('bse,ef->bsf', x.astype(bf16), in_w_ref[l],
                         preferred_element_type=jnp.float32) + in_b_ref[l]

        # ---- fold heads into the batch axis -> one einsum for ALL heads
        # (heads are contiguous lane slices of the fused QKV output; stacking
        # along axis 0 is a sublane copy, no lane shuffle)
        q = jnp.concatenate(
            [qkv[:, :, h * Dh:(h + 1) * Dh] for h in range(H)], axis=0)
        k = jnp.concatenate(
            [qkv[:, :, E + h * Dh:E + (h + 1) * Dh] for h in range(H)], axis=0)
        v = jnp.concatenate(
            [qkv[:, :, 2 * E + h * Dh:2 * E + (h + 1) * Dh] for h in range(H)],
            axis=0)                                          # (H*TB, S, Dh)

        # scale q (small tensor) rather than the (H*TB, S, S) scores
        s = jnp.einsum('bqd,bkd->bqk', (q * scale).astype(bf16), k.astype(bf16),
                       preferred_element_type=jnp.float32)   # (H*TB, S, S)
        s = s + mask_b
        m = jnp.max(s, axis=-1, keepdims=True)
        p = jnp.exp(s - m)
        # softmax normalization via EUP reciprocal (frees VALU slots)
        p = p * pl.reciprocal(jnp.sum(p, axis=-1, keepdims=True), approx=True)
        c = jnp.einsum('bqk,bkd->bqd', p.astype(bf16), v.astype(bf16),
                       preferred_element_type=jnp.float32)   # (H*TB, S, Dh)

        # heads are contiguous in E -> concat along lanes, ONE out_proj matmul
        c = jnp.concatenate([c[h * TB:(h + 1) * TB] for h in range(H)],
                            axis=-1)                         # (TB, S, E)
        attn = jnp.einsum('bse,ef->bsf', c.astype(bf16), out_w_ref[l],
                          preferred_element_type=jnp.float32) + out_b_ref[l]

        x = _layer_norm(x + attn, ln1_g_ref[l], ln1_b_ref[l])

        # ---- FFN (ReLU, post-norm: PyTorch TransformerEncoderLayer default)
        ff = jnp.einsum('bse,ef->bsf', x.astype(bf16), ff1_w_ref[l],
                        preferred_element_type=jnp.float32) + ff1_b_ref[l]
        ff = jnp.maximum(ff, 0.0)
        ff = jnp.einsum('bsh,hf->bsf', ff.astype(bf16), ff2_w_ref[l],
                        preferred_element_type=jnp.float32) + ff2_b_ref[l]

        x = _layer_norm(x + ff, ln2_g_ref[l], ln2_b_ref[l])

    # ------------------------------- heads --------------------------------- #
    # rating = PETER_MLP(hidden[:, 1]) : sigmoid(linear1) -> linear2
    h1 = x[:, 1, :]                                          # (TB, E)
    mlp = jax.nn.sigmoid(
        jnp.dot(h1.astype(bf16), mlp1_w_ref[...],
                preferred_element_type=jnp.float32) + mlp1_b_ref[...])
    rating_ref[...] = (jnp.dot(mlp.astype(bf16), mlp2_w_ref[...],
                               preferred_element_type=jnp.float32)
                       + mlp2_b_ref[...])                    # (TB, 1)

    # ctx (hidden[:, 2]) and word (hidden[:, 3:]) logits from ONE projection
    hl = x[:, 2:, :]                                         # (TB, T+1, E)
    logits = jnp.einsum('bte,ev->btv', hl.astype(bf16), h2t_w_ref[...],
                        preferred_element_type=jnp.float32) + h2t_b_ref[...]
    ctx_ref[...] = logits[:, 0, :]                           # (TB, Vp)
    word_ref[...] = logits[:, 1:, :]                         # (TB, T, Vp)


# ------------------------------- JAX glue ---------------------------------- #

def init_params(key, nuser, nitem, ntoken, emsize, nhead, nhid, nlayers):
    """Deterministic synthetic init mirroring D4C.init_weights shapes
    (PyTorch weight layout: (out_features, in_features))."""
    E = emsize
    ks = iter(jax.random.split(key, 16 + 8 * nlayers))

    def u(shape, lo, hi):
        return jax.random.uniform(next(ks), shape, jnp.float32, lo, hi)

    p = {}
    # nn.Embedding -> uniform(-0.1, 0.1)
    p['type_emb'] = u((2, E), -0.1, 0.1)
    p['user_emb'] = u((nuser, E), -0.1, 0.1)
    p['item_emb'] = u((nitem, E), -0.1, 0.1)
    p['word_emb'] = u((ntoken, E), -0.1, 0.1)
    # user/item profile tensors (constructor arguments -> nn.Parameter)
    p['user_profiles'] = 0.1 * jax.random.normal(next(ks), (nuser, E), jnp.float32)
    p['item_profiles'] = 0.1 * jax.random.normal(next(ks), (nitem, E), jnp.float32)
    # PETER_MLP recommender / hidden2token: nn.Linear -> D4C.init_weights
    # overrides with uniform(0,1), zero bias
    p['mlp1_w'] = u((E, E), 0.0, 1.0)
    p['mlp1_b'] = jnp.zeros((1, E), jnp.float32)
    p['mlp2_w'] = u((1, E), 0.0, 1.0)
    p['mlp2_b'] = jnp.zeros((1, 1), jnp.float32)
    p['h2t_w'] = u((ntoken, E), 0.0, 1.0)
    p['h2t_b'] = jnp.zeros((1, ntoken), jnp.float32)
    # transformer encoder layers (stacked over nlayers)
    in_w, out_w, ff1_w, ff2_w = [], [], [], []
    for _ in range(nlayers):
        in_w.append(u((3 * E, E), -0.1, 0.1))   # MHA in_proj (not an nn.Linear)
        out_w.append(u((E, E), 0.0, 1.0))       # out_proj is an nn.Linear
        ff1_w.append(u((nhid, E), 0.0, 1.0))
        ff2_w.append(u((E, nhid), 0.0, 1.0))
    p['in_w'] = jnp.stack(in_w)
    p['in_b'] = jnp.zeros((nlayers, 1, 3 * E), jnp.float32)
    p['out_w'] = jnp.stack(out_w)
    p['out_b'] = jnp.zeros((nlayers, 1, E), jnp.float32)
    p['ff1_w'] = jnp.stack(ff1_w)
    p['ff1_b'] = jnp.zeros((nlayers, 1, nhid), jnp.float32)
    p['ff2_w'] = jnp.stack(ff2_w)
    p['ff2_b'] = jnp.zeros((nlayers, 1, E), jnp.float32)
    p['ln1_g'] = jnp.ones((nlayers, 1, E), jnp.float32)
    p['ln1_b'] = jnp.zeros((nlayers, 1, E), jnp.float32)
    p['ln2_g'] = jnp.ones((nlayers, 1, E), jnp.float32)
    p['ln2_b'] = jnp.zeros((nlayers, 1, E), jnp.float32)
    return p


def _prep_weights(params, ntoken, v_pad):
    """Pre-transpose to (in, out), cast matmul weights to bf16, pad vocab."""
    bf = jnp.bfloat16
    pad = v_pad - ntoken
    return dict(
        in_w=jnp.transpose(params['in_w'], (0, 2, 1)).astype(bf),    # (L,E,3E)
        in_b=params['in_b'],
        out_w=jnp.transpose(params['out_w'], (0, 2, 1)).astype(bf),  # (L,E,E)
        out_b=params['out_b'],
        ln1_g=params['ln1_g'], ln1_b=params['ln1_b'],
        ff1_w=jnp.transpose(params['ff1_w'], (0, 2, 1)).astype(bf),  # (L,E,H)
        ff1_b=params['ff1_b'],
        ff2_w=jnp.transpose(params['ff2_w'], (0, 2, 1)).astype(bf),  # (L,H,E)
        ff2_b=params['ff2_b'],
        ln2_g=params['ln2_g'], ln2_b=params['ln2_b'],
        mlp1_w=params['mlp1_w'].T.astype(bf),                        # (E,E)
        mlp1_b=params['mlp1_b'],
        mlp2_w=params['mlp2_w'].T.astype(bf),                        # (E,1)
        mlp2_b=params['mlp2_b'],
        h2t_w=jnp.pad(params['h2t_w'].T.astype(bf), ((0, 0), (0, pad))),  # (E,Vp)
        h2t_b=jnp.pad(params['h2t_b'], ((0, 0), (0, pad))),               # (1,Vp)
    )


def _positional_encoding(S, E):
    # TODO(synk): PositionalEncoding source not provided; standard sinusoidal
    # PE added along the sequence axis (dropout = eval identity).
    pos = jnp.arange(S, dtype=jnp.float32)[:, None]
    div = jnp.exp(jnp.arange(0, E, 2, dtype=jnp.float32) * (-math.log(10000.0) / E))
    pe = jnp.zeros((S, E), jnp.float32)
    pe = pe.at[:, 0::2].set(jnp.sin(pos * div))
    pe = pe.at[:, 1::2].set(jnp.cos(pos * div))
    return pe


def _count_mask(S):
    # TODO(synk): generate_count_mask source not provided; using a PETER-style
    # mask: first 3 context positions mutually visible, words are causal.
    i = jnp.arange(S)[:, None]
    j = jnp.arange(S)[None, :]
    allowed = (j <= i) | ((i < 3) & (j < 3))
    return jnp.where(allowed, 0.0, -1e9).astype(jnp.float32)


def d4c_forward(params, user, item, tgt_input, *, emsize, nhead, nlayers,
                ntoken, batch_tile=None):
    B = user.shape[0]
    T = tgt_input.shape[1]
    E = emsize

    # ---- embedding gathers + feature mixing (plain JAX glue) ----
    type_feat = params['type_emb'][jnp.zeros_like(user)][:, None, :]   # (B,1,E)
    user_embed = params['user_emb'][user][:, None, :]
    item_embed = params['item_emb'][item][:, None, :]
    user_profile = params['user_profiles'][user][:, None, :]
    item_profile = params['item_profiles'][item][:, None, :]
    word_feat = params['word_emb'][tgt_input]                          # (B,T,E)

    user_feature = (user_embed + user_profile + user_embed * user_profile) / 3.0
    item_feature = (item_embed + item_profile + item_embed * item_profile) / 3.0

    src = jnp.concatenate([type_feat, user_feature, item_feature, word_feat],
                          axis=1)                                      # (B,S,E)
    src = src * math.sqrt(E)
    S = src.shape[1]
    src = (src + _positional_encoding(S, E)[None]).astype(jnp.float32)
    mask = _count_mask(S)

    # ---- lane-dense vocab padding for the logit outputs ----
    v_pad = ((ntoken + 127) // 128) * 128
    w = _prep_weights(params, ntoken, v_pad)

    # ---- batch grid (parallel -> shards across TensorCores on v7x) ----
    tb = B if batch_tile is None else batch_tile
    assert B % tb == 0, "batch_tile must divide the batch"
    nb = pl.cdiv(B, tb)

    def full(arr):
        nd = arr.ndim
        return pl.BlockSpec(arr.shape, lambda i, _nd=nd: (0,) * _nd)

    in_specs = [
        pl.BlockSpec((tb, S, E), lambda i: (i, 0, 0)),   # src (per-batch block)
        full(mask),
        full(w['in_w']), full(w['in_b']), full(w['out_w']), full(w['out_b']),
        full(w['ln1_g']), full(w['ln1_b']),
        full(w['ff1_w']), full(w['ff1_b']), full(w['ff2_w']), full(w['ff2_b']),
        full(w['ln2_g']), full(w['ln2_b']),
        full(w['mlp1_w']), full(w['mlp1_b']), full(w['mlp2_w']), full(w['mlp2_b']),
        full(w['h2t_w']), full(w['h2t_b']),
    ]
    out_specs = (
        pl.BlockSpec((tb, 1), lambda i: (i, 0)),
        pl.BlockSpec((tb, v_pad), lambda i: (i, 0)),
        pl.BlockSpec((tb, T, v_pad), lambda i: (i, 0, 0)),
    )

    kernel = partial(d4c_kernel, E, nhead, nlayers)

    rating, ctx_logits, word_logits = pl.pallas_call(
        kernel,
        grid=(nb,),
        out_shape=(
            jax.ShapeDtypeStruct((B, 1), jnp.float32),
            jax.ShapeDtypeStruct((B, v_pad), jnp.float32),
            jax.ShapeDtypeStruct((B, T, v_pad), jnp.float32),
        ),
        in_specs=in_specs,
        out_specs=out_specs,
        compiler_params=pltpu.CompilerParams(
            dimension_semantics=("parallel",),
            vmem_limit_bytes=64 * 1024 * 1024),
    )(src, mask,
      w['in_w'], w['in_b'], w['out_w'], w['out_b'],
      w['ln1_g'], w['ln1_b'],
      w['ff1_w'], w['ff1_b'], w['ff2_w'], w['ff2_b'],
      w['ln2_g'], w['ln2_b'],
      w['mlp1_w'], w['mlp1_b'], w['mlp2_w'], w['mlp2_b'],
      w['h2t_w'], w['h2t_b'])

    rating = rating.reshape(-1)                                        # (B,)
    ctx_logits = ctx_logits[:, :ntoken]                                # unpad
    word_dist = word_logits[:, :, :ntoken]
    context_dist = jnp.tile(ctx_logits[:, None, :], (1, T, 1))         # (B,T,V)
    return rating, context_dist, word_dist


# --------------------------------- main ------------------------------------ #

if __name__ == "__main__":
    nuser, nitem, ntoken = 10, 12, 64
    emsize, nhead, nhid, nlayers = 32, 2, 64, 2
    B, T = 2, 8

    root = jax.random.PRNGKey(0)
    kp, ku, ki, kt = jax.random.split(root, 4)

    params = init_params(kp, nuser, nitem, ntoken, emsize, nhead, nhid, nlayers)
    user = jax.random.randint(ku, (B,), 0, nuser)
    item = jax.random.randint(ki, (B,), 0, nitem)
    tgt_input = jax.random.randint(kt, (B, T), 0, ntoken)

    rating, context_dist, word_dist = d4c_forward(
        params, user, item, tgt_input,
        emsize=emsize, nhead=nhead, nlayers=nlayers, ntoken=ntoken)

    jax.block_until_ready((rating, context_dist, word_dist))
    assert rating.shape == (B,)
    assert context_dist.shape == (B, T, ntoken)
    assert word_dist.shape == (B, T, ntoken)
    assert bool(jnp.all(jnp.isfinite(rating)))
    assert bool(jnp.all(jnp.isfinite(context_dist)))
    assert bool(jnp.all(jnp.isfinite(word_dist)))
    print("KERNEL_OK")
</pallas_src>

<mosaic_0001>
module attributes {stable_mosaic.version = 11 : i64} {
  func.func @d4c_kernel(%arg0: i32, %arg1: memref<2x11x32xf32, #tpu.memory_space<vmem>>, %arg2: memref<11x11xf32, #tpu.memory_space<vmem>>, %arg3: memref<2x32x96xbf16, #tpu.memory_space<vmem>>, %arg4: memref<2x1x96xf32, #tpu.memory_space<vmem>>, %arg5: memref<2x32x32xbf16, #tpu.memory_space<vmem>>, %arg6: memref<2x1x32xf32, #tpu.memory_space<vmem>>, %arg7: memref<2x1x32xf32, #tpu.memory_space<vmem>>, %arg8: memref<2x1x32xf32, #tpu.memory_space<vmem>>, %arg9: memref<2x32x64xbf16, #tpu.memory_space<vmem>>, %arg10: memref<2x1x64xf32, #tpu.memory_space<vmem>>, %arg11: memref<2x64x32xbf16, #tpu.memory_space<vmem>>, %arg12: memref<2x1x32xf32, #tpu.memory_space<vmem>>, %arg13: memref<2x1x32xf32, #tpu.memory_space<vmem>>, %arg14: memref<2x1x32xf32, #tpu.memory_space<vmem>>, %arg15: memref<32x32xbf16, #tpu.memory_space<vmem>>, %arg16: memref<1x32xf32, #tpu.memory_space<vmem>>, %arg17: memref<32x1xbf16, #tpu.memory_space<vmem>>, %arg18: memref<1x1xf32, #tpu.memory_space<vmem>>, %arg19: memref<32x128xbf16, #tpu.memory_space<vmem>>, %arg20: memref<1x128xf32, #tpu.memory_space<vmem>>, %arg21: memref<2x1xf32, #tpu.memory_space<vmem>>, %arg22: memref<2x128xf32, #tpu.memory_space<vmem>>, %arg23: memref<2x8x128xf32, #tpu.memory_space<vmem>>) attributes {dimension_semantics = [#tpu.dimension_semantics<parallel>], iteration_bounds = array<i64: 1>, scalar_prefetch = 0 : i64, scratch_operands = 0 : i64, tpu.core_type = #tpu.core_type<tc>, window_params = [{transform_indices = @transform_0, window_bounds = array<i64: 2, 11, 32>}, {pipeline_mode = #tpu.pipeline_mode<synchronous>, transform_indices = @transform_1, window_bounds = array<i64: 11, 11>}, {pipeline_mode = #tpu.pipeline_mode<synchronous>, transform_indices = @transform_2, window_bounds = array<i64: 2, 32, 96>}, {pipeline_mode = #tpu.pipeline_mode<synchronous>, transform_indices = @transform_3, window_bounds = array<i64: 2, 1, 96>}, {pipeline_mode = #tpu.pipeline_mode<synchronous>, transform_indices = @transform_4, window_bounds = array<i64: 2, 32, 32>}, {pipeline_mode = #tpu.pipeline_mode<synchronous>, transform_indices = @transform_5, window_bounds = array<i64: 2, 1, 32>}, {pipeline_mode = #tpu.pipeline_mode<synchronous>, transform_indices = @transform_6, window_bounds = array<i64: 2, 1, 32>}, {pipeline_mode = #tpu.pipeline_mode<synchronous>, transform_indices = @transform_7, window_bounds = array<i64: 2, 1, 32>}, {pipeline_mode = #tpu.pipeline_mode<synchronous>, transform_indices = @transform_8, window_bounds = array<i64: 2, 32, 64>}, {pipeline_mode = #tpu.pipeline_mode<synchronous>, transform_indices = @transform_9, window_bounds = array<i64: 2, 1, 64>}, {pipeline_mode = #tpu.pipeline_mode<synchronous>, transform_indices = @transform_10, window_bounds = array<i64: 2, 64, 32>}, {pipeline_mode = #tpu.pipeline_mode<synchronous>, transform_indices = @transform_11, window_bounds = array<i64: 2, 1, 32>}, {pipeline_mode = #tpu.pipeline_mode<synchronous>, transform_indices = @transform_12, window_bounds = array<i64: 2, 1, 32>}, {pipeline_mode = #tpu.pipeline_mode<synchronous>, transform_indices = @transform_13, window_bounds = array<i64: 2, 1, 32>}, {pipeline_mode = #tpu.pipeline_mode<synchronous>, transform_indices = @transform_14, window_bounds = array<i64: 32, 32>}, {pipeline_mode = #tpu.pipeline_mode<synchronous>, transform_indices = @transform_15, window_bounds = array<i64: 1, 32>}, {pipeline_mode = #tpu.pipeline_mode<synchronous>, transform_indices = @transform_16, window_bounds = array<i64: 32, 1>}, {pipeline_mode = #tpu.pipeline_mode<synchronous>, transform_indices = @transform_17, window_bounds = array<i64: 1, 1>}, {pipeline_mode = #tpu.pipeline_mode<synchronous>, transform_indices = @transform_18, window_bounds = array<i64: 32, 128>}, {pipeline_mode = #tpu.pipeline_mode<synchronous>, transform_indices = @transform_19, window_bounds = array<i64: 1, 128>}, {transform_indices = @transform_20, window_bounds = array<i64: 2, 1>}, {transform_indices = @transform_21, window_bounds = array<i64: 2, 128>}, {transform_indices = @transform_22, window_bounds = array<i64: 2, 8, 128>}]} {
    %c0 = arith.constant 0 : index
    %c0_0 = arith.constant 0 : index
    %c0_1 = arith.constant 0 : index
    %0 = vector.load %arg1[%c0, %c0_0, %c0_1] : memref<2x11x32xf32, #tpu.memory_space<vmem>>, vector<2x11x32xf32>
    %c0_2 = arith.constant 0 : index
    %c0_3 = arith.constant 0 : index
    %1 = vector.load %arg2[%c0_2, %c0_3] : memref<11x11xf32, #tpu.memory_space<vmem>>, vector<11x11xf32>
    %2 = vector.shape_cast %1 : vector<11x11xf32> to vector<1x11x11xf32>
    %3 = vector.broadcast %2 : vector<1x11x11xf32> to vector<4x11x11xf32>
    %4 = arith.truncf %0 : vector<2x11x32xf32> to vector<2x11x32xbf16>
    %c0_4 = arith.constant 0 : index
    %c0_5 = arith.constant 0 : index
    %c0_6 = arith.constant 0 : index
    %5 = vector.load %arg3[%c0_4, %c0_5, %c0_6] : memref<2x32x96xbf16, #tpu.memory_space<vmem>>, vector<1x32x96xbf16>
    %6 = vector.shape_cast %5 : vector<1x32x96xbf16> to vector<32x96xbf16>
    "tpu.trace_start"() <{level = 10 : i32, message = "bse,ef->bsf"}> : () -> ()
    %cst = arith.constant dense<0.000000e+00> : vector<2x11x96xf32>
    %7 = tpu.matmul %4, %6, %cst {dimension_numbers = #tpu.dot_dimension_numbers<[2], [0], [0, 1], [1], [0, 0, 0, 1, 1, 1], [], []>} : vector<2x11x32xbf16>, vector<32x96xbf16>, vector<2x11x96xf32> -> vector<2x11x96xf32>
    "tpu.trace_stop"() : () -> ()
    %c0_7 = arith.constant 0 : index
    %c0_8 = arith.constant 0 : index
    %c0_9 = arith.constant 0 : index
    %8 = vector.load %arg4[%c0_7, %c0_8, %c0_9] : memref<2x1x96xf32, #tpu.memory_space<vmem>>, vector<1x1x96xf32>
    %9 = vector.shape_cast %8 : vector<1x1x96xf32> to vector<1x96xf32>
    %10 = vector.shape_cast %9 : vector<1x96xf32> to vector<1x1x96xf32>
    %11 = vector.broadcast %10 : vector<1x1x96xf32> to vector<2x11x96xf32>
    %12 = arith.addf %7, %11 : vector<2x11x96xf32>
    %13 = vector.extract_strided_slice %12 {offsets = [0, 0, 0], sizes = [2, 11, 16], strides = [1, 1, 1]} : vector<2x11x96xf32> to vector<2x11x16xf32>
    %14 = vector.extract_strided_slice %12 {offsets = [0, 0, 16], sizes = [2, 11, 16], strides = [1, 1, 1]} : vector<2x11x96xf32> to vector<2x11x16xf32>
    %15 = tpu.concatenate %13, %14 in 0 : vector<2x11x16xf32>, vector<2x11x16xf32> -> vector<4x11x16xf32>
    %16 = vector.extract_strided_slice %12 {offsets = [0, 0, 32], sizes = [2, 11, 16], strides = [1, 1, 1]} : vector<2x11x96xf32> to vector<2x11x16xf32>
    %17 = vector.extract_strided_slice %12 {offsets = [0, 0, 48], sizes = [2, 11, 16], strides = [1, 1, 1]} : vector<2x11x96xf32> to vector<2x11x16xf32>
    %18 = tpu.concatenate %16, %17 in 0 : vector<2x11x16xf32>, vector<2x11x16xf32> -> vector<4x11x16xf32>
    %19 = vector.extract_strided_slice %12 {offsets = [0, 0, 64], sizes = [2, 11, 16], strides = [1, 1, 1]} : vector<2x11x96xf32> to vector<2x11x16xf32>
    %20 = vector.extract_strided_slice %12 {offsets = [0, 0, 80], sizes = [2, 11, 16], strides = [1, 1, 1]} : vector<2x11x96xf32> to vector<2x11x16xf32>
    %21 = tpu.concatenate %19, %20 in 0 : vector<2x11x16xf32>, vector<2x11x16xf32> -> vector<4x11x16xf32>
    %cst_10 = arith.constant 2.500000e-01 : f32
    %22 = vector.broadcast %cst_10 : f32 to vector<4x11x16xf32>
    %23 = arith.mulf %15, %22 : vector<4x11x16xf32>
    %24 = arith.truncf %23 : vector<4x11x16xf32> to vector<4x11x16xbf16>
    %25 = arith.truncf %18 : vector<4x11x16xf32> to vector<4x11x16xbf16>
    "tpu.trace_start"() <{level = 10 : i32, message = "bqd,bkd->bqk"}> : () -> ()
    %cst_11 = arith.constant dense<0.000000e+00> : vector<4x11x11xf32>
    %26 = tpu.matmul %24, %25, %cst_11 {dimension_numbers = #tpu.dot_dimension_numbers<[2], [2], [1], [1], [0, 0, 0, 1, 1, 1], [0], [0]>} : vector<4x11x16xbf16>, vector<4x11x16xbf16>, vector<4x11x11xf32> -> vector<4x11x11xf32>
    "tpu.trace_stop"() : () -> ()
    %27 = arith.addf %26, %3 : vector<4x11x11xf32>
    %cst_12 = arith.constant dense<0xFF800000> : vector<4x11xf32>
    %28 = vector.multi_reduction <maximumf>, %27, %cst_12 [2] : vector<4x11x11xf32> to vector<4x11xf32>
    %29 = vector.shape_cast %28 : vector<4x11xf32> to vector<4x11x1xf32>
    %30 = vector.broadcast %29 : vector<4x11x1xf32> to vector<4x11x11xf32>
    %31 = arith.subf %27, %30 : vector<4x11x11xf32>
    %32 = math.exp %31 : vector<4x11x11xf32>
    %cst_13 = arith.constant dense<0.000000e+00> : vector<4x11xf32>
    %33 = vector.multi_reduction <add>, %32, %cst_13 [2] : vector<4x11x11xf32> to vector<4x11xf32>
    %34 = vector.shape_cast %33 : vector<4x11xf32> to vector<4x11x1xf32>
    %35 = tpu.reciprocal %34 {approx = true} : vector<4x11x1xf32> -> vector<4x11x1xf32>
    %36 = vector.broadcast %35 : vector<4x11x1xf32> to vector<4x11x11xf32>
    %37 = arith.mulf %32, %36 : vector<4x11x11xf32>
    %38 = arith.truncf %37 : vector<4x11x11xf32> to vector<4x11x11xbf16>
    %39 = arith.truncf %21 : vector<4x11x16xf32> to vector<4x11x16xbf16>
    "tpu.trace_start"() <{level = 10 : i32, message = "bqk,bkd->bqd"}> : () -> ()
    %cst_14 = arith.constant dense<0.000000e+00> : vector<4x11x16xf32>
    %40 = tpu.matmul %38, %39, %cst_14 {dimension_numbers = #tpu.dot_dimension_numbers<[2], [1], [1], [2], [0, 0, 0, 1, 1, 2], [0], [0]>} : vector<4x11x11xbf16>, vector<4x11x16xbf16>, vector<4x11x16xf32> -> vector<4x11x16xf32>
    "tpu.trace_stop"() : () -> ()
    %41 = vector.extract_strided_slice %40 {offsets = [0, 0, 0], sizes = [2, 11, 16], strides = [1, 1, 1]} : vector<4x11x16xf32> to vector<2x11x16xf32>
    %42 = vector.extract_strided_slice %40 {offsets = [2, 0, 0], sizes = [2, 11, 16], strides = [1, 1, 1]} : vector<4x11x16xf32> to vector<2x11x16xf32>
    %43 = tpu.concatenate %41, %42 in 2 : vector<2x11x16xf32>, vector<2x11x16xf32> -> vector<2x11x32xf32>
    %44 = arith.truncf %43 : vector<2x11x32xf32> to vector<2x11x32xbf16>
    %c0_15 = arith.constant 0 : index
    %c0_16 = arith.constant 0 : index
    %c0_17 = arith.constant 0 : index
    %45 = vector.load %arg5[%c0_15, %c0_16, %c0_17] : memref<2x32x32xbf16, #tpu.memory_space<vmem>>, vector<1x32x32xbf16>
    %46 = vector.shape_cast %45 : vector<1x32x32xbf16> to vector<32x32xbf16>
    "tpu.trace_start"() <{level = 10 : i32, message = "bse,ef->bsf"}> : () -> ()
    %cst_18 = arith.constant dense<0.000000e+00> : vector<2x11x32xf32>
    %47 = tpu.matmul %44, %46, %cst_18 {dimension_numbers = #tpu.dot_dimension_numbers<[2], [0], [0, 1], [1], [0, 0, 0, 1, 1, 1], [], []>} : vector<2x11x32xbf16>, vector<32x32xbf16>, vector<2x11x32xf32> -> vector<2x11x32xf32>
    "tpu.trace_stop"() : () -> ()
    %c0_19 = arith.constant 0 : index
    %c0_20 = arith.constant 0 : index
    %c0_21 = arith.constant 0 : index
    %48 = vector.load %arg6[%c0_19, %c0_20, %c0_21] : memref<2x1x32xf32, #tpu.memory_space<vmem>>, vector<1x1x32xf32>
    %49 = vector.shape_cast %48 : vector<1x1x32xf32> to vector<1x32xf32>
    %50 = vector.shape_cast %49 : vector<1x32xf32> to vector<1x1x32xf32>
    %51 = vector.broadcast %50 : vector<1x1x32xf32> to vector<2x11x32xf32>
    %52 = arith.addf %47, %51 : vector<2x11x32xf32>
    %53 = arith.addf %0, %52 : vector<2x11x32xf32>
    %c0_22 = arith.constant 0 : index
    %c0_23 = arith.constant 0 : index
    %c0_24 = arith.constant 0 : index
    %54 = vector.load %arg7[%c0_22, %c0_23, %c0_24] : memref<2x1x32xf32, #tpu.memory_space<vmem>>, vector<1x1x32xf32>
    %55 = vector.shape_cast %54 : vector<1x1x32xf32> to vector<1x32xf32>
    %c0_25 = arith.constant 0 : index
    %c0_26 = arith.constant 0 : index
    %c0_27 = arith.constant 0 : index
    %56 = vector.load %arg8[%c0_25, %c0_26, %c0_27] : memref<2x1x32xf32, #tpu.memory_space<vmem>>, vector<1x1x32xf32>
    %57 = vector.shape_cast %56 : vector<1x1x32xf32> to vector<1x32xf32>
    %cst_28 = arith.constant dense<0.000000e+00> : vector<2x11xf32>
    %58 = vector.multi_reduction <add>, %53, %cst_28 [2] : vector<2x11x32xf32> to vector<2x11xf32>
    %59 = vector.shape_cast %58 : vector<2x11xf32> to vector<2x11x1xf32>
    %cst_29 = arith.constant 3.200000e+01 : f32
    %60 = vector.broadcast %cst_29 : f32 to vector<2x11x1xf32>
    %61 = arith.divf %59, %60 : vector<2x11x1xf32>
    %62 = vector.broadcast %61 : vector<2x11x1xf32> to vector<2x11x32xf32>
    %63 = arith.subf %53, %62 : vector<2x11x32xf32>
    %64 = arith.mulf %63, %63 : vector<2x11x32xf32>
    %cst_30 = arith.constant dense<0.000000e+00> : vector<2x11xf32>
    %65 = vector.multi_reduction <add>, %64, %cst_30 [2] : vector<2x11x32xf32> to vector<2x11xf32>
    %66 = vector.shape_cast %65 : vector<2x11xf32> to vector<2x11x1xf32>
    %cst_31 = arith.constant 3.200000e+01 : f32
    %67 = vector.broadcast %cst_31 : f32 to vector<2x11x1xf32>
    %68 = arith.divf %66, %67 : vector<2x11x1xf32>
    %cst_32 = arith.constant 9.99999974E-6 : f32
    %69 = vector.broadcast %cst_32 : f32 to vector<2x11x1xf32>
    %70 = arith.addf %68, %69 : vector<2x11x1xf32>
    %71 = math.rsqrt %70 : vector<2x11x1xf32>
    %72 = vector.broadcast %71 : vector<2x11x1xf32> to vector<2x11x32xf32>
    %73 = arith.mulf %63, %72 : vector<2x11x32xf32>
    %74 = vector.shape_cast %55 : vector<1x32xf32> to vector<1x1x32xf32>
    %75 = vector.broadcast %74 : vector<1x1x32xf32> to vector<2x11x32xf32>
    %76 = arith.mulf %73, %75 : vector<2x11x32xf32>
    %77 = vector.shape_cast %57 : vector<1x32xf32> to vector<1x1x32xf32>
    %78 = vector.broadcast %77 : vector<1x1x32xf32> to vector<2x11x32xf32>
    %79 = arith.addf %76, %78 : vector<2x11x32xf32>
    %80 = arith.truncf %79 : vector<2x11x32xf32> to vector<2x11x32xbf16>
    %c0_33 = arith.constant 0 : index
    %c0_34 = arith.constant 0 : index
    %c0_35 = arith.constant 0 : index
    %81 = vector.load %arg9[%c0_33, %c0_34, %c0_35] : memref<2x32x64xbf16, #tpu.memory_space<vmem>>, vector<1x32x64xbf16>
    %82 = vector.shape_cast %81 : vector<1x32x64xbf16> to vector<32x64xbf16>
    "tpu.trace_start"() <{level = 10 : i32, message = "bse,ef->bsf"}> : () -> ()
    %cst_36 = arith.constant dense<0.000000e+00> : vector<2x11x64xf32>
    %83 = tpu.matmul %80, %82, %cst_36 {dimension_numbers = #tpu.dot_dimension_numbers<[2], [0], [0, 1], [1], [0, 0, 0, 1, 1, 1], [], []>} : vector<2x11x32xbf16>, vector<32x64xbf16>, vector<2x11x64xf32> -> vector<2x11x64xf32>
    "tpu.trace_stop"() : () -> ()
    %c0_37 = arith.constant 0 : index
    %c0_38 = arith.constant 0 : index
    %c0_39 = arith.constant 0 : index
    %84 = vector.load %arg10[%c0_37, %c0_38, %c0_39] : memref<2x1x64xf32, #tpu.memory_space<vmem>>, vector<1x1x64xf32>
    %85 = vector.shape_cast %84 : vector<1x1x64xf32> to vector<1x64xf32>
    %86 = vector.shape_cast %85 : vector<1x64xf32> to vector<1x1x64xf32>
    %87 = vector.broadcast %86 : vector<1x1x64xf32> to vector<2x11x64xf32>
    %88 = arith.addf %83, %87 : vector<2x11x64xf32>
    %cst_40 = arith.constant 0.000000e+00 : f32
    %89 = vector.broadcast %cst_40 : f32 to vector<2x11x64xf32>
    %90 = arith.maximumf %88, %89 : vector<2x11x64xf32>
    %91 = arith.truncf %90 : vector<2x11x64xf32> to vector<2x11x64xbf16>
    %c0_41 = arith.constant 0 : index
    %c0_42 = arith.constant 0 : index
    %c0_43 = arith.constant 0 : index
    %92 = vector.load %arg11[%c0_41, %c0_42, %c0_43] : memref<2x64x32xbf16, #tpu.memory_space<vmem>>, vector<1x64x32xbf16>
    %93 = vector.shape_cast %92 : vector<1x64x32xbf16> to vector<64x32xbf16>
    "tpu.trace_start"() <{level = 10 : i32, message = "bsh,hf->bsf"}> : () -> ()
    %cst_44 = arith.constant dense<0.000000e+00> : vector<2x11x32xf32>
    %94 = tpu.matmul %91, %93, %cst_44 {dimension_numbers = #tpu.dot_dimension_numbers<[2], [0], [0, 1], [1], [0, 0, 0, 1, 1, 1], [], []>} : vector<2x11x64xbf16>, vector<64x32xbf16>, vector<2x11x32xf32> -> vector<2x11x32xf32>
    "tpu.trace_stop"() : () -> ()
    %c0_45 = arith.constant 0 : index
    %c0_46 = arith.constant 0 : index
    %c0_47 = arith.constant 0 : index
    %95 = vector.load %arg12[%c0_45, %c0_46, %c0_47] : memref<2x1x32xf32, #tpu.memory_space<vmem>>, vector<1x1x32xf32>
    %96 = vector.shape_cast %95 : vector<1x1x32xf32> to vector<1x32xf32>
    %97 = vector.shape_cast %96 : vector<1x32xf32> to vector<1x1x32xf32>
    %98 = vector.broadcast %97 : vector<1x1x32xf32> to vector<2x11x32xf32>
    %99 = arith.addf %94, %98 : vector<2x11x32xf32>
    %100 = arith.addf %79, %99 : vector<2x11x32xf32>
    %c0_48 = arith.constant 0 : index
    %c0_49 = arith.constant 0 : index
    %c0_50 = arith.constant 0 : index
    %101 = vector.load %arg13[%c0_48, %c0_49, %c0_50] : memref<2x1x32xf32, #tpu.memory_space<vmem>>, vector<1x1x32xf32>
    %102 = vector.shape_cast %101 : vector<1x1x32xf32> to vector<1x32xf32>
    %c0_51 = arith.constant 0 : index
    %c0_52 = arith.constant 0 : index
    %c0_53 = arith.constant 0 : index
    %103 = vector.load %arg14[%c0_51, %c0_52, %c0_53] : memref<2x1x32xf32, #tpu.memory_space<vmem>>, vector<1x1x32xf32>
    %104 = vector.shape_cast %103 : vector<1x1x32xf32> to vector<1x32xf32>
    %cst_54 = arith.constant dense<0.000000e+00> : vector<2x11xf32>
    %105 = vector.multi_reduction <add>, %100, %cst_54 [2] : vector<2x11x32xf32> to vector<2x11xf32>
    %106 = vector.shape_cast %105 : vector<2x11xf32> to vector<2x11x1xf32>
    %cst_55 = arith.constant 3.200000e+01 : f32
    %107 = vector.broadcast %cst_55 : f32 to vector<2x11x1xf32>
    %108 = arith.divf %106, %107 : vector<2x11x1xf32>
    %109 = vector.broadcast %108 : vector<2x11x1xf32> to vector<2x11x32xf32>
    %110 = arith.subf %100, %109 : vector<2x11x32xf32>
    %111 = arith.mulf %110, %110 : vector<2x11x32xf32>
    %cst_56 = arith.constant dense<0.000000e+00> : vector<2x11xf32>
    %112 = vector.multi_reduction <add>, %111, %cst_56 [2] : vector<2x11x32xf32> to vector<2x11xf32>
    %113 = vector.shape_cast %112 : vector<2x11xf32> to vector<2x11x1xf32>
    %cst_57 = arith.constant 3.200000e+01 : f32
    %114 = vector.broadcast %cst_57 : f32 to vector<2x11x1xf32>
    %115 = arith.divf %113, %114 : vector<2x11x1xf32>
    %cst_58 = arith.constant 9.99999974E-6 : f32
    %116 = vector.broadcast %cst_58 : f32 to vector<2x11x1xf32>
    %117 = arith.addf %115, %116 : vector<2x11x1xf32>
    %118 = math.rsqrt %117 : vector<2x11x1xf32>
    %119 = vector.broadcast %118 : vector<2x11x1xf32> to vector<2x11x32xf32>
    %120 = arith.mulf %110, %119 : vector<2x11x32xf32>
    %121 = vector.shape_cast %102 : vector<1x32xf32> to vector<1x1x32xf32>
    %122 = vector.broadcast %121 : vector<1x1x32xf32> to vector<2x11x32xf32>
    %123 = arith.mulf %120, %122 : vector<2x11x32xf32>
    %124 = vector.shape_cast %104 : vector<1x32xf32> to vector<1x1x32xf32>
    %125 = vector.broadcast %124 : vector<1x1x32xf32> to vector<2x11x32xf32>
    %126 = arith.addf %123, %125 : vector<2x11x32xf32>
    %127 = arith.truncf %126 : vector<2x11x32xf32> to vector<2x11x32xbf16>
    %c1 = arith.constant 1 : index
    %c0_59 = arith.constant 0 : index
    %c0_60 = arith.constant 0 : index
    %128 = vector.load %arg3[%c1, %c0_59, %c0_60] : memref<2x32x96xbf16, #tpu.memory_space<vmem>>, vector<1x32x96xbf16>
    %129 = vector.shape_cast %128 : vector<1x32x96xbf16> to vector<32x96xbf16>
    "tpu.trace_start"() <{level = 10 : i32, message = "bse,ef->bsf"}> : () -> ()
    %cst_61 = arith.constant dense<0.000000e+00> : vector<2x11x96xf32>
    %130 = tpu.matmul %127, %129, %cst_61 {dimension_numbers = #tpu.dot_dimension_numbers<[2], [0], [0, 1], [1], [0, 0, 0, 1, 1, 1], [], []>} : vector<2x11x32xbf16>, vector<32x96xbf16>, vector<2x11x96xf32> -> vector<2x11x96xf32>
    "tpu.trace_stop"() : () -> ()
    %c1_62 = arith.constant 1 : index
    %c0_63 = arith.constant 0 : index
    %c0_64 = arith.constant 0 : index
    %131 = vector.load %arg4[%c1_62, %c0_63, %c0_64] : memref<2x1x96xf32, #tpu.memory_space<vmem>>, vector<1x1x96xf32>
    %132 = vector.shape_cast %131 : vector<1x1x96xf32> to vector<1x96xf32>
    %133 = vector.shape_cast %132 : vector<1x96xf32> to vector<1x1x96xf32>
    %134 = vector.broadcast %133 : vector<1x1x96xf32> to vector<2x11x96xf32>
    %135 = arith.addf %130, %134 : vector<2x11x96xf32>
    %136 = vector.extract_strided_slice %135 {offsets = [0, 0, 0], sizes = [2, 11, 16], strides = [1, 1, 1]} : vector<2x11x96xf32> to vector<2x11x16xf32>
    %137 = vector.extract_strided_slice %135 {offsets = [0, 0, 16], sizes = [2, 11, 16], strides = [1, 1, 1]} : vector<2x11x96xf32> to vector<2x11x16xf32>
    %138 = tpu.concatenate %136, %137 in 0 : vector<2x11x16xf32>, vector<2x11x16xf32> -> vector<4x11x16xf32>
    %139 = vector.extract_strided_slice %135 {offsets = [0, 0, 32], sizes = [2, 11, 16], strides = [1, 1, 1]} : vector<2x11x96xf32> to vector<2x11x16xf32>
    %140 = vector.extract_strided_slice %135 {offsets = [0, 0, 48], sizes = [2, 11, 16], strides = [1, 1, 1]} : vector<2x11x96xf32> to vector<2x11x16xf32>
    %141 = tpu.concatenate %139, %140 in 0 : vector<2x11x16xf32>, vector<2x11x16xf32> -> vector<4x11x16xf32>
    %142 = vector.extract_strided_slice %135 {offsets = [0, 0, 64], sizes = [2, 11, 16], strides = [1, 1, 1]} : vector<2x11x96xf32> to vector<2x11x16xf32>
    %143 = vector.extract_strided_slice %135 {offsets = [0, 0, 80], sizes = [2, 11, 16], strides = [1, 1, 1]} : vector<2x11x96xf32> to vector<2x11x16xf32>
    %144 = tpu.concatenate %142, %143 in 0 : vector<2x11x16xf32>, vector<2x11x16xf32> -> vector<4x11x16xf32>
    %cst_65 = arith.constant 2.500000e-01 : f32
    %145 = vector.broadcast %cst_65 : f32 to vector<4x11x16xf32>
    %146 = arith.mulf %138, %145 : vector<4x11x16xf32>
    %147 = arith.truncf %146 : vector<4x11x16xf32> to vector<4x11x16xbf16>
    %148 = arith.truncf %141 : vector<4x11x16xf32> to vector<4x11x16xbf16>
    "tpu.trace_start"() <{level = 10 : i32, message = "bqd,bkd->bqk"}> : () -> ()
    %cst_66 = arith.constant dense<0.000000e+00> : vector<4x11x11xf32>
    %149 = tpu.matmul %147, %148, %cst_66 {dimension_numbers = #tpu.dot_dimension_numbers<[2], [2], [1], [1], [0, 0, 0, 1, 1, 1], [0], [0]>} : vector<4x11x16xbf16>, vector<4x11x16xbf16>, vector<4x11x11xf32> -> vector<4x11x11xf32>
    "tpu.trace_stop"() : () -> ()
    %150 = arith.addf %149, %3 : vector<4x11x11xf32>
    %cst_67 = arith.constant dense<0xFF800000> : vector<4x11xf32>
    %151 = vector.multi_reduction <maximumf>, %150, %cst_67 [2] : vector<4x11x11xf32> to vector<4x11xf32>
    %152 = vector.shape_cast %151 : vector<4x11xf32> to vector<4x11x1xf32>
    %153 = vector.broadcast %152 : vector<4x11x1xf32> to vector<4x11x11xf32>
    %154 = arith.subf %150, %153 : vector<4x11x11xf32>
    %155 = math.exp %154 : vector<4x11x11xf32>
    %cst_68 = arith.constant dense<0.000000e+00> : vector<4x11xf32>
    %156 = vector.multi_reduction <add>, %155, %cst_68 [2] : vector<4x11x11xf32> to vector<4x11xf32>
    %157 = vector.shape_cast %156 : vector<4x11xf32> to vector<4x11x1xf32>
    %158 = tpu.reciprocal %157 {approx = true} : vector<4x11x1xf32> -> vector<4x11x1xf32>
    %159 = vector.broadcast %158 : vector<4x11x1xf32> to vector<4x11x11xf32>
    %160 = arith.mulf %155, %159 : vector<4x11x11xf32>
    %161 = arith.truncf %160 : vector<4x11x11xf32> to vector<4x11x11xbf16>
    %162 = arith.truncf %144 : vector<4x11x16xf32> to vector<4x11x16xbf16>
    "tpu.trace_start"() <{level = 10 : i32, message = "bqk,bkd->bqd"}> : () -> ()
    %cst_69 = arith.constant dense<0.000000e+00> : vector<4x11x16xf32>
    %163 = tpu.matmul %161, %162, %cst_69 {dimension_numbers = #tpu.dot_dimension_numbers<[2], [1], [1], [2], [0, 0, 0, 1, 1, 2], [0], [0]>} : vector<4x11x11xbf16>, vector<4x11x16xbf16>, vector<4x11x16xf32> -> vector<4x11x16xf32>
    "tpu.trace_stop"() : () -> ()
    %164 = vector.extract_strided_slice %163 {offsets = [0, 0, 0], sizes = [2, 11, 16], strides = [1, 1, 1]} : vector<4x11x16xf32> to vector<2x11x16xf32>
    %165 = vector.extract_strided_slice %163 {offsets = [2, 0, 0], sizes = [2, 11, 16], strides = [1, 1, 1]} : vector<4x11x16xf32> to vector<2x11x16xf32>
    %166 = tpu.concatenate %164, %165 in 2 : vector<2x11x16xf32>, vector<2x11x16xf32> -> vector<2x11x32xf32>
    %167 = arith.truncf %166 : vector<2x11x32xf32> to vector<2x11x32xbf16>
    %c1_70 = arith.constant 1 : index
    %c0_71 = arith.constant 0 : index
    %c0_72 = arith.constant 0 : index
    %168 = vector.load %arg5[%c1_70, %c0_71, %c0_72] : memref<2x32x32xbf16, #tpu.memory_space<vmem>>, vector<1x32x32xbf16>
    %169 = vector.shape_cast %168 : vector<1x32x32xbf16> to vector<32x32xbf16>
    "tpu.trace_start"() <{level = 10 : i32, message = "bse,ef->bsf"}> : () -> ()
    %cst_73 = arith.constant dense<0.000000e+00> : vector<2x11x32xf32>
    %170 = tpu.matmul %167, %169, %cst_73 {dimension_numbers = #tpu.dot_dimension_numbers<[2], [0], [0, 1], [1], [0, 0, 0, 1, 1, 1], [], []>} : vector<2x11x32xbf16>, vector<32x32xbf16>, vector<2x11x32xf32> -> vector<2x11x32xf32>
    "tpu.trace_stop"() : () -> ()
    %c1_74 = arith.constant 1 : index
    %c0_75 = arith.constant 0 : index
    %c0_76 = arith.constant 0 : index
    %171 = vector.load %arg6[%c1_74, %c0_75, %c0_76] : memref<2x1x32xf32, #tpu.memory_space<vmem>>, vector<1x1x32xf32>
    %172 = vector.shape_cast %171 : vector<1x1x32xf32> to vector<1x32xf32>
    %173 = vector.shape_cast %172 : vector<1x32xf32> to vector<1x1x32xf32>
    %174 = vector.broadcast %173 : vector<1x1x32xf32> to vector<2x11x32xf32>
    %175 = arith.addf %170, %174 : vector<2x11x32xf32>
    %176 = arith.addf %126, %175 : vector<2x11x32xf32>
    %c1_77 = arith.constant 1 : index
    %c0_78 = arith.constant 0 : index
    %c0_79 = arith.constant 0 : index
    %177 = vector.load %arg7[%c1_77, %c0_78, %c0_79] : memref<2x1x32xf32, #tpu.memory_space<vmem>>, vector<1x1x32xf32>
    %178 = vector.shape_cast %177 : vector<1x1x32xf32> to vector<1x32xf32>
    %c1_80 = arith.constant 1 : index
    %c0_81 = arith.constant 0 : index
    %c0_82 = arith.constant 0 : index
    %179 = vector.load %arg8[%c1_80, %c0_81, %c0_82] : memref<2x1x32xf32, #tpu.memory_space<vmem>>, vector<1x1x32xf32>
    %180 = vector.shape_cast %179 : vector<1x1x32xf32> to vector<1x32xf32>
    %cst_83 = arith.constant dense<0.000000e+00> : vector<2x11xf32>
    %181 = vector.multi_reduction <add>, %176, %cst_83 [2] : vector<2x11x32xf32> to vector<2x11xf32>
    %182 = vector.shape_cast %181 : vector<2x11xf32> to vector<2x11x1xf32>
    %cst_84 = arith.constant 3.200000e+01 : f32
    %183 = vector.broadcast %cst_84 : f32 to vector<2x11x1xf32>
    %184 = arith.divf %182, %183 : vector<2x11x1xf32>
    %185 = vector.broadcast %184 : vector<2x11x1xf32> to vector<2x11x32xf32>
    %186 = arith.subf %176, %185 : vector<2x11x32xf32>
    %187 = arith.mulf %186, %186 : vector<2x11x32xf32>
    %cst_85 = arith.constant dense<0.000000e+00> : vector<2x11xf32>
    %188 = vector.multi_reduction <add>, %187, %cst_85 [2] : vector<2x11x32xf32> to vector<2x11xf32>
    %189 = vector.shape_cast %188 : vector<2x11xf32> to vector<2x11x1xf32>
    %cst_86 = arith.constant 3.200000e+01 : f32
    %190 = vector.broadcast %cst_86 : f32 to vector<2x11x1xf32>
    %191 = arith.divf %189, %190 : vector<2x11x1xf32>
    %cst_87 = arith.constant 9.99999974E-6 : f32
    %192 = vector.broadcast %cst_87 : f32 to vector<2x11x1xf32>
    %193 = arith.addf %191, %192 : vector<2x11x1xf32>
    %194 = math.rsqrt %193 : vector<2x11x1xf32>
    %195 = vector.broadcast %194 : vector<2x11x1xf32> to vector<2x11x32xf32>
    %196 = arith.mulf %186, %195 : vector<2x11x32xf32>
    %197 = vector.shape_cast %178 : vector<1x32xf32> to vector<1x1x32xf32>
    %198 = vector.broadcast %197 : vector<1x1x32xf32> to vector<2x11x32xf32>
    %199 = arith.mulf %196, %198 : vector<2x11x32xf32>
    %200 = vector.shape_cast %180 : vector<1x32xf32> to vector<1x1x32xf32>
    %201 = vector.broadcast %200 : vector<1x1x32xf32> to vector<2x11x32xf32>
    %202 = arith.addf %199, %201 : vector<2x11x32xf32>
    %203 = arith.truncf %202 : vector<2x11x32xf32> to vector<2x11x32xbf16>
    %c1_88 = arith.constant 1 : index
    %c0_89 = arith.constant 0 : index
    %c0_90 = arith.constant 0 : index
    %204 = vector.load %arg9[%c1_88, %c0_89, %c0_90] : memref<2x32x64xbf16, #tpu.memory_space<vmem>>, vector<1x32x64xbf16>
    %205 = vector.shape_cast %204 : vector<1x32x64xbf16> to vector<32x64xbf16>
    "tpu.trace_start"() <{level = 10 : i32, message = "bse,ef->bsf"}> : () -> ()
    %cst_91 = arith.constant dense<0.000000e+00> : vector<2x11x64xf32>
    %206 = tpu.matmul %203, %205, %cst_91 {dimension_numbers = #tpu.dot_dimension_numbers<[2], [0], [0, 1], [1], [0, 0, 0, 1, 1, 1], [], []>} : vector<2x11x32xbf16>, vector<32x64xbf16>, vector<2x11x64xf32> -> vector<2x11x64xf32>
    "tpu.trace_stop"() : () -> ()
    %c1_92 = arith.constant 1 : index
    %c0_93 = arith.constant 0 : index
    %c0_94 = arith.constant 0 : index
    %207 = vector.load %arg10[%c1_92, %c0_93, %c0_94] : memref<2x1x64xf32, #tpu.memory_space<vmem>>, vector<1x1x64xf32>
    %208 = vector.shape_cast %207 : vector<1x1x64xf32> to vector<1x64xf32>
    %209 = vector.shape_cast %208 : vector<1x64xf32> to vector<1x1x64xf32>
    %210 = vector.broadcast %209 : vector<1x1x64xf32> to vector<2x11x64xf32>
    %211 = arith.addf %206, %210 : vector<2x11x64xf32>
    %cst_95 = arith.constant 0.000000e+00 : f32
    %212 = vector.broadcast %cst_95 : f32 to vector<2x11x64xf32>
    %213 = arith.maximumf %211, %212 : vector<2x11x64xf32>
    %214 = arith.truncf %213 : vector<2x11x64xf32> to vector<2x11x64xbf16>
    %c1_96 = arith.constant 1 : index
    %c0_97 = arith.constant 0 : index
    %c0_98 = arith.constant 0 : index
    %215 = vector.load %arg11[%c1_96, %c0_97, %c0_98] : memref<2x64x32xbf16, #tpu.memory_space<vmem>>, vector<1x64x32xbf16>
    %216 = vector.shape_cast %215 : vector<1x64x32xbf16> to vector<64x32xbf16>
    "tpu.trace_start"() <{level = 10 : i32, message = "bsh,hf->bsf"}> : () -> ()
    %cst_99 = arith.constant dense<0.000000e+00> : vector<2x11x32xf32>
    %217 = tpu.matmul %214, %216, %cst_99 {dimension_numbers = #tpu.dot_dimension_numbers<[2], [0], [0, 1], [1], [0, 0, 0, 1, 1, 1], [], []>} : vector<2x11x64xbf16>, vector<64x32xbf16>, vector<2x11x32xf32> -> vector<2x11x32xf32>
    "tpu.trace_stop"() : () -> ()
    %c1_100 = arith.constant 1 : index
    %c0_101 = arith.constant 0 : index
    %c0_102 = arith.constant 0 : index
    %218 = vector.load %arg12[%c1_100, %c0_101, %c0_102] : memref<2x1x32xf32, #tpu.memory_space<vmem>>, vector<1x1x32xf32>
    %219 = vector.shape_cast %218 : vector<1x1x32xf32> to vector<1x32xf32>
    %220 = vector.shape_cast %219 : vector<1x32xf32> to vector<1x1x32xf32>
    %221 = vector.broadcast %220 : vector<1x1x32xf32> to vector<2x11x32xf32>
    %222 = arith.addf %217, %221 : vector<2x11x32xf32>
    %223 = arith.addf %202, %222 : vector<2x11x32xf32>
    %c1_103 = arith.constant 1 : index
    %c0_104 = arith.constant 0 : index
    %c0_105 = arith.constant 0 : index
    %224 = vector.load %arg13[%c1_103, %c0_104, %c0_105] : memref<2x1x32xf32, #tpu.memory_space<vmem>>, vector<1x1x32xf32>
    %225 = vector.shape_cast %224 : vector<1x1x32xf32> to vector<1x32xf32>
    %c1_106 = arith.constant 1 : index
    %c0_107 = arith.constant 0 : index
    %c0_108 = arith.constant 0 : index
    %226 = vector.load %arg14[%c1_106, %c0_107, %c0_108] : memref<2x1x32xf32, #tpu.memory_space<vmem>>, vector<1x1x32xf32>
    %227 = vector.shape_cast %226 : vector<1x1x32xf32> to vector<1x32xf32>
    %cst_109 = arith.constant dense<0.000000e+00> : vector<2x11xf32>
    %228 = vector.multi_reduction <add>, %223, %cst_109 [2] : vector<2x11x32xf32> to vector<2x11xf32>
    %229 = vector.shape_cast %228 : vector<2x11xf32> to vector<2x11x1xf32>
    %cst_110 = arith.constant 3.200000e+01 : f32
    %230 = vector.broadcast %cst_110 : f32 to vector<2x11x1xf32>
    %231 = arith.divf %229, %230 : vector<2x11x1xf32>
    %232 = vector.broadcast %231 : vector<2x11x1xf32> to vector<2x11x32xf32>
    %233 = arith.subf %223, %232 : vector<2x11x32xf32>
    %234 = arith.mulf %233, %233 : vector<2x11x32xf32>
    %cst_111 = arith.constant dense<0.000000e+00> : vector<2x11xf32>
    %235 = vector.multi_reduction <add>, %234, %cst_111 [2] : vector<2x11x32xf32> to vector<2x11xf32>
    %236 = vector.shape_cast %235 : vector<2x11xf32> to vector<2x11x1xf32>
    %cst_112 = arith.constant 3.200000e+01 : f32
    %237 = vector.broadcast %cst_112 : f32 to vector<2x11x1xf32>
    %238 = arith.divf %236, %237 : vector<2x11x1xf32>
    %cst_113 = arith.constant 9.99999974E-6 : f32
    %239 = vector.broadcast %cst_113 : f32 to vector<2x11x1xf32>
    %240 = arith.addf %238, %239 : vector<2x11x1xf32>
    %241 = math.rsqrt %240 : vector<2x11x1xf32>
    %242 = vector.broadcast %241 : vector<2x11x1xf32> to vector<2x11x32xf32>
    %243 = arith.mulf %233, %242 : vector<2x11x32xf32>
    %244 = vector.shape_cast %225 : vector<1x32xf32> to vector<1x1x32xf32>
    %245 = vector.broadcast %244 : vector<1x1x32xf32> to vector<2x11x32xf32>
    %246 = arith.mulf %243, %245 : vector<2x11x32xf32>
    %247 = vector.shape_cast %227 : vector<1x32xf32> to vector<1x1x32xf32>
    %248 = vector.broadcast %247 : vector<1x1x32xf32> to vector<2x11x32xf32>
    %249 = arith.addf %246, %248 : vector<2x11x32xf32>
    %250 = vector.extract_strided_slice %249 {offsets = [0, 1, 0], sizes = [2, 1, 32], strides = [1, 1, 1]} : vector<2x11x32xf32> to vector<2x1x32xf32>
    %251 = vector.shape_cast %250 : vector<2x1x32xf32> to vector<2x32xf32>
    %252 = arith.truncf %251 : vector<2x32xf32> to vector<2x32xbf16>
    %c0_114 = arith.constant 0 : index
    %c0_115 = arith.constant 0 : index
    %253 = vector.load %arg15[%c0_114, %c0_115] : memref<32x32xbf16, #tpu.memory_space<vmem>>, vector<32x32xbf16>
    %cst_116 = arith.constant dense<0.000000e+00> : vector<2x32xf32>
    %254 = tpu.matmul %252, %253, %cst_116 {dimension_numbers = #tpu.dot_dimension_numbers<[1], [0], [0], [1], [0, 0, 1, 1], [], []>} : vector<2x32xbf16>, vector<32x32xbf16>, vector<2x32xf32> -> vector<2x32xf32>
    %c0_117 = arith.constant 0 : index
    %c0_118 = arith.constant 0 : index
    %255 = vector.load %arg16[%c0_117, %c0_118] : memref<1x32xf32, #tpu.memory_space<vmem>>, vector<1x32xf32>
    %256 = vector.broadcast %255 : vector<1x32xf32> to vector<2x32xf32>
    %257 = arith.addf %254, %256 : vector<2x32xf32>
    %258 = arith.negf %257 : vector<2x32xf32>
    %259 = math.exp %258 : vector<2x32xf32>
    %cst_119 = arith.constant 1.000000e+00 : f32
    %260 = vector.broadcast %cst_119 : f32 to vector<2x32xf32>
    %261 = arith.addf %260, %259 : vector<2x32xf32>
    %262 = arith.divf %260, %261 : vector<2x32xf32>
    %263 = arith.truncf %262 : vector<2x32xf32> to vector<2x32xbf16>
    %c0_120 = arith.constant 0 : index
    %c0_121 = arith.constant 0 : index
    %264 = vector.load %arg17[%c0_120, %c0_121] : memref<32x1xbf16, #tpu.memory_space<vmem>>, vector<32x1xbf16>
    %cst_122 = arith.constant dense<0.000000e+00> : vector<2x1xf32>
    %265 = tpu.matmul %263, %264, %cst_122 {dimension_numbers = #tpu.dot_dimension_numbers<[1], [0], [0], [1], [0, 0, 1, 1], [], []>} : vector<2x32xbf16>, vector<32x1xbf16>, vector<2x1xf32> -> vector<2x1xf32>
    %c0_123 = arith.constant 0 : index
    %c0_124 = arith.constant 0 : index
    %266 = vector.load %arg18[%c0_123, %c0_124] : memref<1x1xf32, #tpu.memory_space<vmem>>, vector<1x1xf32>
    %267 = vector.broadcast %266 : vector<1x1xf32> to vector<2x1xf32>
    %268 = arith.addf %265, %267 : vector<2x1xf32>
    %c0_125 = arith.constant 0 : index
    %c0_126 = arith.constant 0 : index
    %269 = vector.load %arg21[%c0_125, %c0_126] : memref<2x1xf32, #tpu.memory_space<vmem>>, vector<2x1xf32>
    tpu.vector_store %arg21[%c0_125, %c0_126], %268 {strides = array<i32>} : memref<2x1xf32, #tpu.memory_space<vmem>>, vector<2x1xf32>,
    %270 = vector.extract_strided_slice %249 {offsets = [0, 2, 0], sizes = [2, 9, 32], strides = [1, 1, 1]} : vector<2x11x32xf32> to vector<2x9x32xf32>
    %271 = arith.truncf %270 : vector<2x9x32xf32> to vector<2x9x32xbf16>
    %c0_127 = arith.constant 0 : index
    %c0_128 = arith.constant 0 : index
    %272 = vector.load %arg19[%c0_127, %c0_128] : memref<32x128xbf16, #tpu.memory_space<vmem>>, vector<32x128xbf16>
    "tpu.trace_start"() <{level = 10 : i32, message = "bte,ev->btv"}> : () -> ()
    %cst_129 = arith.constant dense<0.000000e+00> : vector<2x9x128xf32>
    %273 = tpu.matmul %271, %272, %cst_129 {dimension_numbers = #tpu.dot_dimension_numbers<[2], [0], [0, 1], [1], [0, 0, 0, 1, 1, 1], [], []>} : vector<2x9x32xbf16>, vector<32x128xbf16>, vector<2x9x128xf32> -> vector<2x9x128xf32>
    "tpu.trace_stop"() : () -> ()
    %c0_130 = arith.constant 0 : index
    %c0_131 = arith.constant 0 : index
    %274 = vector.load %arg20[%c0_130, %c0_131] : memref<1x128xf32, #tpu.memory_space<vmem>>, vector<1x128xf32>
    %275 = vector.shape_cast %274 : vector<1x128xf32> to vector<1x1x128xf32>
    %276 = vector.broadcast %275 : vector<1x1x128xf32> to vector<2x9x128xf32>
    %277 = arith.addf %273, %276 : vector<2x9x128xf32>
    %278 = vector.extract_strided_slice %277 {offsets = [0, 0, 0], sizes = [2, 1, 128], strides = [1, 1, 1]} : vector<2x9x128xf32> to vector<2x1x128xf32>
    %279 = vector.shape_cast %278 : vector<2x1x128xf32> to vector<2x128xf32>
    %c0_132 = arith.constant 0 : index
    %c0_133 = arith.constant 0 : index
    %280 = vector.load %arg22[%c0_132, %c0_133] : memref<2x128xf32, #tpu.memory_space<vmem>>, vector<2x128xf32>
    tpu.vector_store %arg22[%c0_132, %c0_133], %279 {strides = array<i32>} : memref<2x128xf32, #tpu.memory_space<vmem>>, vector<2x128xf32>,
    %281 = vector.extract_strided_slice %277 {offsets = [0, 1, 0], sizes = [2, 8, 128], strides = [1, 1, 1]} : vector<2x9x128xf32> to vector<2x8x128xf32>
    %c0_134 = arith.constant 0 : index
    %c0_135 = arith.constant 0 : index
    %c0_136 = arith.constant 0 : index
    %282 = vector.load %arg23[%c0_134, %c0_135, %c0_136] : memref<2x8x128xf32, #tpu.memory_space<vmem>>, vector<2x8x128xf32>
    tpu.vector_store %arg23[%c0_134, %c0_135, %c0_136], %281 {strides = array<i32>} : memref<2x8x128xf32, #tpu.memory_space<vmem>>, vector<2x8x128xf32>,
    return
  }
  func.func @transform_0(%arg0: i32) -> (i32, i32, i32) {
    %c0_i32 = arith.constant 0 : i32
    %c0_i32_0 = arith.constant 0 : i32
    %c0_i32_1 = arith.constant 0 : i32
    return %arg0, %c0_i32, %c0_i32_0 : i32, i32, i32
  }
  func.func @transform_1(%arg0: i32) -> (i32, i32) {
    %c0_i32 = arith.constant 0 : i32
    %c0_i32_0 = arith.constant 0 : i32
    %c0_i32_1 = arith.constant 0 : i32
    return %c0_i32, %c0_i32_0 : i32, i32
  }
  func.func @transform_2(%arg0: i32) -> (i32, i32, i32) {
    %c0_i32 = arith.constant 0 : i32
    %c0_i32_0 = arith.constant 0 : i32
    %c0_i32_1 = arith.constant 0 : i32
    %c0_i32_2 = arith.constant 0 : i32
    return %c0_i32, %c0_i32_0, %c0_i32_1 : i32, i32, i32
  }
  func.func @transform_3(%arg0: i32) -> (i32, i32, i32) {
    %c0_i32 = arith.constant 0 : i32
    %c0_i32_0 = arith.constant 0 : i32
    %c0_i32_1 = arith.constant 0 : i32
    %c0_i32_2 = arith.constant 0 : i32
    return %c0_i32, %c0_i32_0, %c0_i32_1 : i32, i32, i32
  }
  func.func @transform_4(%arg0: i32) -> (i32, i32, i32) {
    %c0_i32 = arith.constant 0 : i32
    %c0_i32_0 = arith.constant 0 : i32
    %c0_i32_1 = arith.constant 0 : i32
    %c0_i32_2 = arith.constant 0 : i32
    return %c0_i32, %c0_i32_0, %c0_i32_1 : i32, i32, i32
  }
  func.func @transform_5(%arg0: i32) -> (i32, i32, i32) {
    %c0_i32 = arith.constant 0 : i32
    %c0_i32_0 = arith.constant 0 : i32
    %c0_i32_1 = arith.constant 0 : i32
    %c0_i32_2 = arith.constant 0 : i32
    return %c0_i32, %c0_i32_0, %c0_i32_1 : i32, i32, i32
  }
  func.func @transform_6(%arg0: i32) -> (i32, i32, i32) {
    %c0_i32 = arith.constant 0 : i32
    %c0_i32_0 = arith.constant 0 : i32
    %c0_i32_1 = arith.constant 0 : i32
    %c0_i32_2 = arith.constant 0 : i32
    return %c0_i32, %c0_i32_0, %c0_i32_1 : i32, i32, i32
  }
  func.func @transform_7(%arg0: i32) -> (i32, i32, i32) {
    %c0_i32 = arith.constant 0 : i32
    %c0_i32_0 = arith.constant 0 : i32
    %c0_i32_1 = arith.constant 0 : i32
    %c0_i32_2 = arith.constant 0 : i32
    return %c0_i32, %c0_i32_0, %c0_i32_1 : i32, i32, i32
  }
  func.func @transform_8(%arg0: i32) -> (i32, i32, i32) {
    %c0_i32 = arith.constant 0 : i32
    %c0_i32_0 = arith.constant 0 : i32
    %c0_i32_1 = arith.constant 0 : i32
    %c0_i32_2 = arith.constant 0 : i32
    return %c0_i32, %c0_i32_0, %c0_i32_1 : i32, i32, i32
  }
  func.func @transform_9(%arg0: i32) -> (i32, i32, i32) {
    %c0_i32 = arith.constant 0 : i32
    %c0_i32_0 = arith.constant 0 : i32
    %c0_i32_1 = arith.constant 0 : i32
    %c0_i32_2 = arith.constant 0 : i32
    return %c0_i32, %c0_i32_0, %c0_i32_1 : i32, i32, i32
  }
  func.func @transform_10(%arg0: i32) -> (i32, i32, i32) {
    %c0_i32 = arith.constant 0 : i32
    %c0_i32_0 = arith.constant 0 : i32
    %c0_i32_1 = arith.constant 0 : i32
    %c0_i32_2 = arith.constant 0 : i32
    return %c0_i32, %c0_i32_0, %c0_i32_1 : i32, i32, i32
  }
  func.func @transform_11(%arg0: i32) -> (i32, i32, i32) {
    %c0_i32 = arith.constant 0 : i32
    %c0_i32_0 = arith.constant 0 : i32
    %c0_i32_1 = arith.constant 0 : i32
    %c0_i32_2 = arith.constant 0 : i32
    return %c0_i32, %c0_i32_0, %c0_i32_1 : i32, i32, i32
  }
  func.func @transform_12(%arg0: i32) -> (i32, i32, i32) {
    %c0_i32 = arith.constant 0 : i32
    %c0_i32_0 = arith.constant 0 : i32
    %c0_i32_1 = arith.constant 0 : i32
    %c0_i32_2 = arith.constant 0 : i32
    return %c0_i32, %c0_i32_0, %c0_i32_1 : i32, i32, i32
  }
  func.func @transform_13(%arg0: i32) -> (i32, i32, i32) {
    %c0_i32 = arith.constant 0 : i32
    %c0_i32_0 = arith.constant 0 : i32
    %c0_i32_1 = arith.constant 0 : i32
    %c0_i32_2 = arith.constant 0 : i32
    return %c0_i32, %c0_i32_0, %c0_i32_1 : i32, i32, i32
  }
  func.func @transform_14(%arg0: i32) -> (i32, i32) {
    %c0_i32 = arith.constant 0 : i32
    %c0_i32_0 = arith.constant 0 : i32
    %c0_i32_1 = arith.constant 0 : i32
    return %c0_i32, %c0_i32_0 : i32, i32
  }
  func.func @transform_15(%arg0: i32) -> (i32, i32) {
    %c0_i32 = arith.constant 0 : i32
    %c0_i32_0 = arith.constant 0 : i32
    %c0_i32_1 = arith.constant 0 : i32
    return %c0_i32, %c0_i32_0 : i32, i32
  }
  func.func @transform_16(%arg0: i32) -> (i32, i32) {
    %c0_i32 = arith.constant 0 : i32
    %c0_i32_0 = arith.constant 0 : i32
    %c0_i32_1 = arith.constant 0 : i32
    return %c0_i32, %c0_i32_0 : i32, i32
  }
  func.func @transform_17(%arg0: i32) -> (i32, i32) {
    %c0_i32 = arith.constant 0 : i32
    %c0_i32_0 = arith.constant 0 : i32
    %c0_i32_1 = arith.constant 0 : i32
    return %c0_i32, %c0_i32_0 : i32, i32
  }
  func.func @transform_18(%arg0: i32) -> (i32, i32) {
    %c0_i32 = arith.constant 0 : i32
    %c0_i32_0 = arith.constant 0 : i32
    %c0_i32_1 = arith.constant 0 : i32
    return %c0_i32, %c0_i32_0 : i32, i32
  }
  func.func @transform_19(%arg0: i32) -> (i32, i32) {
    %c0_i32 = arith.constant 0 : i32
    %c0_i32_0 = arith.constant 0 : i32
    %c0_i32_1 = arith.constant 0 : i32
    return %c0_i32, %c0_i32_0 : i32, i32
  }
  func.func @transform_20(%arg0: i32) -> (i32, i32) {
    %c0_i32 = arith.constant 0 : i32
    %c0_i32_0 = arith.constant 0 : i32
    return %arg0, %c0_i32 : i32, i32
  }
  func.func @transform_21(%arg0: i32) -> (i32, i32) {
    %c0_i32 = arith.constant 0 : i32
    %c0_i32_0 = arith.constant 0 : i32
    return %arg0, %c0_i32 : i32, i32
  }
  func.func @transform_22(%arg0: i32) -> (i32, i32, i32) {
    %c0_i32 = arith.constant 0 : i32
    %c0_i32_0 = arith.constant 0 : i32
    %c0_i32_1 = arith.constant 0 : i32
    return %arg0, %c0_i32, %c0_i32_0 : i32, i32, i32
  }
}

</mosaic_0001>

<bundles_post_ra>
// kernel: tpu_custom_call.1
= control target key start
LH: loop header
LB: loop body
LE: loop exit
PB: predicated region body
PF: predicated region fallthrough
CT: control target
= control target key end

     0   :  { %s13166_s0 = inlined_call_operand.hbm [shape: f32[2,11,32], index: 0, kind: input, shape index: {}]   ;;  %s13167_s1 = inlined_call_operand.hbm [shape: f32[11,11], index: 1, kind: input, shape index: {}]   ;;  %s13168_s2 = inlined_call_operand.hbm [shape: bf16[2,32,96], index: 2, kind: input, shape index: {}]   ;;  %s13169_s3 = inlined_call_operand.hbm [shape: f32[2,1,96], index: 3, kind: input, shape index: {}]   ;;  %s13170_s4 = inlined_call_operand.hbm [shape: bf16[2,32,32], index: 4, kind: input, shape index: {}]   ;;  %s13171_s5 = inlined_call_operand.hbm [shape: f32[2,1,32], index: 5, kind: input, shape index: {}]   ;;  %s13172_s6 = inlined_call_operand.hbm [shape: f32[2,1,32], index: 6, kind: input, shape index: {}]   ;;  %s13173_s7 = inlined_call_operand.hbm [shape: f32[2,1,32], index: 7, kind: input, shape index: {}]   ;;  %s13174_s8 = inlined_call_operand.hbm [shape: bf16[2,32,64], index: 8, kind: input, shape index: {}]   ;;  %s13175_s9 = inlined_call_operand.hbm [shape: f32[2,1,64], index: 9, kind: input, shape index: {}]   ;;  %s13176_s10 = inlined_call_operand.hbm [shape: bf16[2,64,32], index: 10, kind: input, shape index: {}]   ;;  %s13177_s11 = inlined_call_operand.hbm [shape: f32[2,1,32], index: 11, kind: input, shape index: {}]   ;;  %s13178_s12 = inlined_call_operand.hbm [shape: f32[2,1,32], index: 12, kind: input, shape index: {}]   ;;  %s13179_s13 = inlined_call_operand.hbm [shape: f32[2,1,32], index: 13, kind: input, shape index: {}]   ;;  %s13180_s14 = inlined_call_operand.hbm [shape: bf16[32,32], index: 14, kind: input, shape index: {}]   ;;  %s13181_s15 = inlined_call_operand.hbm [shape: f32[1,32], index: 15, kind: input, shape index: {}]   ;;  %s13182_s16 = inlined_call_operand.hbm [shape: bf16[32,1], index: 16, kind: input, shape index: {}]   ;;  %s13183_s17 = inlined_call_operand.<no memory space> [shape: f32[1,1], index: 17, kind: input, shape index: {}]   ;;  %s13184_s18 = inlined_call_operand.hbm [shape: bf16[32,128], index: 18, kind: input, shape index: {}]   ;;  %s13185_s19 = inlined_call_operand.hbm [shape: f32[1,128], index: 19, kind: input, shape index: {}]   ;;  %s13186_s20 = inlined_call_operand.hbm [shape: f32[2,1], index: 20, kind: output, shape index: {0}]   ;;  %s13187_s21 = inlined_call_operand.hbm [shape: f32[2,128], index: 21, kind: output, shape index: {1}]   ;;  %s13188_s22 = inlined_call_operand.hbm [shape: f32[2,8,128], index: 22, kind: output, shape index: {2}]  }
   0x1   :  { %13202 = sst [smem:[#allocation49_spill]] %s13166_s0  ;;  %v28_v0 = vstv %s13183_s17 }
   0x2   :  { %13203 = sst [smem:[#allocation50_spill]] %s13167_s1  ;;  %29 = vst [vmem:[#allocation2] sm:$0x1] %v28_v0 }
   0x3   :  { %13204 = sst [smem:[#allocation51_spill]] %s13168_s2 }
   0x4   :  { %13205 = sst [smem:[#allocation52_spill]] %s13169_s3 }
   0x5   :  { %13206 = sst [smem:[#allocation53_spill]] %s13170_s4 }
   0x6   :  { %13207 = sst [smem:[#allocation54_spill]] %s13171_s5 }
   0x7   :  { %13208 = sst [smem:[#allocation55_spill]] %s13172_s6 }
   0x8   :  { %13209 = sst [smem:[#allocation56_spill]] %s13186_s20 }
   0x9   :  { %13210 = sst [smem:[#allocation57_spill]] %s13188_s22 }
   0xa   :  { %30 = vsyncpa [#allocation4], 0 }
   0xb   :  { %31 = vsyncpa [#allocation7], 0 }
   0xc   :  { %32 = vsyncpa [#allocation10], 0 }
   0xd   :  { %33 = vsyncpa [#allocation13], 0 }
   0xe   :  { %34 = vsyncpa [#allocation16], 0 }
   0xf   :  { %35 = vsyncpa [#allocation19], 0 }
  0x10   :  { %36 = vsyncpa [#allocation22], 0 }
  0x11   :  { %37 = vsyncpa [#allocation25], 0 }
  0x12   :  { %38 = vsyncpa [#allocation28], 0 }
  0x13   :  { %39 = vsyncpa [#allocation31], 0 }
  0x14   :  { %40 = vsyncpa [#allocation5], 0 }
  0x15   :  { %41 = vsyncpa [#allocation35], 0  ;;  %s11118_s29 = smov [#allocation6]   ;;  %s11119_s4 = smov [#allocation9]  }
  0x16   :  { %s59_s30 = sshll.u32 %s11118_s29, 4  ;;  %s83_s0 = sshll.u32 %s11119_s4, 4  ;;  %s60_s30 = int_to_ptr.vmem [resolvable:$true] %s59_s30  ;;  %s11270_s0 = int_to_ptr.vmem [resolvable:$true] %s83_s0 }
  0x17   :  { %s13211_s1 = sld [smem:[#allocation50_spill]] }
  0x1d   :  { %s10610_s5 = scalar_lea.hbm %s13211_s1, 256 }
  0x1e   :  { %p10611_p0 = scmp.ne.s32.totalorder %s13211_s1, %s10610_s5  ;;  %p10614_p1 = scmp.lt.u32.totalorder %s10610_s5, %s13211_s1 }
  0x20   :  { %p10616_p2 = pnand %p10614_p1, %p10611_p0 }
  0x22   :  { %10619 = shalt.err (!%p10616_p2)
}
  0x23   :  { %s10620_s2 = scalar_lea.vmem %s60_s30, 256  ;;  %p10625_p4 = scmp.lt.s32.totalorder %s60_s30, %s60_s30 }
  0x24   :  { %p10621_p3 = scmp.ne.s32.totalorder %s60_s30, %s10620_s2  ;;  %p10626_p5 = scmp.lt.s32.totalorder %s10620_s2, %s10620_s2 }
  0x26   :  { %p10627_p6 = por %p10626_p5, %p10625_p4 }
  0x28   :  { %p10628_p7 = pnand %p10627_p6, %p10621_p3 }
  0x2a   :  { %10631 = shalt.err (!%p10628_p7)
}
  0x2b   :  { %s13196_s27 = smov 128   ;;  %s13198_s3 = smov 8  }
  0x2c   :  { %65 = dma.hbm_to_vmem [thread:$0]  %s13211_s1, 256, %s60_s30, [#allocation7], %s13196_s27, %s13196_s27, %s13198_s3  }
  0x2d   :  { %s13212_s23 = sld [smem:[#allocation52_spill]] }
  0x33   :  { %s10632_s5 = scalar_lea.hbm %s13212_s23, 32 }
  0x34   :  { %p10633_p8 = scmp.ne.s32.totalorder %s13212_s23, %s10632_s5  ;;  %p10636_p9 = scmp.lt.u32.totalorder %s10632_s5, %s13212_s23 }
  0x36   :  { %p10638_p10 = pnand %p10636_p9, %p10633_p8 }
  0x38   :  { %10641 = shalt.err (!%p10638_p10)
}
  0x39   :  { %s10642_s2 = scalar_lea.vmem %s11270_s0, 32  ;;  %p10647_p12 = scmp.lt.s32.totalorder %s11270_s0, %s11270_s0 }
  0x3a   :  { %p10643_p11 = scmp.ne.s32.totalorder %s11270_s0, %s10642_s2  ;;  %p10648_p13 = scmp.lt.s32.totalorder %s10642_s2, %s10642_s2 }
  0x3c   :  { %p10649_p0 = por %p10648_p13, %p10647_p12 }
  0x3e   :  { %p10650_p1 = pnand %p10649_p0, %p10643_p11 }
  0x40   :  { %10653 = shalt.err (!%p10650_p1)
}
  0x41   :  { %s11122_s30 = smov 16   ;;  %s11123_s1 = smov 1  }
  0x42   :  { %89 = dma.hbm_to_vmem [thread:$0]  %s13212_s23, 32, %s11270_s0, [#allocation10], %s11122_s30, %s11122_s30, %s11123_s1  }
  0x43   :  { %s11124_s4 = smov [#allocation12]   ;;  %s11125_s5 = smov [#allocation15]  }
  0x44   :  { %s107_s17 = sshll.u32 %s11124_s4, 4  ;;  %s131_s24 = sshll.u32 %s11125_s5, 4  ;;  %s108_s17 = int_to_ptr.vmem [resolvable:$true] %s107_s17  ;;  %s11307_s24 = int_to_ptr.vmem [resolvable:$true] %s131_s24 }
  0x45   :  { %s13213_s26 = sld [smem:[#allocation54_spill]] }
  0x4b   :  { %s10654_s2 = scalar_lea.hbm %s13213_s26, 32 }
  0x4c   :  { %p10655_p2 = scmp.ne.s32.totalorder %s13213_s26, %s10654_s2  ;;  %p10658_p3 = scmp.lt.u32.totalorder %s10654_s2, %s13213_s26 }
  0x4e   :  { %p10660_p4 = pnand %p10658_p3, %p10655_p2 }
  0x50   :  { %10663 = shalt.err (!%p10660_p4)
}
  0x51   :  { %s10664_s0 = scalar_lea.vmem %s108_s17, 32  ;;  %p10669_p6 = scmp.lt.s32.totalorder %s108_s17, %s108_s17 }
  0x52   :  { %p10665_p5 = scmp.ne.s32.totalorder %s108_s17, %s10664_s0  ;;  %p10670_p7 = scmp.lt.s32.totalorder %s10664_s0, %s10664_s0 }
  0x54   :  { %p10671_p8 = por %p10670_p7, %p10669_p6 }
  0x56   :  { %p10672_p9 = pnand %p10671_p8, %p10665_p5 }
  0x58   :  { %10675 = shalt.err (!%p10672_p9)
}
  0x59   :  { %113 = dma.hbm_to_vmem [thread:$0]  %s13213_s26, 32, %s108_s17, [#allocation13], %s11122_s30, %s11122_s30, %s11123_s1  }
  0x5a   :  { %s10676_s20 = scalar_lea.hbm %s13173_s7, 32 }
  0x5b   :  { %p10677_p10 = scmp.ne.s32.totalorder %s13173_s7, %s10676_s20  ;;  %p10680_p11 = scmp.lt.u32.totalorder %s10676_s20, %s13173_s7 }
  0x5d   :  { %p10682_p12 = pnand %p10680_p11, %p10677_p10 }
  0x5f   :  { %10685 = shalt.err (!%p10682_p12)
}
  0x60   :  { %s10686_s6 = scalar_lea.vmem %s11307_s24, 32  ;;  %p10691_p0 = scmp.lt.s32.totalorder %s11307_s24, %s11307_s24 }
  0x61   :  { %p10687_p13 = scmp.ne.s32.totalorder %s11307_s24, %s10686_s6  ;;  %p10692_p1 = scmp.lt.s32.totalorder %s10686_s6, %s10686_s6 }
  0x63   :  { %p10693_p2 = por %p10692_p1, %p10691_p0 }
  0x65   :  { %p10694_p3 = pnand %p10693_p2, %p10687_p13 }
  0x67   :  { %10697 = shalt.err (!%p10694_p3)
}
  0x68   :  { %137 = dma.hbm_to_vmem [thread:$0]  %s13173_s7, 32, %s11307_s24, [#allocation16], %s11122_s30, %s11122_s30, %s11123_s1  }
  0x69   :  { %s11126_s26 = smov [#allocation18]   ;;  %s11127_s0 = smov [#allocation21]  }
  0x6a   :  { %s155_s2 = sshll.u32 %s11126_s26, 4  ;;  %s179_s23 = sshll.u32 %s11127_s0, 4  ;;  %s156_s2 = int_to_ptr.vmem [resolvable:$true] %s155_s2  ;;  %s11344_s23 = int_to_ptr.vmem [resolvable:$true] %s179_s23 }
  0x6b   :  { %s10698_s3 = scalar_lea.hbm %s13175_s9, 32 }
  0x6c   :  { %p10699_p4 = scmp.ne.s32.totalorder %s13175_s9, %s10698_s3  ;;  %p10702_p5 = scmp.lt.u32.totalorder %s10698_s3, %s13175_s9 }
  0x6e   :  { %p10704_p6 = pnand %p10702_p5, %p10699_p4 }
  0x70   :  { %10707 = shalt.err (!%p10704_p6)
}
  0x71   :  { %s10708_s7 = scalar_lea.vmem %s156_s2, 32  ;;  %p10713_p8 = scmp.lt.s32.totalorder %s156_s2, %s156_s2 }
  0x72   :  { %p10709_p7 = scmp.ne.s32.totalorder %s156_s2, %s10708_s7  ;;  %p10714_p9 = scmp.lt.s32.totalorder %s10708_s7, %s10708_s7 }
  0x74   :  { %p10715_p10 = por %p10714_p9, %p10713_p8 }
  0x76   :  { %p10716_p11 = pnand %p10715_p10, %p10709_p7 }
  0x78   :  { %10719 = shalt.err (!%p10716_p11)
}
  0x79   :  { %161 = dma.hbm_to_vmem [thread:$0]  %s13175_s9, 32, %s156_s2, [#allocation19], %s11122_s30, %s11122_s30, %s11123_s1  }
  0x7a   :  { %s10720_s25 = scalar_lea.hbm %s13177_s11, 32 }
  0x7b   :  { %p10721_p12 = scmp.ne.s32.totalorder %s13177_s11, %s10720_s25  ;;  %p10724_p13 = scmp.lt.u32.totalorder %s10720_s25, %s13177_s11 }
  0x7d   :  { %p10726_p0 = pnand %p10724_p13, %p10721_p12 }
  0x7f   :  { %10729 = shalt.err (!%p10726_p0)
}
  0x80   :  { %s10730_s3 = scalar_lea.vmem %s11344_s23, 32  ;;  %p10735_p2 = scmp.lt.s32.totalorder %s11344_s23, %s11344_s23 }
  0x81   :  { %p10731_p1 = scmp.ne.s32.totalorder %s11344_s23, %s10730_s3  ;;  %p10736_p3 = scmp.lt.s32.totalorder %s10730_s3, %s10730_s3 }
  0x83   :  { %p10737_p4 = por %p10736_p3, %p10735_p2 }
  0x85   :  { %p10738_p5 = pnand %p10737_p4, %p10731_p1 }
  0x87   :  { %10741 = shalt.err (!%p10738_p5)
}
  0x88   :  { %185 = dma.hbm_to_vmem [thread:$0]  %s13177_s11, 32, %s11344_s23, [#allocation22], %s11122_s30, %s11122_s30, %s11123_s1  }
  0x89   :  { %s11128_s20 = smov [#allocation24]   ;;  %s11129_s29 = smov [#allocation27]  }
  0x8a   :  { %s203_s22 = sshll.u32 %s11128_s20, 4  ;;  %s228_s4 = sshll.u32 %s11129_s29, 4  ;;  %s204_s22 = int_to_ptr.vmem [resolvable:$true] %s203_s22  ;;  %s229_s4 = int_to_ptr.vmem [resolvable:$true] %s228_s4 }
  0x8b   :  { %s10742_s5 = scalar_lea.hbm %s13179_s13, 32 }
  0x8c   :  { %p10743_p6 = scmp.ne.s32.totalorder %s13179_s13, %s10742_s5  ;;  %p10746_p7 = scmp.lt.u32.totalorder %s10742_s5, %s13179_s13 }
  0x8e   :  { %p10748_p8 = pnand %p10746_p7, %p10743_p6 }
  0x90   :  { %10751 = shalt.err (!%p10748_p8)
}
  0x91   :  { %s10752_s11 = scalar_lea.vmem %s204_s22, 32  ;;  %p10757_p10 = scmp.lt.s32.totalorder %s204_s22, %s204_s22 }
  0x92   :  { %p10753_p9 = scmp.ne.s32.totalorder %s204_s22, %s10752_s11  ;;  %p10758_p11 = scmp.lt.s32.totalorder %s10752_s11, %s10752_s11 }
  0x94   :  { %p10759_p12 = por %p10758_p11, %p10757_p10 }
  0x96   :  { %p10760_p13 = pnand %p10759_p12, %p10753_p9 }
  0x98   :  { %10763 = shalt.err (!%p10760_p13)
}
  0x99   :  { %209 = dma.hbm_to_vmem [thread:$0]  %s13179_s13, 32, %s204_s22, [#allocation25], %s11122_s30, %s11122_s30, %s11123_s1  }
  0x9a   :  { %s10764_s3 = scalar_lea.hbm %s13181_s15, 16 }
  0x9b   :  { %p10765_p0 = scmp.ne.s32.totalorder %s13181_s15, %s10764_s3  ;;  %p10768_p1 = scmp.lt.u32.totalorder %s10764_s3, %s13181_s15 }
  0x9d   :  { %p10770_p2 = pnand %p10768_p1, %p10765_p0 }
  0x9f   :  { %10773 = shalt.err (!%p10770_p2)
}
  0xa0   :  { %s10774_s7 = scalar_lea.vmem %s229_s4, 16  ;;  %s10778_s24 = scalar_lea.vmem %s229_s4, 32 }
  0xa1   :  { %p10775_p3 = scmp.ne.s32.totalorder %s229_s4, %s10774_s7  ;;  %p10779_p4 = scmp.lt.s32.totalorder %s229_s4, %s229_s4 }
  0xa2   :  { %p10780_p5 = scmp.lt.s32.totalorder %s10778_s24, %s10774_s7 }
  0xa4   :  { %p10781_p6 = por %p10780_p5, %p10779_p4 }
  0xa6   :  { %p10782_p7 = pnand %p10781_p6, %p10775_p3 }
  0xa8   :  { %10785 = shalt.err (!%p10782_p7)
}
  0xa9   :  { %231 = dma.hbm_to_vmem [thread:$0]  %s13181_s15, 16, %s229_s4, [#allocation28]  }
  0xaa   :  { %s11130_s5 = smov [#allocation30]   ;;  %s11131_s17 = smov [#allocation3]  }
  0xab   :  { %s251_s6 = sshll.u32 %s11130_s5, 4  ;;  %s47_s25 = sshll.u32 %s11131_s17, 4  ;;  %s252_s6 = int_to_ptr.vmem [resolvable:$true] %s251_s6  ;;  %s11408_s25 = int_to_ptr.vmem [resolvable:$true] %s47_s25 }
  0xac   :  { %s10786_s23 = scalar_lea.hbm %s13184_s18, 256 }
  0xad   :  { %p10787_p8 = scmp.ne.s32.totalorder %s13184_s18, %s10786_s23  ;;  %p10790_p9 = scmp.lt.u32.totalorder %s10786_s23, %s13184_s18 }
  0xaf   :  { %p10792_p10 = pnand %p10790_p9, %p10787_p8 }
  0xb1   :  { %10795 = shalt.err (!%p10792_p10)
}
  0xb2   :  { %s10796_s15 = scalar_lea.vmem %s252_s6, 256  ;;  %p10801_p12 = scmp.lt.s32.totalorder %s252_s6, %s252_s6 }
  0xb3   :  { %p10797_p11 = scmp.ne.s32.totalorder %s252_s6, %s10796_s15  ;;  %p10802_p13 = scmp.lt.s32.totalorder %s10796_s15, %s10796_s15 }
  0xb5   :  { %p10803_p0 = por %p10802_p13, %p10801_p12 }
  0xb7   :  { %p10804_p1 = pnand %p10803_p0, %p10797_p11 }
  0xb9   :  { %10807 = shalt.err (!%p10804_p1)
}
  0xba   :  { %s11132_s4 = smov 64   ;;  %s11133_s9 = smov 4  }
  0xbb   :  { %257 = dma.hbm_to_vmem [thread:$0]  %s13184_s18, 256, %s252_s6, [#allocation31], %s11132_s4, %s11132_s4, %s11133_s9  }
  0xbc   :  { %s13214_s24 = sld [smem:[#allocation49_spill]] }
  0xc2   :  { %s10808_s13 = scalar_lea.hbm %s13214_s24, 512 }
  0xc3   :  { %p10809_p2 = scmp.ne.s32.totalorder %s13214_s24, %s10808_s13  ;;  %p10812_p3 = scmp.lt.u32.totalorder %s10808_s13, %s13214_s24 }
  0xc5   :  { %p10814_p4 = pnand %p10812_p3, %p10809_p2 }
  0xc7   :  { %10817 = shalt.err (!%p10814_p4)
}
  0xc8   :  { %s10818_s11 = scalar_lea.vmem %s11408_s25, 512  ;;  %p10823_p6 = scmp.lt.s32.totalorder %s11408_s25, %s11408_s25 }
  0xc9   :  { %p10819_p5 = scmp.ne.s32.totalorder %s11408_s25, %s10818_s11  ;;  %p10824_p7 = scmp.lt.s32.totalorder %s10818_s11, %s10818_s11 }
  0xcb   :  { %p10825_p8 = por %p10824_p7, %p10823_p6 }
  0xcd   :  { %p10826_p9 = pnand %p10825_p8, %p10819_p5 }
  0xcf   :  { %10829 = shalt.err (!%p10826_p9)
}
  0xd0   :  { %s13215_s18 = smov 8   ;;  %s13216_s6 = smov 128  }
  0xd1   :  { %53 = dma.hbm_to_vmem [thread:$0]  %s13214_s24, 512, %s11408_s25, [#allocation4], %s13216_s6, %s13216_s6, %s13215_s18  }
  0xd2   :  { %s11134_s28 = smov [#allocation8]   ;;  %s11135_s3 = smov [#allocation11]  }
  0xd3   :  { %s71_s27 = sshll.u32 %s11134_s28, 4  ;;  %s95_s15 = sshll.u32 %s11135_s3, 4  ;;  %s72_s27 = int_to_ptr.vmem [resolvable:$true] %s71_s27  ;;  %s11445_s15 = int_to_ptr.vmem [resolvable:$true] %s95_s15 }
  0xd4   :  { %s13217_s29 = sld [smem:[#allocation51_spill]] }
  0xda   :  { %s10830_s7 = scalar_lea.hbm %s13217_s29, 512 }
  0xdb   :  { %p10831_p10 = scmp.ne.s32.totalorder %s13217_s29, %s10830_s7  ;;  %p10834_p11 = scmp.lt.u32.totalorder %s10830_s7, %s13217_s29 }
  0xdd   :  { %p10836_p12 = pnand %p10834_p11, %p10831_p10 }
  0xdf   :  { %10839 = shalt.err (!%p10836_p12)
}
  0xe0   :  { %s10840_s25 = scalar_lea.vmem %s72_s27, 512  ;;  %p10845_p0 = scmp.lt.s32.totalorder %s72_s27, %s72_s27 }
  0xe1   :  { %p10841_p13 = scmp.ne.s32.totalorder %s72_s27, %s10840_s25  ;;  %p10846_p1 = scmp.lt.s32.totalorder %s10840_s25, %s10840_s25 }
  0xe3   :  { %p10847_p2 = por %p10846_p1, %p10845_p0 }
  0xe5   :  { %p10848_p3 = pnand %p10847_p2, %p10841_p13 }
  0xe7   :  { %10851 = shalt.err (!%p10848_p3)
}
  0xe8   :  { %77 = dma.hbm_to_vmem [thread:$0]  %s13217_s29, 512, %s72_s27, [#allocation7], %s11132_s4, %s11132_s4, %s11133_s9  }
  0xe9   :  { %s13218_s0 = sld [smem:[#allocation53_spill]] }
  0xef   :  { %s10852_s28 = scalar_lea.hbm %s13218_s0, 512 }
  0xf0   :  { %p10853_p4 = scmp.ne.s32.totalorder %s13218_s0, %s10852_s28  ;;  %p10856_p5 = scmp.lt.u32.totalorder %s10852_s28, %s13218_s0 }
  0xf2   :  { %p10858_p6 = pnand %p10856_p5, %p10853_p4 }
  0xf4   :  { %10861 = shalt.err (!%p10858_p6)
}
  0xf5   :  { %s10862_s13 = scalar_lea.vmem %s11445_s15, 512  ;;  %p10867_p8 = scmp.lt.s32.totalorder %s11445_s15, %s11445_s15 }
  0xf6   :  { %p10863_p7 = scmp.ne.s32.totalorder %s11445_s15, %s10862_s13  ;;  %p10868_p9 = scmp.lt.s32.totalorder %s10862_s13, %s10862_s13 }
  0xf8   :  { %p10869_p10 = por %p10868_p9, %p10867_p8 }
  0xfa   :  { %p10870_p11 = pnand %p10869_p10, %p10863_p7 }
  0xfc   :  { %10873 = shalt.err (!%p10870_p11)
}
  0xfd   :  { %101 = dma.hbm_to_vmem [thread:$0]  %s13218_s0, 512, %s11445_s15, [#allocation10], %s11132_s4, %s11132_s4, %s11133_s9  }
  0xfe   :  { %s11136_s22 = smov [#allocation14]   ;;  %s11137_s17 = smov [#allocation17]  }
  0xff   :  { %s119_s5 = sshll.u32 %s11136_s22, 4  ;;  %s143_s25 = sshll.u32 %s11137_s17, 4  ;;  %s120_s5 = int_to_ptr.vmem [resolvable:$true] %s119_s5  ;;  %s11482_s25 = int_to_ptr.vmem [resolvable:$true] %s143_s25 }
 0x100   :  { %s13219_s11 = sld [smem:[#allocation55_spill]] }
 0x106   :  { %s10874_s23 = scalar_lea.hbm %s13219_s11, 32 }
 0x107   :  { %p10875_p12 = scmp.ne.s32.totalorder %s13219_s11, %s10874_s23  ;;  %p10878_p13 = scmp.lt.u32.totalorder %s10874_s23, %s13219_s11 }
 0x109   :  { %p10880_p0 = pnand %p10878_p13, %p10875_p12 }
 0x10b   :  { %10883 = shalt.err (!%p10880_p0)
}
 0x10c   :  { %s10884_s15 = scalar_lea.vmem %s120_s5, 32  ;;  %p10889_p2 = scmp.lt.s32.totalorder %s120_s5, %s120_s5 }
 0x10d   :  { %p10885_p1 = scmp.ne.s32.totalorder %s120_s5, %s10884_s15  ;;  %p10890_p3 = scmp.lt.s32.totalorder %s10884_s15, %s10884_s15 }
 0x10f   :  { %p10891_p4 = por %p10890_p3, %p10889_p2 }
 0x111   :  { %p10892_p5 = pnand %p10891_p4, %p10885_p1 }
 0x113   :  { %10895 = shalt.err (!%p10892_p5)
}
 0x114   :  { %125 = dma.hbm_to_vmem [thread:$0]  %s13219_s11, 32, %s120_s5, [#allocation13], %s11122_s30, %s11122_s30, %s11123_s1  }
 0x115   :  { %s10896_s29 = scalar_lea.hbm %s13174_s8, 512 }
 0x116   :  { %p10897_p6 = scmp.ne.s32.totalorder %s13174_s8, %s10896_s29  ;;  %p10900_p7 = scmp.lt.u32.totalorder %s10896_s29, %s13174_s8 }
 0x118   :  { %p10902_p8 = pnand %p10900_p7, %p10897_p6 }
 0x11a   :  { %10905 = shalt.err (!%p10902_p8)
}
 0x11b   :  { %s10906_s23 = scalar_lea.vmem %s11482_s25, 512  ;;  %p10911_p10 = scmp.lt.s32.totalorder %s11482_s25, %s11482_s25 }
 0x11c   :  { %p10907_p9 = scmp.ne.s32.totalorder %s11482_s25, %s10906_s23  ;;  %p10912_p11 = scmp.lt.s32.totalorder %s10906_s23, %s10906_s23 }
 0x11e   :  { %p10913_p12 = por %p10912_p11, %p10911_p10 }
 0x120   :  { %p10914_p13 = pnand %p10913_p12, %p10907_p9 }
 0x122   :  { %10917 = shalt.err (!%p10914_p13)
}
 0x123   :  { %149 = dma.hbm_to_vmem [thread:$0]  %s13174_s8, 512, %s11482_s25, [#allocation16], %s11132_s4, %s11132_s4, %s11133_s9  }
 0x124   :  { %s11138_s28 = smov [#allocation20]   ;;  %s11139_s2 = smov [#allocation23]  }
 0x125   :  { %s167_s3 = sshll.u32 %s11138_s28, 4  ;;  %s191_s20 = sshll.u32 %s11139_s2, 4  ;;  %s168_s3 = int_to_ptr.vmem [resolvable:$true] %s167_s3  ;;  %s11519_s20 = int_to_ptr.vmem [resolvable:$true] %s191_s20 }
 0x126   :  { %s10918_s7 = scalar_lea.hbm %s13176_s10, 1024 }
 0x127   :  { %p10919_p0 = scmp.ne.s32.totalorder %s13176_s10, %s10918_s7  ;;  %p10922_p1 = scmp.lt.u32.totalorder %s10918_s7, %s13176_s10 }
 0x129   :  { %p10924_p2 = pnand %p10922_p1, %p10919_p0 }
 0x12b   :  { %10927 = shalt.err (!%p10924_p2)
}
 0x12c   :  { %s10928_s8 = scalar_lea.vmem %s168_s3, 1024  ;;  %p10933_p4 = scmp.lt.s32.totalorder %s168_s3, %s168_s3 }
 0x12d   :  { %p10929_p3 = scmp.ne.s32.totalorder %s168_s3, %s10928_s8  ;;  %p10934_p5 = scmp.lt.s32.totalorder %s10928_s8, %s10928_s8 }
 0x12f   :  { %p10935_p6 = por %p10934_p5, %p10933_p4 }
 0x131   :  { %p10936_p7 = pnand %p10935_p6, %p10929_p3 }
 0x133   :  { %10939 = shalt.err (!%p10936_p7)
}
 0x134   :  { %173 = dma.hbm_to_vmem [thread:$0]  %s13176_s10, 1024, %s168_s3, [#allocation19], %s11132_s4, %s11132_s4, %s11133_s9  }
 0x135   :  { %s10940_s23 = scalar_lea.hbm %s13178_s12, 32 }
 0x136   :  { %p10941_p8 = scmp.ne.s32.totalorder %s13178_s12, %s10940_s23  ;;  %p10944_p9 = scmp.lt.u32.totalorder %s10940_s23, %s13178_s12 }
 0x138   :  { %p10946_p10 = pnand %p10944_p9, %p10941_p8 }
 0x13a   :  { %10949 = shalt.err (!%p10946_p10)
}
 0x13b   :  { %s10950_s15 = scalar_lea.vmem %s11519_s20, 32  ;;  %p10955_p12 = scmp.lt.s32.totalorder %s11519_s20, %s11519_s20 }
 0x13c   :  { %p10951_p11 = scmp.ne.s32.totalorder %s11519_s20, %s10950_s15  ;;  %p10956_p13 = scmp.lt.s32.totalorder %s10950_s15, %s10950_s15 }
 0x13e   :  { %p10957_p0 = por %p10956_p13, %p10955_p12 }
 0x140   :  { %p10958_p1 = pnand %p10957_p0, %p10951_p11 }
 0x142   :  { %10961 = shalt.err (!%p10958_p1)
}
 0x143   :  { %197 = dma.hbm_to_vmem [thread:$0]  %s13178_s12, 32, %s11519_s20, [#allocation22], %s11122_s30, %s11122_s30, %s11123_s1  }
 0x144   :  { %s11140_s0 = smov [#allocation26]   ;;  %s11141_s13 = smov [#allocation29]  }
 0x145   :  { %s215_s7 = sshll.u32 %s11140_s0, 4  ;;  %s237_s27 = sshll.u32 %s11141_s13, 4  ;;  %s216_s7 = int_to_ptr.vmem [resolvable:$true] %s215_s7  ;;  %s11556_s27 = int_to_ptr.vmem [resolvable:$true] %s237_s27 }
 0x146   :  { %s10962_s8 = scalar_lea.hbm %s13180_s14, 256 }
 0x147   :  { %p10963_p2 = scmp.ne.s32.totalorder %s13180_s14, %s10962_s8  ;;  %p10966_p3 = scmp.lt.u32.totalorder %s10962_s8, %s13180_s14 }
 0x149   :  { %p10968_p4 = pnand %p10966_p3, %p10963_p2 }
 0x14b   :  { %10971 = shalt.err (!%p10968_p4)
}
 0x14c   :  { %s10972_s12 = scalar_lea.vmem %s216_s7, 256  ;;  %p10977_p6 = scmp.lt.s32.totalorder %s216_s7, %s216_s7 }
 0x14d   :  { %p10973_p5 = scmp.ne.s32.totalorder %s216_s7, %s10972_s12  ;;  %p10978_p7 = scmp.lt.s32.totalorder %s10972_s12, %s10972_s12 }
 0x14f   :  { %p10979_p8 = por %p10978_p7, %p10977_p6 }
 0x151   :  { %p10980_p9 = pnand %p10979_p8, %p10973_p5 }
 0x153   :  { %10983 = shalt.err (!%p10980_p9)
}
 0x154   :  { %221 = dma.hbm_to_vmem [thread:$0]  %s13180_s14, 256, %s216_s7, [#allocation25], %s11132_s4, %s11132_s4, %s11133_s9  }
 0x155   :  { %s10984_s11 = scalar_lea.hbm %s13182_s16, 256 }
 0x156   :  { %p10985_p10 = scmp.ne.s32.totalorder %s13182_s16, %s10984_s11  ;;  %p10988_p11 = scmp.lt.u32.totalorder %s10984_s11, %s13182_s16 }
 0x158   :  { %p10990_p12 = pnand %p10988_p11, %p10985_p10 }
 0x15a   :  { %10993 = shalt.err (!%p10990_p12)
}
 0x15b   :  { %s10994_s3 = scalar_lea.vmem %s11556_s27, 256  ;;  %p10999_p0 = scmp.lt.s32.totalorder %s11556_s27, %s11556_s27 }
 0x15c   :  { %p10995_p13 = scmp.ne.s32.totalorder %s11556_s27, %s10994_s3  ;;  %p11000_p1 = scmp.lt.s32.totalorder %s10994_s3, %s10994_s3 }
 0x15e   :  { %p11001_p2 = por %p11000_p1, %p10999_p0 }
 0x160   :  { %p11002_p3 = pnand %p11001_p2, %p10995_p13 }
 0x162   :  { %11005 = shalt.err (!%p11002_p3)
}
 0x163   :  { %243 = dma.hbm_to_vmem [thread:$0]  %s13182_s16, 256, %s11556_s27, [#allocation28], %s11132_s4, %s11132_s4, %s11133_s9  }
 0x164   :  { %s11142_s7 = smov [#allocation32]   ;;  %s11006_s8 = scalar_lea.hbm %s13185_s19, 16 }
 0x165   :  { %s264_s13 = sshll.u32 %s11142_s7, 4  ;;  %p11007_p4 = scmp.ne.s32.totalorder %s13185_s19, %s11006_s8  ;;  %s265_s13 = int_to_ptr.vmem [resolvable:$true] %s264_s13 }
 0x166   :  { %p11010_p5 = scmp.lt.u32.totalorder %s11006_s8, %s13185_s19 }
 0x168   :  { %p11012_p6 = pnand %p11010_p5, %p11007_p4 }
 0x16a   :  { %11015 = shalt.err (!%p11012_p6)
}
 0x16b   :  { %s11016_s12 = scalar_lea.vmem %s265_s13, 16  ;;  %s11020_s16 = scalar_lea.vmem %s265_s13, 32 }
 0x16c   :  { %p11017_p7 = scmp.ne.s32.totalorder %s265_s13, %s11016_s12  ;;  %p11021_p8 = scmp.lt.s32.totalorder %s265_s13, %s265_s13 }
 0x16d   :  { %p11022_p9 = scmp.lt.s32.totalorder %s11020_s16, %s11016_s12 }
 0x16f   :  { %p11023_p10 = por %p11022_p9, %p11021_p8 }
 0x171   :  { %p11024_p11 = pnand %p11023_p10, %p11017_p7 }
 0x173   :  { %11027 = shalt.err (!%p11024_p11)
}
 0x174   :  { %267 = dma.hbm_to_vmem [thread:$0]  %s13185_s19, 16, %s265_s13, [#allocation31]  }
 0x175   :  { %11094 = dma.done.wait [#allocation4], 512  }
 0x176   :  { %11095 = vsyncadd [#allocation4], 4294966784 }
 0x177   :  { %11096 = dma.done.wait [#allocation7], 768  }
 0x178   :  { %11097 = vsyncadd [#allocation7], 4294966528 }
 0x179   :  { %11098 = dma.done.wait [#allocation10], 544  }
 0x17a   :  { %11099 = vsyncadd [#allocation10], 4294966752 }
 0x17b   :  { %11100 = dma.done.wait [#allocation13], 64  }
 0x17c   :  { %11101 = vsyncadd [#allocation13], 4294967232 }
 0x17d   :  { %11102 = dma.done.wait [#allocation16], 544  }
 0x17e   :  { %11103 = vsyncadd [#allocation16], 4294966752 }
 0x17f   :  { %11104 = dma.done.wait [#allocation19], 1056  }
 0x180   :  { %11105 = vsyncadd [#allocation19], 4294966240 }
 0x181   :  { %11106 = dma.done.wait [#allocation22], 64  }
 0x182   :  { %11107 = vsyncadd [#allocation22], 4294967232 }
 0x183   :  { %11108 = dma.done.wait [#allocation25], 288  }
 0x184   :  { %11109 = vsyncadd [#allocation25], 4294967008 }
 0x185   :  { %11110 = dma.done.wait [#allocation28], 272  }
 0x186   :  { %11111 = vsyncadd [#allocation28], 4294967024 }
 0x187   :  { %11112 = dma.done.wait [#allocation31], 272  }
 0x188   :  { %11113 = vsyncadd [#allocation31], 4294967024  ;;  %v11143_v1 = vmov 1966171168   ;;  %v350_v3 = vlaneseq  ;;  %v10478_v6 = vld [vmem:[#allocation8] sm:$0xff]   ;;  %v10479_v7 = vld [vmem:[#allocation8 + $0x8] sm:$0xff]  }
 0x189   :  { %v348_v2 = vunpack.c.l.s4 %v11143_v1  ;;  %10242 = vmatprep.subr.bf16.mxu0 %v10478_v6  ;;  %v326_v8 = vld [vmem:[#allocation3] sm:$0xff]  ;;  %v327_v9 = vld [vmem:[#allocation3 + $0x8] sm:$0x7]  ;;  %v328_v10 = vld [vmem:[#allocation3 + $0x10] sm:$0xff]  ;;  %vm731_vm0 = vcmask 261120   ;;  %s11144_s19 = smov 112  }
 0x18a   :  { %v351_v5 = vshrl.u32 %v350_v3, 7  ;;  %10243 = vmatpush3.bf16.msra.mxu0 %v10478_v6  ;;  %v329_v12 = vld [vmem:[#allocation3 + $0x18] sm:$0x7]  ;;  %v332_v13 = vpack.c.bf16 %v327_v9, %v326_v8  ;;  %v9971_v14 = vpack.c.bf16 %v327_v9, %v327_v9  ;;  %v9970_v0 = vld [vmem:[#allocation9] ss:$0 sm:$0xff]  ;;  %vm11146_vm1 = vmmov 0  }
 0x18b   :  { %v349_v4 = vunpack.c.0.s8 %v348_v2  ;;  %10244 = vmatprep.subr.bf16.mxu0 %v10479_v7  ;;  %v333_v15 = vpack.c.bf16 %v329_v12, %v328_v10  ;;  %v9972_v16 = vpack.c.bf16 %v329_v12, %v329_v12  ;;  %v462_v1 = vcombine.high %v9970_v0, %v9970_v0  ;;  %s11147_s1 = smov 96  }
 0x18c   :  { %vm1713_vm2 = vcmask 130048   ;;  %vm1911_vm3 = vcmask 89088   ;;  %vm1915_vm4 = vcmask 83968   ;;  %vm2010_vm5 = vcmask 1044480  }
 0x18d   :  { %v11605_v11 = vsub.s32 %v349_v4, %v351_v5  ;;  %vm2011_vm6 = vcmask 1045504   ;;  %vm2983_vm7 = vcmask 256000   ;;  %vm4284_vm8 = vcmask 523264  }
 0x18e   :  { %10245 = vmatpush3.bf16.msra.mxu0 %v10479_v7  ;;  %vm9113_vm9 = vcmask 1041409  }
 0x18f   :  { %v353_v17 = vrot.slane %v332_v13, %v11605_v11  ;;  %v360_v18 = vrot.slane %v9971_v14, %v11605_v11  ;;  %v400_v19 = vrot.slane %v333_v15, %v11605_v11  ;;  %v407_v20 = vrot.slane %v9972_v16, %v11605_v11 }
 0x190   :  { %v476_v2 = vrot.slane %v462_v1, %v11605_v11  ;;  %v469_v3 = vrot.slane %v9970_v0, %v11605_v11 }
 0x191   :  { %v361_v21 = vcombine.high %v353_v17, %v353_v17  ;;  %v362_v22 = vcombine.high %v360_v18, %v360_v18  ;;  %v369_v23 = vrot.slane %v353_v17, %v11605_v11  ;;  %v408_v24 = vcombine.high %v400_v19, %v400_v19 }
 0x192   :  { %v416_v25 = vrot.slane %v400_v19, %v11605_v11  ;;  %v409_v26 = vcombine.high %v407_v20, %v407_v20  ;;  %v423_v27 = vrot.slane %v407_v20, %v11605_v11  ;;  %v376_v28 = vrot.slane %v360_v18, %v11605_v11 }
 0x193   :  { %v383_v29 = vrot.slane %v361_v21, %v11605_v11  ;;  %v390_v30 = vrot.slane %v362_v22, %v11605_v11  ;;  %v430_v31 = vrot.slane %v408_v24, %v11605_v11  ;;  %v478_v4 = vcombine.high %v476_v2, %v476_v2 }
 0x194   :  { %v438_v32 = vcombine.high %v416_v25, %v416_v25  ;;  %v452_v33 = vunpack.i.h.s16 %v416_v25  ;;  %v437_v34 = vrot.slane %v409_v26, %v11605_v11  ;;  %v460_v38 = vunpack.i.h.s16 %v423_v27 }
 0x195   :  { %v9973_v35 = vpack.i.b16 %v416_v25, %v390_v30  ;;  %v522_v36 = vcombine.low %v369_v23, %v383_v29  ;;  %v9979_v37 = vcombine.high %v369_v23, %v383_v29  ;;  %v454_v39 = vunpack.i.h.s16 %v430_v31 }
 0x196   :  { %v456_v40 = vunpack.i.h.s16 %v438_v32  ;;  %v9974_v41 = vpack.i.b16 %v430_v31, %v452_v33  ;;  %v439_v42 = vcombine.high %v430_v31, %v430_v31  ;;  %v9978_v49 = vpack.i.b16 %v437_v34, %v460_v38 }
 0x197   :  { %v524_v43 = vcombine.low %v376_v28, %v9973_v35  ;;  %v532_v44 = vrot.slane %v522_v36, %v11605_v11  ;;  %v539_v45 = vrot.slane %v9979_v37, %v11605_v11  ;;  %v9975_v46 = vpack.i.b16 %v438_v32, %v454_v39 }
 0x198   :  { %v458_v47 = vunpack.i.h.s16 %v439_v42  ;;  %v9976_v48 = vpack.i.b16 %v439_v42, %v456_v40  ;;  %v585_v56 = vrot.slane %v9978_v49, %v11605_v11  ;;  %v477_v5 = vcombine.high %v469_v3, %v469_v3 }
 0x199   :  { %v525_v50 = vcombine.low %v9974_v41, %v9975_v46  ;;  %v546_v51 = vrot.slane %v524_v43, %v11605_v11  ;;  %v554_v52 = vcombine.low %v532_v44, %v539_v45  ;;  %v492_v6 = vrot.slane %v476_v2, %v11605_v11 }
 0x19a   :  { %v9977_v53 = vpack.i.b16 %v423_v27, %v458_v47  ;;  %v506_v7 = vrot.slane %v478_v4, %v11605_v11  ;;  %v485_v8 = vrot.slane %v469_v3, %v11605_v11  ;;  %v499_v9 = vrot.slane %v477_v5, %v11605_v11 }
 0x19b   :  { %v553_v54 = vrot.slane %v525_v50, %v11605_v11  ;;  %v562_v58 = vrot.slane %v554_v52, %v11605_v11  ;;  %v508_v10 = vcombine.high %v492_v6, %v492_v6 }
 0x19c   :  { %v571_v55 = vcombine.low %v9976_v48, %v9977_v53  ;;  %v510_v12 = vcombine.high %v506_v7, %v506_v7  ;;  %v507_v13 = vcombine.high %v485_v8, %v485_v8  ;;  %v509_v14 = vcombine.high %v499_v9, %v499_v9 }
 0x19d   :  { %v555_v57 = vcombine.low %v546_v51, %v553_v54  ;;  %v696_v15 = vcombine.low %v506_v7, %v508_v10  ;;  %v606_v17 = vcombine.low %v485_v8, %v499_v9  ;;  %v9982_v18 = vcombine.high %v485_v8, %v499_v9 }
 0x19e   :  { %v578_v59 = vrot.slane %v571_v55, %v11605_v11  ;;  %v697_v16 = vcombine.low %v510_v12, %v485_v8  ;;  %v608_v19 = vcombine.low %v492_v6, %v506_v7  ;;  %v9983_v20 = vcombine.high %v492_v6, %v506_v7 }
 0x19f   :  { %v569_v60 = vrot.slane %v555_v57, %v11605_v11  ;;  %v656_v21 = vcombine.low %v499_v9, %v507_v13  ;;  %v655_v22 = vcombine.low %v507_v13, %v485_v8  ;;  %v657_v23 = vcombine.low %v509_v14, %v492_v6 }
 0x1a0   :  { %v586_v61 = vcombine.low %v578_v59, %v585_v56  ;;  %v704_v24 = vrot.slane %v696_v15, %v11605_v11  ;;  %v711_v25 = vrot.slane %v697_v16, %v11605_v11  ;;  %v616_v26 = vrot.slane %v606_v17, %v11605_v11 }
 0x1a1   :  { %v570_v62 = vcombine.low %v562_v58, %v569_v60  ;;  %v623_v27 = vrot.slane %v9982_v18, %v11605_v11  ;;  %v630_v28 = vrot.slane %v608_v19, %v11605_v11  ;;  %v637_v29 = vrot.slane %v9983_v20, %v11605_v11 }
 0x1a2   :  { %v593_v63 = vrot.slane %v586_v61, %v11605_v11  ;;  %v671_v30 = vrot.slane %v656_v21, %v11605_v11  ;;  %v664_v31 = vrot.slane %v655_v22, %v11605_v11  ;;  %v678_v32 = vrot.slane %v657_v23, %v11605_v11 }
 0x1a3   :  { %10246 = vmatprep.mubr.msk.bf16.mxu0 %vm731_vm0, %v570_v62  ;;  %v712_v33 = vcombine.low %v704_v24, %v711_v25  ;;  %v638_v34 = vcombine.low %v616_v26, %v623_v27  ;;  %v639_v35 = vcombine.low %v630_v28, %v637_v29 }
 0x1a4   :  { %10247 = vmatmul.mubr.msk.bf16.vlgmr.msra.gmra.mrb[0].mxu0 %vm731_vm0, %v593_v63  ;;  %v679_v36 = vcombine.low %v616_v26, %v664_v31  ;;  %v680_v37 = vcombine.low %v671_v30, %v678_v32  ;;  %v726_v39 = vrot.slane %v671_v30, %v11605_v11 }
 0x1a5   :  { %v719_v38 = vrot.slane %v712_v33, %v11605_v11  ;;  %v646_v40 = vrot.slane %v638_v34, %v11605_v11  ;;  %v653_v41 = vrot.slane %v639_v35, %v11605_v11 }
 0x1a6   :  { %v687_v42 = vrot.slane %v679_v36, %v11605_v11  ;;  %v694_v43 = vrot.slane %v680_v37, %v11605_v11 }
 0x1a7   :  { %v727_v44 = vcombine.low %v719_v38, %v726_v39  ;;  %v654_v45 = vcombine.low %v646_v40, %v653_v41 }
 0x1a8   :  { %v695_v47 = vcombine.low %v687_v42, %v694_v43 }
 0x277   :  { %v10248_v46 = vpop.f32.mrb[0].mxu0 }
 0x278   :  { %v781_v48 = vadd.f32 %v10248_v46, %v727_v44  ;;  %v772_v49 = vpop.f32.mrb[1].mxu0 }
 0x279   :  { %v773_v50 = vadd.f32 %v772_v49, %v654_v45  ;;  %v10249_v51 = vpop.f32.mrb[2].mxu0 }
 0x27a   :  { %v887_v52 = vcombine.high %v781_v48, %v781_v48  ;;  %v894_v53 = vrot.slane %v781_v48, %v11605_v11  ;;  %v775_v54 = vpop.f32.mrb[3].mxu0 }
 0x27b   :  { %v789_v55 = vcombine.high %v773_v50, %v773_v50  ;;  %v796_v56 = vrot.slane %v773_v50, %v11605_v11  ;;  %v776_v57 = vadd.f32 %v775_v54, %v695_v47 }
 0x27c   :  { %v11654_v58 = vrot.slane %v887_v52, %v11605_v11  ;;  %v902_v59 = vcombine.high %v894_v53, %v894_v53  ;;  %v11657_v60 = vrot.slane %v894_v53, %v11605_v11 }
 0x27d   :  { %v803_v61 = vrot.slane %v789_v55, %v11605_v11  ;;  %v804_v62 = vcombine.high %v796_v56, %v796_v56  ;;  %v11661_v63 = vrot.slane %v796_v56, %v11605_v11  ;;  %v838_v0 = vcombine.high %v776_v57, %v776_v57 }
 0x27e   :  { %v924_v1 = vrot.slane %v902_v59, %v11605_v11  ;;  %v845_v2 = vrot.slane %v776_v57, %v11605_v11  ;;  %988 = vrot.lane.b32.xlu1 %v11657_v60, %s11144_s19  ;;  %v932_v3 = vcombine.high %v11657_v60, %v11657_v60  ;;  %v11671_v4 = vrot.slane %v11654_v58, %v11605_v11 }
 0x27f   :  { %v805_v5 = vcombine.high %v803_v61, %v803_v61  ;;  %v11674_v6 = vrot.slane %v803_v61, %v11605_v11  ;;  %v11677_v7 = vrot.slane %v804_v62, %v11605_v11  ;;  %v1022_v8 = vmul.f32 0.25, %v11661_v63  ;;  %956 = vrot.lane.b32.xlu0 %v11661_v63, %s11144_s19 }
 0x280   :  { %v852_v9 = vrot.slane %v838_v0, %v11605_v11  ;;  %v853_v10 = vcombine.high %v845_v2, %v845_v2  ;;  %v11684_v12 = vrot.slane %v845_v2, %v11605_v11  ;;  %v1039_v13 = vmul.f32 0.25, %v924_v1 }
 0x281   :  { %v11687_v14 = vrot.slane %v805_v5, %v11605_v11  ;;  %v1040_v15 = vmul.f32 0.25, %v932_v3  ;;  %v1485_v16 = vcombine.low %v924_v1, %v932_v3  ;;  %v1042_v17 = vmul.f32 0.25, %v11671_v4 }
 0x282   :  { %v854_v18 = vcombine.high %v852_v9, %v852_v9  ;;  %v11691_v19 = vrot.slane %v852_v9, %v11605_v11  ;;  %v11694_v20 = vrot.slane %v853_v10, %v11605_v11  ;;  %v11697_v21 = vmul.f32 0.25, %v11684_v12  ;;  %992 = vrot.lane.b32.xlu1 %v932_v3, %s11144_s19 }
 0x283   :  { %v1185_v22 = vcombine.low %v1039_v13, %v1040_v15  ;;  %v11701_v23 = vrot.slane %v1485_v16, %v11605_v11  ;;  %990 = vrot.lane.b32.xlu0 %v924_v1, %s11144_s19  ;;  %v834_v24 = vcombine.high %v11661_v63, %v11661_v63  ;;  %v836_v25 = vcombine.high %v11677_v7, %v11677_v7 }
 0x284   :  { %v11709_v26 = vmul.f32 0.25, %v11694_v20  ;;  %v1023_v27 = vmul.f32 0.25, %v11677_v7  ;;  %v11712_v28 = vcombine.high %v924_v1, %v924_v1  ;;  %v11715_v29 = vrot.slane %v854_v18, %v11605_v11 }
 0x285   :  { %v11718_v30 = vrot.slane %v1185_v22, %v11605_v11  ;;  %v1024_v31 = vmul.f32 0.25, %v834_v24  ;;  %v1025_v32 = vmul.f32 0.25, %v836_v25  ;;  %v11722_v33 = vcombine.high %v11674_v6, %v11674_v6 }
 0x286   :  { %v1159_v34 = vcombine.low %v11697_v21, %v11709_v26  ;;  %996 = vrot.lane.b32.xlu1 %v11671_v4, %s11144_s19  ;;  %v1110_v35 = vcombine.low %v1022_v8, %v1023_v27  ;;  %v1041_v36 = vmul.f32 0.25, %v11712_v28  ;;  %v1531_v37 = vcombine.low %v11712_v28, %v11671_v4 }
 0x287   :  { %960 = vrot.lane.b32.xlu0 %v834_v24, %s11144_s19  ;;  %v1111_v38 = vcombine.low %v1024_v31, %v1025_v32  ;;  %v1028_v39 = vmul.f32 0.25, %v11722_v33  ;;  %v11735_v40 = vcombine.high %v11691_v19, %v11691_v19  ;;  %v1035_v41 = vmul.f32 0.25, %v11715_v29 }
 0x288   :  { %v11739_v42 = vrot.slane %v1110_v35, %v11605_v11  ;;  %v1231_v43 = vcombine.low %v1041_v36, %v1042_v17  ;;  %v11743_v44 = vcombine.high %v11694_v20, %v11694_v20  ;;  %v1034_v45 = vmul.f32 0.25, %v11691_v19 }
 0x289   :  { %v11747_v46 = vrot.slane %v1111_v38, %v11605_v11  ;;  %v1036_v47 = vmul.f32 0.25, %v11735_v40  ;;  %v1483_v48 = vcombine.low %v11715_v29, %v11735_v40  ;;  %v11754_v49 = vcombine.high %v11687_v14, %v11687_v14 }
 0x28a   :  { %958 = vrot.lane.b32.xlu1 %v11677_v7, %s11144_s19  ;;  %v1238_v50 = vrot.slane %v1231_v43, %v11605_v11  ;;  %v1033_v51 = vmul.f32 0.25, %v11743_v44  ;;  %v1482_v52 = vcombine.low %v11743_v44, %v11691_v19  ;;  %v1026_v53 = vmul.f32 0.25, %v11674_v6 }
 0x28b   :  { %964 = vrot.lane.b32.xlu0 %v11674_v6, %s11144_s19  ;;  %v1142_v54 = vcombine.low %v11739_v42, %v11747_v46  ;;  %v1183_v55 = vcombine.low %v1035_v41, %v1036_v47  ;;  %v1499_v56 = vrot.slane %v1483_v48, %v11605_v11  ;;  %v1027_v57 = vmul.f32 0.25, %v11687_v14 }
 0x28c   :  { %v1182_v59 = vcombine.low %v1033_v51, %v1034_v45  ;;  %v1492_v61 = vrot.slane %v1482_v52, %v11605_v11  ;;  %v1029_v62 = vmul.f32 0.25, %v11754_v49  ;;  %v11773_v0 = vcombine.high %v11715_v29, %v11715_v29 }
 0x28d   :  { %v1199_v1 = vrot.slane %v1183_v55, %v11605_v11  ;;  %v1112_v2 = vcombine.low %v1026_v53, %v1027_v57  ;;  %v1038_v3 = vmul.f32 0.25, %v11657_v60  ;;  %v11779_v5 = vcombine.high %v11684_v12, %v11684_v12 }
 0x28e   :  { %962 = vrot.lane.b32.xlu1 %v836_v25, %s11144_s19  ;;  %v1192_v8 = vrot.slane %v1182_v59, %v11605_v11  ;;  %v1113_v9 = vcombine.low %v1028_v39, %v1029_v62  ;;  %v1037_v10 = vmul.f32 0.25, %v11773_v0  ;;  %v1484_v13 = vcombine.low %v11773_v0, %v11657_v60 }
 0x28f   :  { %972 = vrot.lane.b32.xlu0 %v11684_v12, %s11144_s19  ;;  %v1134_v15 = vrot.slane %v1112_v2, %v11605_v11  ;;  %v1032_v16 = vmul.f32 0.25, %v11779_v5  ;;  %v1473_v17 = vrot.slane %v11779_v5, %v11605_v11  ;;  %v903_v18 = vcombine.high %v11654_v58, %v11654_v58 }
 0x290   :  { %v1214_v22 = vcombine.low %v1192_v8, %v1199_v1  ;;  %v1141_v24 = vrot.slane %v1113_v9, %v11605_v11  ;;  %v1184_v25 = vcombine.low %v1037_v10, %v1038_v3  ;;  %v1506_v27 = vrot.slane %v1484_v13, %v11605_v11 }
 0x291   :  { %v1173_v60 = vrot.slane %v1032_v16, %v11605_v11  ;;  %v11798_v31 = vrot.slane %v903_v18, %v11605_v11  ;;  %v1410_v32 = vcombine.low %v11661_v63, %v11677_v7  ;;  %v9986_v35 = vcombine.high %v11661_v63, %v11677_v7 }
 0x292   :  { %966 = vrot.lane.b32.xlu1 %v11687_v14, %s11144_s19  ;;  %v1143_v58 = vcombine.low %v1134_v15, %v1141_v24  ;;  %v1206_v36 = vrot.slane %v1184_v25, %v11605_v11  ;;  %v1412_v38 = vcombine.low %v11674_v6, %v11687_v14  ;;  %v9987_v39 = vcombine.high %v11674_v6, %v11687_v14 }
 0x293   :  { %994 = vrot.lane.b32.xlu0 %v11712_v28, %s11144_s19  ;;  %v1043_v41 = vmul.f32 0.25, %v11798_v31  ;;  %v1545_v63 = vrot.slane %v11798_v31, %v11605_v11  ;;  %v1420_v7 = vrot.slane %v1410_v32, %v11605_v11  ;;  %v1427_v42 = vrot.slane %v9986_v35, %v11605_v11 }
 0x294   :  { %v1215_v43 = vcombine.low %v1206_v36, %v11718_v30  ;;  %v1434_v45 = vrot.slane %v1412_v38, %v11605_v11  ;;  %v1441_v46 = vrot.slane %v9987_v39, %v11605_v11  ;;  %v1459_v6 = vcombine.low %v11684_v12, %v11694_v20 }
 0x295   :  { %v1245_v14 = vrot.slane %v1043_v41, %v11605_v11  ;;  %v1442_v47 = vcombine.low %v1420_v7, %v1427_v42  ;;  %v1514_v48 = vcombine.low %v1492_v61, %v1499_v56  ;;  %v1515_v51 = vcombine.low %v1506_v27, %v11701_v23 }
 0x296   :  { %974 = vrot.lane.b32.xlu1 %v11694_v20, %s11144_s19  ;;  %v1443_v52 = vcombine.low %v1434_v45, %v1441_v46  ;;  %v1466_v53 = vrot.slane %v1459_v6, %v11605_v11  ;;  %v1538_v30 = vrot.slane %v1531_v37, %v11605_v11  ;;  %v1150_v55 = vrot.slane %v1142_v54, %v11605_v11 }
 0x297   :  { %980 = vrot.lane.b32.xlu0 %v11691_v19, %s11144_s19  ;;  %v1246_v12 = vcombine.low %v1238_v50, %v1245_v14  ;;  %v1450_v56 = vrot.slane %v1442_v47, %v11605_v11  ;;  %v1522_v23 = vrot.slane %v1514_v48, %v11605_v11  ;;  %v1529_v20 = vrot.slane %v1515_v51, %v11605_v11 }
 0x298   :  { %v1457_v57 = vrot.slane %v1443_v52, %v11605_v11  ;;  %v1474_v59 = vcombine.low %v1466_v53, %v1473_v17  ;;  %v1546_v61 = vcombine.low %v1538_v30, %v1545_v63  ;;  %v1157_v62 = vrot.slane %v1143_v58, %v11605_v11 }
 0x299   :  { %v1530_v4 = vcombine.low %v1522_v23, %v1529_v20  ;;  %v1166_v28 = vrot.slane %v1159_v34, %v11605_v11  ;;  %v1222_v19 = vrot.slane %v1214_v22, %v11605_v11  ;;  %v1229_v37 = vrot.slane %v1215_v43, %v11605_v11 }
 0x29a   :  { %982 = vrot.lane.b32.xlu1 %v11715_v29, %s11144_s19  ;;  %v1458_v50 = vcombine.low %v1450_v56, %v1457_v57  ;;  %v1481_v54 = vrot.slane %v1474_v59, %v11605_v11  ;;  %v1553_v1 = vrot.slane %v1546_v61, %v11605_v11  ;;  %v1158_v2 = vcombine.low %v1150_v55, %v1157_v62 }
 0x29b   :  { %968 = vrot.lane.b32.xlu0 %v11722_v33, %s11144_s19  ;;  %v1174_v3 = vcombine.low %v1166_v28, %v1173_v60  ;;  %v1230_v8 = vcombine.low %v1222_v19, %v1229_v37  ;;  %v1253_v21 = vrot.slane %v1246_v12, %v11605_v11  ;;  %v11145_v33 = vmov 0.0  }
 0x29c   :  { %v11853_v26 = vpack.c.bf16 %v1481_v54, %v1458_v50  ;;  %v11855_v34 = vpack.c.bf16 %v1553_v1, %v1530_v4  ;;  %10250 = vmatprep.subr.bf16.mxu1 %v11145_v33  ;;  %10256 = vmatprep.subr.bf16.mxu0 %v11145_v33 }
 0x29d   :  { %v1181_v9 = vrot.slane %v1174_v3, %v11605_v11  ;;  %v11858_v29 = vpack.c.bf16 %v1253_v21, %v1230_v8  ;;  %10252 = vmatprep.mubr.msk.bf16.mxu1 %vm11146_vm1, %v11145_v33  ;;  %10258 = vmatprep.mubr.msk.bf16.mxu0 %vm11146_vm1, %v11145_v33 }
 0x29e   :  { %984 = vrot.lane.b32.xlu1 %v11735_v40, %s11144_s19 }
 0x29f   :  { %978 = vrot.lane.b32.xlu0 %v11743_v44, %s11144_s19  ;;  %v11864_v10 = vpack.c.bf16 %v1181_v9, %v1158_v2 }
 0x2a2   :  { %970 = vrot.lane.b32.xlu1 %v11754_v49, %s11144_s19 }
 0x2a3   :  { %986 = vrot.lane.b32.xlu0 %v11773_v0, %s11144_s19 }
 0x2a6   :  { %976 = vrot.lane.b32.xlu1 %v11779_v5, %s11144_s19 }
 0x2a7   :  { %998 = vrot.lane.b32.xlu0 %v11798_v31, %s11144_s19 }
 0x2aa   :  { %1711 = vrot.lane.b32.xlu1 %v11853_v26, %s11147_s1 }
 0x2ab   :  { %1762 = vrot.lane.b32.xlu0 %v11855_v34, %s11147_s1 }
 0x2f0   :  { %v11884_v40 = vpop.permute.xlu1 %988 }
 0x2f1   :  { %v11886_v44 = vpop.permute.xlu0 %956 }
 0x2f4   :  { %v11888_v49 = vpop.permute.xlu1 %992 }
 0x2f5   :  { %v11890_v0 = vpop.permute.xlu0 %990 }
 0x2f6   :  { %v1629_v63 = vcombine.low %v11890_v0, %v11888_v49 }
 0x2f8   :  { %v11892_v13 = vpop.permute.xlu1 %996  ;;  %v1657_v30 = vrot.slane %v1629_v63, %v11605_v11 }
 0x2f9   :  { %v11894_v5 = vpop.permute.xlu0 %960 }
 0x2fc   :  { %v11896_v15 = vpop.permute.xlu1 %958 }
 0x2fd   :  { %v11898_v16 = vpop.permute.xlu0 %964  ;;  %v1554_v38 = vcombine.low %v11886_v44, %v11896_v15 }
 0x2ff   :  { %v1564_v47 = vrot.slane %v1554_v38, %v11605_v11 }
 0x300   :  { %v11900_v17 = vpop.permute.xlu1 %962 }
 0x301   :  { %v11902_v18 = vpop.permute.xlu0 %972  ;;  %v1555_v32 = vcombine.low %v11894_v5, %v11900_v17 }
 0x303   :  { %v1571_v7 = vrot.slane %v1555_v32, %v11605_v11 }
 0x304   :  { %v11904_v22 = vpop.permute.xlu1 %966 }
 0x305   :  { %v11906_v24 = vpop.permute.xlu0 %994  ;;  %v1556_v41 = vcombine.low %v11898_v16, %v11904_v22  ;;  %v1586_v55 = vcombine.low %v1564_v47, %v1571_v7 }
 0x306   :  { %v1675_v52 = vcombine.low %v11906_v24, %v11892_v13 }
 0x307   :  { %v1578_v51 = vrot.slane %v1556_v41, %v11605_v11  ;;  %v1594_v50 = vrot.slane %v1586_v55, %v11605_v11 }
 0x308   :  { %v11908_v25 = vpop.permute.xlu1 %974  ;;  %v1682_v4 = vrot.slane %v1675_v52, %v11605_v11  ;;  %v1046_v52 = vmul.f32 0.25, %v11894_v5 }
 0x309   :  { %v11910_v27 = vpop.permute.xlu0 %980  ;;  %v1603_v43 = vcombine.low %v11902_v18, %v11908_v25 }
 0x30b   :  { %v1610_v23 = vrot.slane %v1603_v43, %v11605_v11 }
 0x30c   :  { %v11912_v60 = vpop.permute.xlu1 %982 }
 0x30d   :  { %v11914_v31 = vpop.permute.xlu0 %968 }
 0x30e   :  { %v1050_v47 = vmul.f32 0.25, %v11914_v31 }
 0x310   :  { %v11918_v35 = vpop.permute.xlu1 %984 }
 0x311   :  { %v1627_v58 = vcombine.low %v11912_v60, %v11918_v35  ;;  %v11922_v36 = vpop.permute.xlu0 %978 }
 0x312   :  { %v1626_v39 = vcombine.low %v11922_v36, %v11910_v27 }
 0x313   :  { %v1643_v45 = vrot.slane %v1627_v58, %v11605_v11 }
 0x314   :  { %v971_v42 = vpop.permute.xlu1 %970  ;;  %v1636_v46 = vrot.slane %v1626_v39, %v11605_v11 }
 0x315   :  { %v1557_v6 = vcombine.low %v11914_v31, %v971_v42  ;;  %v987_v14 = vpop.permute.xlu0 %986  ;;  %v1051_v7 = vmul.f32 0.25, %v971_v42  ;;  %v1045_v42 = vmul.f32 0.25, %v11896_v15 }
 0x316   :  { %v1628_v48 = vcombine.low %v987_v14, %v11884_v40  ;;  %v1658_v20 = vcombine.low %v1636_v46, %v1643_v45  ;;  %v1059_v43 = vmul.f32 0.25, %v987_v14  ;;  %v1060_v45 = vmul.f32 0.25, %v11884_v40 }
 0x317   :  { %v1585_v53 = vrot.slane %v1557_v6, %v11605_v11  ;;  %v1047_v46 = vmul.f32 0.25, %v11900_v17  ;;  %v1049_v6 = vmul.f32 0.25, %v11904_v22  ;;  %v1048_v40 = vmul.f32 0.25, %v11898_v16 }
 0x318   :  { %v1650_v12 = vrot.slane %v1628_v48, %v11605_v11  ;;  %v11946_v56 = vpop.permute.xlu1 %976  ;;  %v1666_v21 = vrot.slane %v1658_v20, %v11605_v11  ;;  %v1058_v48 = vmul.f32 0.25, %v11918_v35  ;;  %v1257_v14 = vcombine.low %v1050_v47, %v1051_v7 }
 0x319   :  { %v1587_v57 = vcombine.low %v1578_v51, %v1585_v53  ;;  %v1617_v59 = vrot.slane %v11946_v56, %v11605_v11  ;;  %v999_v61 = vpop.permute.xlu0 %998  ;;  %v1055_v51 = vmul.f32 0.25, %v11922_v36  ;;  %v1056_v17 = vmul.f32 0.25, %v11910_v27 }
 0x31a   :  { %v1659_v62 = vcombine.low %v1650_v12, %v1657_v30  ;;  %v1689_v19 = vrot.slane %v999_v61, %v11605_v11  ;;  %v1057_v22 = vmul.f32 0.25, %v11912_v60  ;;  %v1328_v31 = vcombine.low %v1059_v43, %v1060_v45 }
 0x31b   :  { %v1618_v28 = vcombine.low %v1610_v23, %v1617_v59  ;;  %v1601_v54 = vrot.slane %v1587_v57, %v11605_v11  ;;  %v1255_v53 = vcombine.low %v1046_v52, %v1047_v46  ;;  %v1053_v35 = vmul.f32 0.25, %v11908_v25  ;;  %v331_v52 = vld [vmem:[#allocation6 + $0x8] sm:$0x7] }
 0x31c   :  { %v1712_v37 = vpop.permute.xlu1 %1711  ;;  %v1673_v1 = vrot.slane %v1659_v62, %v11605_v11  ;;  %v1690_v2 = vcombine.low %v1682_v4, %v1689_v19  ;;  %v1063_v36 = vmul.f32 0.25, %v11906_v24  ;;  %v1327_v5 = vcombine.low %v1057_v22, %v1058_v48 }
 0x31d   :  { %v1763_v3 = vpop.permute.xlu0 %1762  ;;  %v1718_v8 = vsel %vm1713_vm2, %v1712_v37, 0  ;;  %v1602_v32 = vcombine.low %v1594_v50, %v1601_v54  ;;  %v1625_v58 = vrot.slane %v1618_v28, %v11605_v11  ;;  %v1326_v55 = vcombine.low %v1055_v51, %v1056_v17 }
 0x31e   :  { %v1768_v9 = vsel %vm1713_vm2, %v1763_v3, 0  ;;  %10251 = vmatpush3.bf16.xpose.msra.mxu1 %v1718_v8  ;;  %v1674_v38 = vcombine.low %v1666_v21, %v1673_v1  ;;  %v1697_v39 = vrot.slane %v1690_v2, %v11605_v11  ;;  %v1052_v16 = vmul.f32 0.25, %v11902_v18 }
 0x31f   :  { %10257 = vmatpush3.bf16.xpose.msra.mxu0 %v1768_v9  ;;  %10262 = vmatprep.subr.bf16.mxu1 %v11145_v33  ;;  %v11963_v41 = vpack.c.bf16 %v1625_v58, %v1602_v32  ;;  %v1285_v12 = vrot.slane %v1257_v14, %v11605_v11  ;;  %v1054_v27 = vmul.f32 0.25, %v11946_v56  ;;  %v1064_v60 = vmul.f32 0.25, %v11892_v13 }
 0x320   :  { %10268 = vmatprep.subr.bf16.mxu0 %v11145_v33  ;;  %v11965_v63 = vpack.c.bf16 %v1697_v39, %v1674_v38  ;;  %v1065_v23 = vmul.f32 0.25, %v999_v61  ;;  %v1271_v20 = vrot.slane %v1255_v53, %v11605_v11  ;;  %v1303_v57 = vcombine.low %v1052_v16, %v1053_v35 }
 0x321   :  { %1812 = vrot.lane.b32.xlu1 %v11963_v41, %s11147_s1  ;;  %v1375_v59 = vcombine.low %v1063_v36, %v1064_v60  ;;  %v1343_v62 = vrot.slane %v1327_v5, %v11605_v11  ;;  %v1336_v18 = vrot.slane %v1326_v55, %v11605_v11  ;;  %v1317_v13 = vrot.slane %v1054_v27, %v11605_v11 }
 0x322   :  { %1862 = vrot.lane.b32.xlu0 %v11965_v63, %s11147_s1  ;;  %v1389_v61 = vrot.slane %v1065_v23, %v11605_v11  ;;  %v1310_v37 = vrot.slane %v1303_v57, %v11605_v11 }
 0x323   :  { %v1382_v50 = vrot.slane %v1375_v59, %v11605_v11  ;;  %v1358_v54 = vcombine.low %v1336_v18, %v1343_v62 }
 0x324   :  { %v1318_v2 = vcombine.low %v1310_v37, %v1317_v13 }
 0x325   :  { %10253 = vmatmul.mubr.msk.bf16.vlgmr.msra.gmra.mrb[0].mxu1 %vm1713_vm2, %v11864_v10  ;;  %v1062_v10 = vmul.f32 0.25, %v11888_v49  ;;  %v1044_v49 = vmul.f32 0.25, %v11886_v44  ;;  %v1350_v44 = vrot.slane %v1328_v31, %v11605_v11  ;;  %v1390_v8 = vcombine.low %v1382_v50, %v1389_v61 }
 0x326   :  { %10259 = vmatmul.mubr.msk.bf16.vlgmr.msra.gmra.mrb[4].mxu0 %vm1713_vm2, %v11858_v29  ;;  %10264 = vmatprep.mubr.msk.bf16.mxu1 %vm11146_vm1, %v11145_v33  ;;  %v1061_v29 = vmul.f32 0.25, %v11890_v0  ;;  %v1256_v0 = vcombine.low %v1048_v40, %v1049_v6  ;;  %v1366_v38 = vrot.slane %v1358_v54, %v11605_v11  ;;  %v1325_v43 = vrot.slane %v1318_v2, %v11605_v11 }
 0x327   :  { %10270 = vmatprep.mubr.msk.bf16.mxu0 %vm11146_vm1, %v11145_v33  ;;  %v1254_v15 = vcombine.low %v1044_v49, %v1045_v42  ;;  %v1397_v46 = vrot.slane %v1390_v8, %v11605_v11 }
 0x328   :  { %v1329_v30 = vcombine.low %v1061_v29, %v1062_v10  ;;  %v1278_v25 = vrot.slane %v1256_v0, %v11605_v11  ;;  %v330_v10 = vld [vmem:[#allocation6] sm:$0xff] }
 0x329   :  { %v1264_v4 = vrot.slane %v1254_v15, %v11605_v11 }
 0x32a   :  { %v1357_v24 = vrot.slane %v1329_v30, %v11605_v11  ;;  %v1287_v56 = vcombine.low %v1278_v25, %v1285_v12 }
 0x32b   :  { %v1286_v19 = vcombine.low %v1264_v4, %v1271_v20 }
 0x32c   :  { %v1359_v28 = vcombine.low %v1350_v44, %v1357_v24  ;;  %v1301_v1 = vrot.slane %v1287_v56, %v11605_v11 }
 0x32d   :  { %v1294_v9 = vrot.slane %v1286_v19, %v11605_v11 }
 0x32e   :  { %v1373_v3 = vrot.slane %v1359_v28, %v11605_v11 }
 0x32f   :  { %v1302_v7 = vcombine.low %v1294_v9, %v1301_v1 }
 0x330   :  { %v1374_v45 = vcombine.low %v1366_v38, %v1373_v3 }
 0x331   :  { %v1408_v6 = vpack.c.bf16 %v1325_v43, %v1302_v7 }
 0x332   :  { %v1409_v47 = vpack.c.bf16 %v1397_v46, %v1374_v45 }
 0x393   :  { %v1813_v21 = vpop.permute.xlu1 %1812 }
 0x394   :  { %v1818_v32 = vsel %vm1713_vm2, %v1813_v21, 0  ;;  %v1863_v58 = vpop.permute.xlu0 %1862 }
 0x395   :  { %v1868_v39 = vsel %vm1713_vm2, %v1863_v58, 0  ;;  %10263 = vmatpush3.bf16.xpose.msra.mxu1 %v1818_v32 }
 0x396   :  { %10269 = vmatpush3.bf16.xpose.msra.mxu0 %v1868_v39  ;;  %10274 = vmatprep.subr.bf16.mxu1 %v11145_v33 }
 0x397   :  { %10280 = vmatprep.subr.bf16.mxu0 %v11145_v33 }
 0x39c   :  { %10265 = vmatmul.mubr.msk.bf16.vlgmr.msra.gmra.mrb[4].mxu1 %vm1713_vm2, %v1408_v6  ;;  %v11148_v6 = vmov 65535  }
 0x39d   :  { %10271 = vmatmul.mubr.msk.bf16.vlgmr.msra.gmra.mrb[8].mxu0 %vm1713_vm2, %v1409_v47  ;;  %10276 = vmatprep.mubr.msk.bf16.mxu1 %vm11146_vm1, %v11145_v33  ;;  %v2012_v47 = vsel %vm2010_vm5, 4294967295, %v11148_v6 }
 0x39e   :  { %10282 = vmatprep.mubr.msk.bf16.mxu0 %vm11146_vm1, %v11145_v33 }
 0x3f8   :  { %v1754_v29 = vpop.f32.mrb[0].mxu1 }
 0x3f9   :  { %v10254_v48 = vpop.f32.mrb[1].mxu1  ;;  %v1804_v51 = vpop.f32.mrb[4].mxu0  ;;  %v1755_v31 = vadd.f32 %v1754_v29, %v330_v10 }
 0x3fa   :  { %v1805_v42 = vadd.f32 %v1804_v51, %v330_v10  ;;  %v1757_v40 = vpop.f32.mrb[2].mxu1  ;;  %v10260_v14 = vpop.f32.mrb[5].mxu0 }
 0x3fb   :  { %v10255_v17 = vpop.f32.mrb[3].mxu1  ;;  %v1807_v22 = vpop.f32.mrb[6].mxu0  ;;  %v1758_v30 = vadd.f32 %v1757_v40, %v331_v52  ;;  %v1912_v36 = vsel %vm1911_vm3, %v1755_v31, -inf }
 0x3fc   :  { %v1808_v49 = vadd.f32 %v1807_v22, %v331_v52  ;;  %v10261_v53 = vpop.f32.mrb[7].mxu0  ;;  %v1919_v0 = vsel %vm1911_vm3, %v1805_v42, -inf }
 0x3fd   :  { %1920 = vmax.xlane.f32.xlu0 %v1919_v0  ;;  %v1916_v5 = vsel %vm1915_vm4, %v1758_v30, -inf }
 0x3fe   :  { %v1922_v35 = vsel %vm1915_vm4, %v1808_v49, -inf }
 0x3ff   :  { %1923 = vmax.xlane.f32.xlu1 %v1922_v35 }
 0x401   :  { %1913 = vmax.xlane.f32.xlu0 %v1912_v36 }
 0x405   :  { %1917 = vmax.xlane.f32.xlu0 %v1916_v5 }
 0x46f   :  { %v1854_v55 = vpop.f32.mrb[4].mxu1 }
 0x470   :  { %v10266_v15 = vpop.f32.mrb[5].mxu1  ;;  %v1904_v16 = vpop.f32.mrb[8].mxu0  ;;  %v1855_v20 = vadd.f32 %v1854_v55, %v330_v10 }
 0x471   :  { %v1905_v12 = vadd.f32 %v1904_v16, %v330_v10  ;;  %v1857_v27 = vpop.f32.mrb[6].mxu1  ;;  %v10272_v60 = vpop.f32.mrb[9].mxu0 }
 0x472   :  { %v10267_v44 = vpop.f32.mrb[7].mxu1  ;;  %v1907_v23 = vpop.f32.mrb[10].mxu0  ;;  %v1858_v59 = vadd.f32 %v1857_v27, %v331_v52  ;;  %v1925_v18 = vsel %vm1911_vm3, %v1855_v20, -inf }
 0x473   :  { %v1908_v25 = vadd.f32 %v1907_v23, %v331_v52  ;;  %v10273_v57 = vpop.f32.mrb[11].mxu0  ;;  %v1931_v24 = vsel %vm1911_vm3, %v1905_v12, -inf }
 0x474   :  { %1932 = vmax.xlane.f32.xlu1 %v1931_v24  ;;  %v1928_v4 = vsel %vm1915_vm4, %v1858_v59, -inf }
 0x475   :  { %v1934_v62 = vsel %vm1915_vm4, %v1908_v25, -inf }
 0x476   :  { %1935 = vmax.xlane.f32.xlu0 %v1934_v62 }
 0x478   :  { %1926 = vmax.xlane.f32.xlu1 %v1925_v18 }
 0x47a   :  { %1929 = vmax.xlane.f32.xlu0 %v1928_v4 }
 0x489   :  { %2058 = vrot.lane.b32.xlu1 %v11855_v34, %s11132_s4 }
 0x48a   :  { %v1921_v56 = vpop.xlane.xlu0 %1920 }
 0x48b   :  { %v1939_v2 = vsub.f32 %v1805_v42, %v1921_v56  ;;  %v12046_v42 = vsel %vm2011_vm6, %v2012_v47, 0 }
 0x48c   :  { %v1924_v13 = vpop.xlane.xlu1 %1923 }
 0x48d   :  { %v1940_v61 = vsub.f32 %v1808_v49, %v1924_v13  ;;  %v1949_v21 = vmul.f32 1.442695, %v1939_v2 }
 0x48e   :  { %v1914_v28 = vpop.xlane.xlu0 %1913 }
 0x48f   :  { %v1951_v50 = vmul.f32 1.442695, %v1940_v61  ;;  %v1937_v1 = vsub.f32 %v1755_v31, %v1914_v28 }
 0x491   :  { %v1945_v3 = vmul.f32 1.442695, %v1937_v1 }
 0x492   :  { %v1918_v19 = vpop.xlane.xlu0 %1917 }
 0x493   :  { %v1938_v37 = vsub.f32 %v1758_v30, %v1918_v19 }
 0x495   :  { %v1947_v54 = vmul.f32 1.442695, %v1938_v37 }
 0x497   :  { %10504 = vpow2.f32 %v1947_v54 }
 0x498   :  { %10506 = vpow2.f32 %v1951_v50 }
 0x499   :  { %10508 = vpow2.f32 %v1945_v3 }
 0x49a   :  { %10510 = vpow2.f32 %v1949_v21 }
 0x4a1   :  { %v12036_v8 = vpop.eup %10504 }
 0x4a2   :  { %v1964_v9 = vsel %vm1915_vm4, %v12036_v8, 0.0  ;;  %v12040_v34 = vpop.eup %10506 }
 0x4a3   :  { %1965 = vadd.xlane.f32.xlu0 %v1964_v9  ;;  %v1970_v32 = vsel %vm1915_vm4, %v12040_v34, 0.0  ;;  %v10509_v58 = vpop.eup %10508 }
 0x4a4   :  { %v1961_v38 = vsel %vm1911_vm3, %v10509_v58, 0.0  ;;  %v10511_v39 = vpop.eup %10510 }
 0x4a5   :  { %v1967_v7 = vsel %vm1911_vm3, %v10511_v39, 0.0 }
 0x4a7   :  { %1971 = vadd.xlane.f32.xlu0 %v1970_v32 }
 0x4ad   :  { %1962 = vadd.xlane.f32.xlu1 %v1961_v38 }
 0x4b1   :  { %1968 = vadd.xlane.f32.xlu1 %v1967_v7 }
 0x501   :  { %v1933_v43 = vpop.xlane.xlu1 %1932 }
 0x502   :  { %v1943_v45 = vsub.f32 %v1905_v12, %v1933_v43 }
 0x503   :  { %v1936_v46 = vpop.xlane.xlu0 %1935 }
 0x504   :  { %v1944_v29 = vsub.f32 %v1908_v25, %v1936_v46  ;;  %v1957_v51 = vmul.f32 1.442695, %v1943_v45 }
 0x505   :  { %v1927_v10 = vpop.xlane.xlu1 %1926 }
 0x506   :  { %v1941_v48 = vsub.f32 %v1855_v20, %v1927_v10  ;;  %v1959_v22 = vmul.f32 1.442695, %v1944_v29 }
 0x507   :  { %v1930_v52 = vpop.xlane.xlu0 %1929 }
 0x508   :  { %v1953_v40 = vmul.f32 1.442695, %v1941_v48  ;;  %v1942_v14 = vsub.f32 %v1858_v59, %v1930_v52 }
 0x509   :  { %v2059_v17 = vpop.permute.xlu1 %2058 }
 0x50a   :  { %10512 = vpow2.f32 %v1953_v40  ;;  %v1955_v31 = vmul.f32 1.442695, %v1942_v14  ;;  %v2064_v49 = vand.u32 %v2059_v17, %v12046_v42 }
 0x50b   :  { %10514 = vpow2.f32 %v1957_v51 }
 0x50c   :  { %10516 = vpow2.f32 %v1955_v31  ;;  %10281 = vmatpush3.bf16.msra.mxu0 %v2064_v49  ;;  %v10480_v31 = vld [vmem:[#allocation11] sm:$0xff]   ;;  %v10481_v49 = vld [vmem:[#allocation11 + $0x8] sm:$0xff]  }
 0x50d   :  { %10292 = vmatprep.subr.bf16.mxu0 %v11145_v33  ;;  %10518 = vpow2.f32 %v1959_v22 }
 0x514   :  { %v10513_v53 = vpop.eup %10512 }
 0x515   :  { %v10515_v0 = vpop.eup %10514  ;;  %v1973_v35 = vsel %vm1911_vm3, %v10513_v53, 0.0 }
 0x516   :  { %v10517_v30 = vpop.eup %10516  ;;  %1974 = vadd.xlane.f32.xlu1 %v1973_v35  ;;  %v1979_v55 = vsel %vm1911_vm3, %v10515_v0, 0.0 }
 0x517   :  { %v1976_v36 = vsel %vm1915_vm4, %v10517_v30, 0.0  ;;  %v10519_v5 = vpop.eup %10518 }
 0x518   :  { %1977 = vadd.xlane.f32.xlu0 %v1976_v36  ;;  %v1982_v15 = vsel %vm1915_vm4, %v10519_v5, 0.0 }
 0x51a   :  { %1980 = vadd.xlane.f32.xlu1 %v1979_v55 }
 0x51c   :  { %1983 = vadd.xlane.f32.xlu0 %v1982_v15 }
 0x52b   :  { %2156 = vrot.lane.b32.xlu1 %v11965_v63, %s11132_s4 }
 0x52f   :  { %2107 = vrot.lane.b32.xlu1 %v11963_v41, %s11132_s4 }
 0x530   :  { %v1966_v16 = vpop.xlane.xlu0 %1965 }
 0x531   :  { %10520 = vrcp.f32 %v1966_v16 }
 0x532   :  { %2005 = vrot.lane.b32.xlu0 %v11853_v26, %s11132_s4 }
 0x534   :  { %v1972_v12 = vpop.xlane.xlu0 %1971 }
 0x53a   :  { %v1963_v27 = vpop.xlane.xlu1 %1962 }
 0x53b   :  { %10522 = vrcp.f32 %v1963_v27  ;;  %v10521_v44 = vpop.eup %10520 }
 0x53c   :  { %10524 = vrcp.f32 %v1972_v12  ;;  %v1994_v20 = vmul.f32 %v10521_v44, %v12036_v8 }
 0x53e   :  { %v1969_v60 = vpop.xlane.xlu1 %1968 }
 0x53f   :  { %10526 = vrcp.f32 %v1969_v60 }
 0x545   :  { %v10523_v23 = vpop.eup %10522 }
 0x546   :  { %v1993_v25 = vmul.f32 %v10523_v23, %v10509_v58  ;;  %v10525_v63 = vpop.eup %10524 }
 0x547   :  { %v1996_v41 = vmul.f32 %v10525_v63, %v12040_v34 }
 0x548   :  { %v2001_v57 = vpack.c.bf16 %v1994_v20, %v1993_v25 }
 0x549   :  { %v10527_v24 = vpop.eup %10526 }
 0x54a   :  { %v1995_v59 = vmul.f32 %v10527_v24, %v10511_v39 }
 0x54c   :  { %v2002_v26 = vpack.c.bf16 %v1996_v41, %v1995_v59 }
 0x54e   :  { %10283 = vmatmul.mubr.msk.bf16.vlgmr.msra.gmra.mrb[12].mxu0 %vm1911_vm3, %v2002_v26 }
 0x54f   :  { %10294 = vmatprep.mubr.msk.bf16.mxu0 %vm11146_vm1, %v11145_v33 }
 0x5a3   :  { %v1975_v62 = vpop.xlane.xlu1 %1974 }
 0x5a5   :  { %v1978_v18 = vpop.xlane.xlu0 %1977 }
 0x5a6   :  { %10528 = vrcp.f32 %v1978_v18 }
 0x5a7   :  { %v1981_v4 = vpop.xlane.xlu1 %1980 }
 0x5a8   :  { %10530 = vrcp.f32 %v1981_v4 }
 0x5a9   :  { %10532 = vrcp.f32 %v1975_v62  ;;  %v1984_v56 = vpop.xlane.xlu0 %1983 }
 0x5aa   :  { %10534 = vrcp.f32 %v1984_v56 }
 0x5ab   :  { %v2157_v13 = vpop.permute.xlu1 %2156 }
 0x5ac   :  { %v2162_v28 = vand.u32 %v2157_v13, %v12046_v42 }
 0x5ad   :  { %v2006_v61 = vpop.permute.xlu0 %2005 }
 0x5ae   :  { %v2015_v19 = vand.u32 %v12046_v42, %v2006_v61  ;;  %10293 = vmatpush3.bf16.msra.mxu0 %v2162_v28 }
 0x5af   :  { %v2108_v37 = vpop.permute.xlu1 %2107 }
 0x5b0   :  { %10275 = vmatpush3.bf16.msra.mxu1 %v2015_v19  ;;  %v10529_v50 = vpop.eup %10528  ;;  %v2113_v1 = vand.u32 %v2108_v37, %v12046_v42 }
 0x5b1   :  { %10286 = vmatprep.subr.bf16.mxu1 %v11145_v33  ;;  %v1998_v8 = vmul.f32 %v10529_v50, %v10517_v30 }
 0x5b2   :  { %v10531_v54 = vpop.eup %10530 }
 0x5b3   :  { %v10533_v2 = vpop.eup %10532  ;;  %10277 = vmatmul.mubr.msk.bf16.vlgmr.msra.gmra.mrb[8].mxu1 %vm1911_vm3, %v2001_v57  ;;  %v1999_v21 = vmul.f32 %v10531_v54, %v10515_v0 }
 0x5b4   :  { %v10535_v3 = vpop.eup %10534  ;;  %10287 = vmatpush3.bf16.msra.mxu1 %v2113_v1  ;;  %10288 = vmatprep.mubr.msk.bf16.mxu1 %vm11146_vm1, %v11145_v33  ;;  %v1997_v34 = vmul.f32 %v10533_v2, %v10513_v53 }
 0x5b5   :  { %v2000_v9 = vmul.f32 %v10535_v3, %v10519_v5  ;;  %10298 = vmatprep.subr.bf16.mxu1 %v10480_v31 }
 0x5b6   :  { %v2003_v58 = vpack.c.bf16 %v1998_v8, %v1997_v34 }
 0x5b7   :  { %v2004_v32 = vpack.c.bf16 %v2000_v9, %v1999_v21 }
 0x5b9   :  { %10295 = vmatmul.mubr.msk.bf16.vlgmr.msra.gmra.mrb[16].mxu0 %vm1911_vm3, %v2004_v32 }
 0x5bb   :  { %10289 = vmatmul.mubr.msk.bf16.vlgmr.msra.gmra.mrb[12].mxu1 %vm1911_vm3, %v2003_v58 }
 0x5bc   :  { %10299 = vmatpush3.bf16.msra.mxu1 %v10480_v31 }
 0x5bd   :  { %10300 = vmatprep.subr.bf16.mxu1 %v10481_v49 }
 0x5c0   :  { %10301 = vmatpush3.bf16.msra.mxu1 %v10481_v49  ;;  %v9996_v49 = vld [vmem:[#allocation12] ss:$0 sm:$0xff] }
 0x621   :  { %v2100_v38 = vpop.f32.mrb[12].mxu0 }
 0x622   :  { %v10284_v39 = vpop.f32.mrb[13].mxu0 }
 0x623   :  { %v2103_v7 = vpop.f32.mrb[14].mxu0 }
 0x624   :  { %v10285_v43 = vpop.f32.mrb[15].mxu0 }
 0x686   :  { %v2051_v45 = vpop.f32.mrb[8].mxu1 }
 0x687   :  { %v10278_v46 = vpop.f32.mrb[9].mxu1 }
 0x688   :  { %v2054_v6 = vpop.f32.mrb[10].mxu1 }
 0x689   :  { %v10279_v47 = vpop.f32.mrb[11].mxu1 }
 0x68c   :  { %v2198_v10 = vpop.f32.mrb[16].mxu0 }
 0x68d   :  { %v10296_v29 = vpop.f32.mrb[17].mxu0 }
 0x68e   :  { %v2149_v48 = vpop.f32.mrb[12].mxu1  ;;  %v2201_v51 = vpop.f32.mrb[18].mxu0 }
 0x68f   :  { %v10468_v52 = vpack.i.bf16 %v2201_v51, %v2198_v10  ;;  %v10290_v40 = vpop.f32.mrb[13].mxu1  ;;  %v10297_v14 = vpop.f32.mrb[19].mxu0 }
 0x690   :  { %v2152_v17 = vpop.f32.mrb[14].mxu1 }
 0x691   :  { %10469 = vrot.lane.b32.xlu0 %v10468_v52, %s11122_s30  ;;  %2211 = vrot.lane.b32.xlu1 %v2152_v17, %s11122_s30  ;;  %v10291_v22 = vpop.f32.mrb[15].mxu1 }
 0x695   :  { %2209 = vrot.lane.b32.xlu0 %v2149_v48, %s11122_s30 }
 0x703   :  { %v10470_v53 = vpop.permute.xlu0 %10469  ;;  %v2212_v0 = vpop.permute.xlu1 %2211 }
 0x704   :  { %v10472_v35 = vunpack.i.h.bf16 %v10470_v53  ;;  %v10471_v30 = vunpack.i.l.bf16 %v10470_v53  ;;  %v2222_v36 = vsel %vm1713_vm2, %v2054_v6, %v2212_v0  ;;  %v2355_v53 = vcombine.high %v9996_v49, %v9996_v49 }
 0x705   :  { %v9997_v5 = vpack.c.bf16 %v2222_v36, %v2222_v36 }
 0x706   :  { %v2224_v55 = vsel %vm1713_vm2, %v2103_v7, %v10472_v35  ;;  %v2223_v15 = vsel %vm1713_vm2, %v2100_v38, %v10471_v30  ;;  %v2369_v0 = vrot.slane %v2355_v53, %v11605_v11  ;;  %v2362_v35 = vrot.slane %v9996_v49, %v11605_v11 }
 0x707   :  { %v9998_v16 = vpack.c.bf16 %v2224_v55, %v2224_v55  ;;  %v2226_v12 = vpack.c.bf16 %v2224_v55, %v2223_v15  ;;  %v2253_v27 = vrot.slane %v9997_v5, %v11605_v11  ;;  %v2210_v60 = vpop.permute.xlu0 %2209 }
 0x708   :  { %v2221_v44 = vsel %vm1713_vm2, %v2051_v45, %v2210_v60  ;;  %v2371_v30 = vcombine.high %v2369_v0, %v2369_v0  ;;  %v2385_v5 = vrot.slane %v2369_v0, %v11605_v11  ;;  %v2378_v15 = vrot.slane %v2362_v35, %v11605_v11 }
 0x709   :  { %v2300_v23 = vrot.slane %v9998_v16, %v11605_v11  ;;  %v2293_v20 = vrot.slane %v2226_v12, %v11605_v11  ;;  %v2255_v25 = vcombine.high %v2253_v27, %v2253_v27  ;;  %v2225_v63 = vpack.c.bf16 %v2222_v36, %v2221_v44 }
 0x70a   :  { %v2269_v56 = vrot.slane %v2253_v27, %v11605_v11  ;;  %v2370_v36 = vcombine.high %v2362_v35, %v2362_v35  ;;  %v2399_v55 = vrot.slane %v2371_v30, %v11605_v11  ;;  %v2401_v12 = vcombine.high %v2385_v5, %v2385_v5 }
 0x70b   :  { %v2302_v57 = vcombine.high %v2300_v23, %v2300_v23  ;;  %v2316_v24 = vrot.slane %v2300_v23, %v11605_v11  ;;  %v2301_v41 = vcombine.high %v2293_v20, %v2293_v20  ;;  %v2309_v59 = vrot.slane %v2293_v20, %v11605_v11 }
 0x70c   :  { %v2283_v26 = vrot.slane %v2255_v25, %v11605_v11  ;;  %v2246_v62 = vrot.slane %v2225_v63, %v11605_v11  ;;  %v2392_v16 = vrot.slane %v2370_v36, %v11605_v11  ;;  %v2403_v27 = vcombine.high %v2399_v55, %v2399_v55 }
 0x70d   :  { %v2323_v18 = vrot.slane %v2301_v41, %v11605_v11  ;;  %v2331_v4 = vcombine.high %v2309_v59, %v2309_v59  ;;  %v2330_v13 = vrot.slane %v2302_v57, %v11605_v11  ;;  %v2345_v28 = vunpack.i.h.s16 %v2309_v59 }
 0x70e   :  { %v9999_v61 = vpack.i.b16 %v2309_v59, %v2283_v26  ;;  %v2254_v19 = vcombine.high %v2246_v62, %v2246_v62  ;;  %v2353_v37 = vunpack.i.h.s16 %v2316_v24  ;;  %v2262_v3 = vrot.slane %v2246_v62, %v11605_v11 }
 0x70f   :  { %v2332_v50 = vcombine.high %v2323_v18, %v2323_v18  ;;  %v2347_v54 = vunpack.i.h.s16 %v2323_v18  ;;  %v2349_v1 = vunpack.i.h.s16 %v2331_v4  ;;  %v10000_v9 = vpack.i.b16 %v2323_v18, %v2345_v28 }
 0x710   :  { %v2417_v2 = vcombine.low %v2269_v56, %v9999_v61  ;;  %v2276_v8 = vrot.slane %v2254_v19, %v11605_v11  ;;  %v10004_v38 = vpack.i.b16 %v2330_v13, %v2353_v37  ;;  %v2400_v60 = vcombine.high %v2378_v15, %v2378_v15 }
 0x711   :  { %v2351_v21 = vunpack.i.h.s16 %v2332_v50  ;;  %v10001_v34 = vpack.i.b16 %v2331_v4, %v2347_v54  ;;  %v10002_v39 = vpack.i.b16 %v2332_v50, %v2349_v1  ;;  %v2402_v44 = vcombine.high %v2392_v16, %v2392_v16 }
 0x712   :  { %v2415_v32 = vcombine.low %v2262_v3, %v2276_v8  ;;  %v10005_v58 = vcombine.high %v2262_v3, %v2276_v8  ;;  %v2439_v47 = vrot.slane %v2417_v2, %v11605_v11  ;;  %v2478_v52 = vrot.slane %v10004_v38, %v11605_v11 }
 0x713   :  { %v10003_v7 = vpack.i.b16 %v2316_v24, %v2351_v21  ;;  %v2418_v43 = vcombine.low %v10000_v9, %v10001_v34  ;;  %v2589_v23 = vcombine.low %v2399_v55, %v2401_v12  ;;  %v2590_v20 = vcombine.low %v2403_v27, %v2378_v15 }
 0x714   :  { %v2425_v45 = vrot.slane %v2415_v32, %v11605_v11  ;;  %v2432_v46 = vrot.slane %v10005_v58, %v11605_v11  ;;  %v2499_v25 = vcombine.low %v2378_v15, %v2392_v16  ;;  %v10008_v63 = vcombine.high %v2378_v15, %v2392_v16 }
 0x715   :  { %v2464_v6 = vcombine.low %v10002_v39, %v10003_v7  ;;  %v2446_v10 = vrot.slane %v2418_v43, %v11605_v11  ;;  %v2501_v57 = vcombine.low %v2385_v5, %v2399_v55  ;;  %v10009_v24 = vcombine.high %v2385_v5, %v2399_v55 }
 0x716   :  { %v2447_v29 = vcombine.low %v2425_v45, %v2432_v46  ;;  %v2549_v41 = vcombine.low %v2392_v16, %v2400_v60  ;;  %v2548_v59 = vcombine.low %v2400_v60, %v2378_v15  ;;  %v2550_v26 = vcombine.low %v2402_v44, %v2385_v5 }
 0x717   :  { %v2448_v48 = vcombine.low %v2439_v47, %v2446_v10  ;;  %v2471_v51 = vrot.slane %v2464_v6, %v11605_v11  ;;  %v2597_v62 = vrot.slane %v2589_v23, %v11605_v11  ;;  %v2604_v18 = vrot.slane %v2590_v20, %v11605_v11 }
 0x718   :  { %v2455_v40 = vrot.slane %v2447_v29, %v11605_v11  ;;  %v2509_v4 = vrot.slane %v2499_v25, %v11605_v11  ;;  %v2516_v56 = vrot.slane %v10008_v63, %v11605_v11  ;;  %v2523_v13 = vrot.slane %v2501_v57, %v11605_v11 }
 0x719   :  { %v2462_v14 = vrot.slane %v2448_v48, %v11605_v11  ;;  %v2479_v17 = vcombine.low %v2471_v51, %v2478_v52  ;;  %v2530_v28 = vrot.slane %v10009_v24, %v11605_v11  ;;  %v2564_v61 = vrot.slane %v2549_v41, %v11605_v11 }
 0x71a   :  { %v2557_v19 = vrot.slane %v2548_v59, %v11605_v11  ;;  %v2571_v37 = vrot.slane %v2550_v26, %v11605_v11  ;;  %v2605_v50 = vcombine.low %v2597_v62, %v2604_v18  ;;  %v2531_v54 = vcombine.low %v2509_v4, %v2516_v56 }
 0x71b   :  { %v2463_v22 = vcombine.low %v2455_v40, %v2462_v14  ;;  %v2486_v31 = vrot.slane %v2479_v17, %v11605_v11  ;;  %v2532_v1 = vcombine.low %v2523_v13, %v2530_v28  ;;  %v2619_v21 = vrot.slane %v2564_v61, %v11605_v11 }
 0x71c   :  { %v2572_v2 = vcombine.low %v2509_v4, %v2557_v19  ;;  %v2573_v3 = vcombine.low %v2564_v61, %v2571_v37  ;;  %v2612_v8 = vrot.slane %v2605_v50, %v11605_v11  ;;  %v2539_v9 = vrot.slane %v2531_v54, %v11605_v11 }
 0x71d   :  { %10302 = vmatprep.mubr.msk.bf16.mxu1 %vm731_vm0, %v2463_v22  ;;  %v2546_v34 = vrot.slane %v2532_v1, %v11605_v11 }
 0x71e   :  { %10303 = vmatmul.mubr.msk.bf16.vlgmr.msra.gmra.mrb[16].mxu1 %vm731_vm0, %v2486_v31  ;;  %v2580_v32 = vrot.slane %v2572_v2, %v11605_v11  ;;  %v2587_v58 = vrot.slane %v2573_v3, %v11605_v11  ;;  %v2620_v38 = vcombine.low %v2612_v8, %v2619_v21 }
 0x71f   :  { %v2547_v39 = vcombine.low %v2539_v9, %v2546_v34 }
 0x720   :  { %v2588_v43 = vcombine.low %v2580_v32, %v2587_v58 }
 0x7f1   :  { %v10304_v7 = vpop.f32.mrb[16].mxu1 }
 0x7f2   :  { %v2673_v45 = vadd.f32 %v10304_v7, %v2620_v38  ;;  %v2664_v46 = vpop.f32.mrb[17].mxu1 }
 0x7f3   :  { %v2665_v6 = vadd.f32 %v2664_v46, %v2547_v39  ;;  %v10305_v47 = vpop.f32.mrb[18].mxu1 }
 0x7f4   :  { %v2779_v10 = vcombine.high %v2673_v45, %v2673_v45  ;;  %v2786_v29 = vrot.slane %v2673_v45, %v11605_v11  ;;  %v2667_v48 = vpop.f32.mrb[19].mxu1 }
 0x7f5   :  { %v2681_v51 = vcombine.high %v2665_v6, %v2665_v6  ;;  %v2688_v52 = vrot.slane %v2665_v6, %v11605_v11  ;;  %v2668_v40 = vadd.f32 %v2667_v48, %v2588_v43 }
 0x7f6   :  { %v2793_v14 = vrot.slane %v2779_v10, %v11605_v11  ;;  %v2794_v17 = vcombine.high %v2786_v29, %v2786_v29  ;;  %v2802_v22 = vrot.slane %v2786_v29, %v11605_v11  ;;  %v10604_v29 = vld [vmem:[#allocation3 + $0x18] sm:$0x7] }
 0x7f7   :  { %v2695_v31 = vrot.slane %v2681_v51, %v11605_v11  ;;  %v2696_v49 = vcombine.high %v2688_v52, %v2688_v52  ;;  %v2730_v53 = vcombine.high %v2668_v40, %v2668_v40  ;;  %v2704_v36 = vrot.slane %v2688_v52, %v11605_v11 }
 0x7f8   :  { %v2795_v0 = vcombine.high %v2793_v14, %v2793_v14  ;;  %v2809_v35 = vrot.slane %v2793_v14, %v11605_v11  ;;  %v2816_v30 = vrot.slane %v2794_v17, %v11605_v11  ;;  %v2824_v5 = vcombine.high %v2802_v22, %v2802_v22 }
 0x7f9   :  { %v2697_v55 = vcombine.high %v2695_v31, %v2695_v31  ;;  %v2718_v15 = vrot.slane %v2696_v49, %v11605_v11  ;;  %v2737_v16 = vrot.slane %v2668_v40, %v11605_v11  ;;  %v2711_v60 = vrot.slane %v2695_v31, %v11605_v11 }
 0x7fa   :  { %v2823_v12 = vrot.slane %v2795_v0, %v11605_v11  ;;  %v2825_v27 = vcombine.high %v2816_v30, %v2816_v30  ;;  %v2744_v44 = vrot.slane %v2730_v53, %v11605_v11  ;;  %v2901_v26 = vcombine.low %v2816_v30, %v2824_v5  ;;  %v10606_v5 = vld [vmem:[#allocation3 + $0x10] sm:$0xff] }
 0x7fb   :  { %v2725_v23 = vrot.slane %v2697_v55, %v11605_v11  ;;  %v2826_v20 = vcombine.low %v2704_v36, %v2718_v15  ;;  %v10012_v25 = vcombine.high %v2704_v36, %v2718_v15  ;;  %v2745_v63 = vcombine.high %v2737_v16, %v2737_v16 }
 0x7fc   :  { %v2947_v57 = vcombine.low %v2825_v27, %v2809_v35  ;;  %v2746_v24 = vcombine.high %v2744_v44, %v2744_v44  ;;  %v2753_v41 = vrot.slane %v2737_v16, %v11605_v11  ;;  %v2760_v59 = vrot.slane %v2744_v44, %v11605_v11  ;;  %v10607_v16 = vld [vmem:[#allocation3] sm:$0xff] }
 0x7fd   :  { %v2828_v62 = vcombine.low %v2711_v60, %v2725_v23  ;;  %v10013_v18 = vcombine.high %v2711_v60, %v2725_v23  ;;  %v2836_v4 = vrot.slane %v2826_v20, %v11605_v11  ;;  %v2767_v56 = vrot.slane %v2745_v63, %v11605_v11 }
 0x7fe   :  { %v2774_v13 = vrot.slane %v2746_v24, %v11605_v11  ;;  %v2775_v28 = vcombine.high %v2753_v41, %v2753_v41  ;;  %v2776_v61 = vcombine.high %v2760_v59, %v2760_v59  ;;  %v2843_v19 = vrot.slane %v10012_v25, %v11605_v11 }
 0x7ff   :  { %v2954_v37 = vrot.slane %v2947_v57, %v11605_v11  ;;  %v2961_v50 = vrot.slane %v2823_v12, %v11605_v11  ;;  %v2850_v54 = vrot.slane %v2828_v62, %v11605_v11  ;;  %v2777_v1 = vcombine.high %v2767_v56, %v2767_v56 }
 0x800   :  { %v2778_v2 = vcombine.high %v2774_v13, %v2774_v13  ;;  %v2875_v3 = vcombine.low %v2753_v41, %v2767_v56  ;;  %v2899_v8 = vcombine.low %v2774_v13, %v2776_v61  ;;  %v2889_v9 = vrot.slane %v2775_v28, %v11605_v11 }
 0x801   :  { %v2962_v21 = vcombine.low %v2954_v37, %v2961_v50  ;;  %v2857_v34 = vrot.slane %v10013_v18, %v11605_v11  ;;  %v2898_v32 = vcombine.low %v2777_v1, %v2760_v59  ;;  %v2929_v43 = vrot.slane %v2901_v26, %v11605_v11  ;;  %v10482_v50 = vld [vmem:[#allocation17] sm:$0xff]  }
 0x802   :  { %v2882_v58 = vrot.slane %v2875_v3, %v11605_v11  ;;  %v2900_v38 = vcombine.low %v2778_v2, %v2802_v22  ;;  %v2915_v39 = vrot.slane %v2899_v8, %v11605_v11  ;;  %v2858_v10 = vcombine.low %v2836_v4, %v2843_v19  ;;  %v10605_v22 = vld [vmem:[#allocation3 + $0x8] sm:$0x7]  ;;  %10306 = vmatprep.subr.bf16.mxu0 %v10482_v50 }
 0x803   :  { %v2969_v7 = vrot.slane %v2962_v21, %v11605_v11  ;;  %v2859_v45 = vcombine.low %v2850_v54, %v2857_v34  ;;  %v2908_v6 = vrot.slane %v2898_v32, %v11605_v11  ;;  %v10483_v54 = vld [vmem:[#allocation17 + $0x8] sm:$0xff]   ;;  %10307 = vmatpush3.bf16.msra.mxu0 %v10482_v50 }
 0x804   :  { %v2890_v46 = vcombine.low %v2882_v58, %v2889_v9  ;;  %v2922_v47 = vrot.slane %v2900_v38, %v11605_v11  ;;  %v2866_v0 = vrot.slane %v2858_v10, %v11605_v11  ;;  %10308 = vmatprep.subr.bf16.mxu0 %v10483_v54 }
 0x805   :  { %v2977_v48 = vadd.f32 %v10604_v29, %v2969_v7  ;;  %v2930_v52 = vcombine.low %v2908_v6, %v2915_v39  ;;  %v2873_v14 = vrot.slane %v2859_v45, %v11605_v11  ;;  %v10014_v45 = vld [vmem:[#allocation14] ss:$0 sm:$0xff]  ;;  %v10015_v6 = vld [vmem:[#allocation15] ss:$0 sm:$0xff] }
 0x806   :  { %v2897_v51 = vrot.slane %v2890_v46, %v11605_v11  ;;  %v2931_v40 = vcombine.low %v2922_v47, %v2929_v43 }
 0x807   :  { %v2990_v17 = vsel %vm2983_vm7, %v2977_v48, 0.0  ;;  %v2938_v49 = vrot.slane %v2930_v52, %v11605_v11  ;;  %v2874_v30 = vcombine.low %v2866_v0, %v2873_v14  ;;  %10309 = vmatpush3.bf16.msra.mxu0 %v10483_v54 }
 0x808   :  { %2991 = vadd.xlane.f32.xlu0 %v2990_v17  ;;  %v2975_v31 = vadd.f32 %v10605_v22, %v2897_v51  ;;  %v2945_v53 = vrot.slane %v2931_v40, %v11605_v11 }
 0x809   :  { %v2974_v12 = vadd.f32 %v10607_v16, %v2874_v30 }
 0x80a   :  { %v2946_v35 = vcombine.low %v2938_v49, %v2945_v53  ;;  %v2984_v36 = vsel %vm2983_vm7, %v2975_v31, 0.0 }
 0x80b   :  { %v2980_v27 = vsel %vm731_vm0, %v2974_v12, 0.0 }
 0x80c   :  { %2985 = vadd.xlane.f32.xlu0 %v2984_v36  ;;  %v2976_v55 = vadd.f32 %v10606_v5, %v2946_v35 }
 0x80e   :  { %v2987_v15 = vsel %vm731_vm0, %v2976_v55, 0.0 }
 0x80f   :  { %2988 = vadd.xlane.f32.xlu1 %v2987_v15 }
 0x813   :  { %2981 = vadd.xlane.f32.xlu1 %v2980_v27 }
 0x895   :  { %v2992_v60 = vpop.xlane.xlu0 %2991 }
 0x896   :  { %v2997_v44 = vmul.f32 0.03125, %v2992_v60 }
 0x898   :  { %v3001_v23 = vsub.f32 %v2977_v48, %v2997_v44 }
 0x899   :  { %v2986_v20 = vpop.xlane.xlu0 %2985 }
 0x89a   :  { %v3005_v25 = vmul.f32 %v3001_v23, %v3001_v23  ;;  %v2995_v63 = vmul.f32 0.03125, %v2986_v20 }
 0x89c   :  { %v2989_v57 = vpop.xlane.xlu1 %2988  ;;  %v3015_v24 = vsel %vm2983_vm7, %v3005_v25, 0.0  ;;  %v2999_v59 = vsub.f32 %v2975_v31, %v2995_v63 }
 0x89d   :  { %v2996_v41 = vmul.f32 0.03125, %v2989_v57  ;;  %3016 = vadd.xlane.f32.xlu1 %v3015_v24 }
 0x89e   :  { %v3003_v28 = vmul.f32 %v2999_v59, %v2999_v59 }
 0x89f   :  { %v3000_v26 = vsub.f32 %v2976_v55, %v2996_v41 }
 0x8a0   :  { %v2982_v62 = vpop.xlane.xlu1 %2981  ;;  %v3009_v19 = vsel %vm2983_vm7, %v3003_v28, 0.0 }
 0x8a1   :  { %v2994_v18 = vmul.f32 0.03125, %v2982_v62  ;;  %v3004_v4 = vmul.f32 %v3000_v26, %v3000_v26 }
 0x8a3   :  { %v2998_v56 = vsub.f32 %v2974_v12, %v2994_v18  ;;  %v3012_v13 = vsel %vm731_vm0, %v3004_v4, 0.0 }
 0x8a4   :  { %3013 = vadd.xlane.f32.xlu0 %v3012_v13 }
 0x8a5   :  { %v3002_v61 = vmul.f32 %v2998_v56, %v2998_v56 }
 0x8a7   :  { %v3006_v37 = vsel %vm731_vm0, %v3002_v61, 0.0 }
 0x8a8   :  { %3010 = vadd.xlane.f32.xlu0 %v3009_v19  ;;  %3007 = vadd.xlane.f32.xlu1 %v3006_v37 }
 0x92a   :  { %v3017_v1 = vpop.xlane.xlu1 %3016 }
 0x92b   :  { %v3021_v2 = vmul.f32 0.03125, %v3017_v1 }
 0x92d   :  { %v3025_v3 = vadd.f32 1e-05, %v3021_v2 }
 0x92f   :  { %10536 = vrsqrt.f32 %v3025_v3 }
 0x931   :  { %v3014_v8 = vpop.xlane.xlu0 %3013 }
 0x932   :  { %v3020_v21 = vmul.f32 0.03125, %v3014_v8 }
 0x934   :  { %v3024_v9 = vadd.f32 1e-05, %v3020_v21 }
 0x935   :  { %v3011_v34 = vpop.xlane.xlu0 %3010  ;;  %v3008_v32 = vpop.xlane.xlu1 %3007 }
 0x936   :  { %10538 = vrsqrt.f32 %v3024_v9  ;;  %v3019_v58 = vmul.f32 0.03125, %v3011_v34  ;;  %v3018_v38 = vmul.f32 0.03125, %v3008_v32 }
 0x938   :  { %v3023_v39 = vadd.f32 1e-05, %v3019_v58  ;;  %v3022_v7 = vadd.f32 1e-05, %v3018_v38 }
 0x939   :  { %v10537_v43 = vpop.eup %10536 }
 0x93a   :  { %v3033_v46 = vmul.f32 %v10537_v43, %v3001_v23  ;;  %10540 = vrsqrt.f32 %v3023_v39 }
 0x93b   :  { %10542 = vrsqrt.f32 %v3022_v7 }
 0x93c   :  { %v3043_v47 = vmul.f32 %v10014_v45, %v3033_v46 }
 0x93e   :  { %v12169_v10 = vadd.f32 %v10015_v6, %v3043_v47 }
 0x940   :  { %v10539_v29 = vpop.eup %10538  ;;  %v10018_v51 = vpack.c.bf16 %v12169_v10, %v12169_v10 }
 0x941   :  { %v3032_v48 = vmul.f32 %v10539_v29, %v3000_v26 }
 0x942   :  { %v3129_v31 = vrot.slane %v10018_v51, %v11605_v11 }
 0x943   :  { %v3042_v52 = vmul.f32 %v10014_v45, %v3032_v48 }
 0x944   :  { %v10541_v40 = vpop.eup %10540  ;;  %v3131_v55 = vcombine.high %v3129_v31, %v3129_v31  ;;  %v3145_v27 = vrot.slane %v3129_v31, %v11605_v11  ;;  %v10016_v31 = vld [vmem:[#allocation18] ss:$0 sm:$0xff] }
 0x945   :  { %v10543_v14 = vpop.eup %10542  ;;  %v12173_v17 = vadd.f32 %v10015_v6, %v3042_v52  ;;  %v3031_v22 = vmul.f32 %v10541_v40, %v2999_v59  ;;  %v10484_v52 = vld [vmem:[#allocation20] sm:$0xff]   ;;  %v10485_v40 = vld [vmem:[#allocation20 + $0x8] sm:$0xff]  }
 0x946   :  { %v3030_v49 = vmul.f32 %v10543_v14, %v2998_v56  ;;  %v3159_v41 = vrot.slane %v3131_v55, %v11605_v11  ;;  %v3182_v59 = vunpack.i.h.s16 %v3145_v27  ;;  %10314 = vmatprep.subr.bf16.mxu1 %v10484_v52  ;;  %v10486_v14 = vld [vmem:[#allocation20 + $0x10] sm:$0xff]  }
 0x947   :  { %v3055_v53 = vpack.c.bf16 %v12169_v10, %v12173_v17  ;;  %v3041_v0 = vmul.f32 %v10014_v45, %v3031_v22  ;;  %10315 = vmatpush3.bf16.msra.mxu1 %v10484_v52  ;;  %v10487_v22 = vld [vmem:[#allocation20 + $0x18] sm:$0xff]  }
 0x948   :  { %v3040_v35 = vmul.f32 %v10014_v45, %v3030_v49  ;;  %v10024_v1 = vpack.i.b16 %v3159_v41, %v3182_v59  ;;  %10316 = vmatprep.subr.bf16.mxu1 %v10485_v40  ;;  %v3184_v49 = vcombine.high %v10016_v31, %v10016_v31 }
 0x949   :  { %v3122_v30 = vrot.slane %v3055_v53, %v11605_v11  ;;  %v12179_v36 = vadd.f32 %v10015_v6, %v3041_v0 }
 0x94a   :  { %v12181_v5 = vadd.f32 %v10015_v6, %v3040_v35  ;;  %v3307_v45 = vrot.slane %v10024_v1, %v11605_v11  ;;  %v3198_v53 = vrot.slane %v3184_v49, %v11605_v11  ;;  %v3191_v35 = vrot.slane %v10016_v31, %v11605_v11 }
 0x94b   :  { %v3130_v15 = vcombine.high %v3122_v30, %v3122_v30  ;;  %v10017_v16 = vpack.c.bf16 %v12179_v36, %v12179_v36  ;;  %v3138_v12 = vrot.slane %v3122_v30, %v11605_v11  ;;  %10317 = vmatpush3.bf16.msra.mxu1 %v10485_v40 }
 0x94c   :  { %v3054_v60 = vpack.c.bf16 %v12179_v36, %v12181_v5  ;;  %10318 = vmatprep.subr.bf16.mxu1 %v10486_v14  ;;  %v3200_v0 = vcombine.high %v3198_v53, %v3198_v53  ;;  %v3214_v30 = vrot.slane %v3198_v53, %v11605_v11 }
 0x94d   :  { %v3082_v44 = vrot.slane %v10017_v16, %v11605_v11  ;;  %v3152_v23 = vrot.slane %v3130_v15, %v11605_v11  ;;  %v3160_v20 = vcombine.high %v3138_v12, %v3138_v12  ;;  %v3174_v25 = vunpack.i.h.s16 %v3138_v12 }
 0x94e   :  { %v3075_v63 = vrot.slane %v3054_v60, %v11605_v11  ;;  %v3228_v55 = vrot.slane %v3200_v0, %v11605_v11  ;;  %v3199_v15 = vcombine.high %v3191_v35, %v3191_v35  ;;  %v3207_v16 = vrot.slane %v3191_v35, %v11605_v11 }
 0x94f   :  { %v3084_v57 = vcombine.high %v3082_v44, %v3082_v44  ;;  %v3176_v24 = vunpack.i.h.s16 %v3152_v23  ;;  %v3178_v62 = vunpack.i.h.s16 %v3160_v20  ;;  %v3161_v18 = vcombine.high %v3152_v23, %v3152_v23  ;;  %10319 = vmatpush3.bf16.msra.mxu1 %v10486_v14 }
 0x950   :  { %v3083_v26 = vcombine.high %v3075_v63, %v3075_v63  ;;  %v10020_v56 = vpack.i.b16 %v3152_v23, %v3174_v25  ;;  %v3091_v28 = vrot.slane %v3075_v63, %v11605_v11  ;;  %v3098_v37 = vrot.slane %v3082_v44, %v11605_v11  ;;  %10320 = vmatprep.subr.bf16.mxu1 %v10487_v22 }
 0x951   :  { %v3112_v4 = vrot.slane %v3084_v57, %v11605_v11  ;;  %v10021_v13 = vpack.i.b16 %v3160_v20, %v3176_v24  ;;  %v3180_v19 = vunpack.i.h.s16 %v3161_v18  ;;  %v10022_v8 = vpack.i.b16 %v3161_v18, %v3178_v62 }
 0x952   :  { %v3105_v61 = vrot.slane %v3083_v26, %v11605_v11  ;;  %v3221_v60 = vrot.slane %v3199_v15, %v11605_v11  ;;  %v3229_v44 = vcombine.high %v3207_v16, %v3207_v16  ;;  %v3330_v57 = vcombine.low %v3214_v30, %v3228_v55 }
 0x953   :  { %v10019_v50 = vpack.i.b16 %v3138_v12, %v3112_v4  ;;  %v3247_v54 = vcombine.low %v10020_v56, %v10021_v13  ;;  %v10023_v21 = vpack.i.b16 %v3145_v27, %v3180_v19  ;;  %10321 = vmatpush3.bf16.msra.mxu1 %v10487_v22  ;;  %v3230_v12 = vcombine.high %v3214_v30, %v3214_v30 }
 0x954   :  { %v3244_v2 = vcombine.low %v3091_v28, %v3105_v61  ;;  %v10025_v3 = vcombine.high %v3091_v28, %v3105_v61  ;;  %10340 = vmatprep.subr.bf16.mxu1 %v11145_v33  ;;  %v3232_v27 = vcombine.high %v3228_v55, %v3228_v55  ;;  %v3328_v25 = vcombine.low %v3207_v16, %v3221_v60 }
 0x955   :  { %v3246_v9 = vcombine.low %v3098_v37, %v10019_v50  ;;  %v3293_v58 = vcombine.low %v10022_v8, %v10023_v21  ;;  %v3275_v39 = vrot.slane %v3247_v54, %v11605_v11  ;;  %v3418_v23 = vcombine.low %v3228_v55, %v3230_v12 }
 0x956   :  { %v3254_v34 = vrot.slane %v3244_v2, %v11605_v11  ;;  %v3261_v32 = vrot.slane %v10025_v3, %v11605_v11  ;;  %v3419_v20 = vcombine.low %v3232_v27, %v3207_v16  ;;  %v10028_v63 = vcombine.high %v3207_v16, %v3221_v60 }
 0x957   :  { %v3268_v38 = vrot.slane %v3246_v9, %v11605_v11  ;;  %v3300_v43 = vrot.slane %v3293_v58, %v11605_v11  ;;  %v10029_v24 = vcombine.high %v3214_v30, %v3228_v55  ;;  %v3231_v41 = vcombine.high %v3221_v60, %v3221_v60 }
 0x958   :  { %v3276_v7 = vcombine.low %v3254_v34, %v3261_v32  ;;  %v3378_v59 = vcombine.low %v3221_v60, %v3229_v44  ;;  %v3426_v26 = vrot.slane %v3418_v23, %v11605_v11  ;;  %v3433_v62 = vrot.slane %v3419_v20, %v11605_v11 }
 0x959   :  { %v3277_v46 = vcombine.low %v3268_v38, %v3275_v39  ;;  %v3308_v6 = vcombine.low %v3300_v43, %v3307_v45  ;;  %v3338_v18 = vrot.slane %v3328_v25, %v11605_v11  ;;  %v3345_v4 = vrot.slane %v10028_v63, %v11605_v11 }
 0x95a   :  { %v3284_v47 = vrot.slane %v3276_v7, %v11605_v11  ;;  %v3352_v56 = vrot.slane %v3330_v57, %v11605_v11  ;;  %v3359_v13 = vrot.slane %v10029_v24, %v11605_v11  ;;  %v3377_v28 = vcombine.low %v3229_v44, %v3207_v16 }
 0x95b   :  { %v3291_v29 = vrot.slane %v3277_v46, %v11605_v11  ;;  %v3315_v51 = vrot.slane %v3308_v6, %v11605_v11  ;;  %v3379_v61 = vcombine.low %v3231_v41, %v3214_v30  ;;  %v3393_v19 = vrot.slane %v3378_v59, %v11605_v11 }
 0x95c   :  { %v3434_v37 = vcombine.low %v3426_v26, %v3433_v62  ;;  %v3360_v50 = vcombine.low %v3338_v18, %v3345_v4  ;;  %v3361_v54 = vcombine.low %v3352_v56, %v3359_v13  ;;  %v3386_v1 = vrot.slane %v3377_v28, %v11605_v11 }
 0x95d   :  { %v3292_v48 = vcombine.low %v3284_v47, %v3291_v29  ;;  %v3400_v2 = vrot.slane %v3379_v61, %v11605_v11  ;;  %v3448_v8 = vrot.slane %v3393_v19, %v11605_v11 }
 0x95e   :  { %v3441_v3 = vrot.slane %v3434_v37, %v11605_v11  ;;  %v3368_v21 = vrot.slane %v3360_v50, %v11605_v11  ;;  %v3375_v9 = vrot.slane %v3361_v54, %v11605_v11  ;;  %v3401_v34 = vcombine.low %v3338_v18, %v3386_v1 }
 0x95f   :  { %10310 = vmatprep.mubr.msk.bf16.mxu0 %vm731_vm0, %v3292_v48  ;;  %v3402_v32 = vcombine.low %v3393_v19, %v3400_v2 }
 0x960   :  { %10311 = vmatmul.mubr.msk.bf16.vlgmr.msra.gmra.mrb[20].mxu0 %vm731_vm0, %v3315_v51  ;;  %v3449_v58 = vcombine.low %v3441_v3, %v3448_v8  ;;  %v3376_v38 = vcombine.low %v3368_v21, %v3375_v9  ;;  %v3409_v39 = vrot.slane %v3401_v34, %v11605_v11 }
 0x961   :  { %v3416_v7 = vrot.slane %v3402_v32, %v11605_v11 }
 0x963   :  { %v3417_v51 = vcombine.low %v3409_v39, %v3416_v7 }
 0xa33   :  { %v10312_v43 = vpop.f32.mrb[20].mxu0 }
 0xa34   :  { %v3502_v45 = vadd.f32 %v10312_v43, %v3449_v58  ;;  %v3493_v46 = vpop.f32.mrb[21].mxu0 }
 0xa35   :  { %v3494_v6 = vadd.f32 %v3493_v46, %v3376_v38  ;;  %v10313_v47 = vpop.f32.mrb[22].mxu0 }
 0xa36   :  { %v3608_v29 = vcombine.high %v3502_v45, %v3502_v45  ;;  %v3615_v48 = vrot.slane %v3502_v45, %v11605_v11  ;;  %v3496_v52 = vpop.f32.mrb[23].mxu0 }
 0xa37   :  { %v3510_v40 = vcombine.high %v3494_v6, %v3494_v6  ;;  %v3517_v14 = vrot.slane %v3494_v6, %v11605_v11  ;;  %v3497_v55 = vadd.f32 %v3496_v52, %v3417_v51 }
 0xa38   :  { %v3622_v22 = vrot.slane %v3608_v29, %v11605_v11  ;;  %v3623_v31 = vcombine.high %v3615_v48, %v3615_v48  ;;  %v12236_v35 = vrot.slane %v3615_v48, %v11605_v11 }
 0xa39   :  { %v3524_v49 = vrot.slane %v3510_v40, %v11605_v11  ;;  %v3525_v53 = vcombine.high %v3517_v14, %v3517_v14  ;;  %v3533_v0 = vrot.slane %v3517_v14, %v11605_v11  ;;  %v3559_v41 = vcombine.high %v3497_v55, %v3497_v55 }
 0xa3a   :  { %v3645_v30 = vrot.slane %v3623_v31, %v11605_v11  ;;  %v3624_v15 = vcombine.high %v3622_v22, %v3622_v22  ;;  %v3638_v60 = vrot.slane %v3622_v22, %v11605_v11  ;;  %v3653_v63 = vcombine.high %v12236_v35, %v12236_v35 }
 0xa3b   :  { %v3526_v16 = vcombine.high %v3524_v49, %v3524_v49  ;;  %v3540_v12 = vrot.slane %v3524_v49, %v11605_v11  ;;  %v3547_v27 = vrot.slane %v3525_v53, %v11605_v11  ;;  %v3555_v20 = vcombine.high %v3533_v0, %v3533_v0 }
 0xa3c   :  { %v3654_v44 = vcombine.high %v3645_v30, %v3645_v30  ;;  %v3652_v59 = vrot.slane %v3624_v15, %v11605_v11  ;;  %v3694_v26 = vmax.f32 %v3645_v30, 0.0  ;;  %v3697_v4 = vmax.f32 %v3638_v60, 0.0 }
 0xa3d   :  { %v3554_v23 = vrot.slane %v3526_v16, %v11605_v11  ;;  %v3556_v25 = vcombine.high %v3540_v12, %v3540_v12  ;;  %v3557_v24 = vcombine.high %v3547_v27, %v3547_v27  ;;  %v3678_v18 = vmax.f32 %v3547_v27, 0.0 }
 0xa3e   :  { %v3696_v57 = vmax.f32 %v3654_v44, 0.0  ;;  %v3677_v56 = vmax.f32 %v3533_v0, 0.0  ;;  %v3679_v13 = vmax.f32 %v3555_v20, 0.0  ;;  %v3681_v61 = vmax.f32 %v3540_v12, 0.0 }
 0xa3f   :  { %v3558_v62 = vcombine.high %v3554_v23, %v3554_v23  ;;  %v3680_v28 = vmax.f32 %v3557_v24, 0.0  ;;  %v3682_v19 = vmax.f32 %v3554_v23, 0.0  ;;  %v3683_v37 = vmax.f32 %v3556_v25, 0.0 }
 0xa40   :  { %v3842_v54 = vcombine.low %v3696_v57, %v3697_v4  ;;  %v3721_v1 = vcombine.low %v3677_v56, %v3678_v18  ;;  %v3566_v3 = vrot.slane %v3497_v55, %v11605_v11  ;;  %v3695_v8 = vmax.f32 %v3653_v63, 0.0 }
 0xa41   :  { %v3684_v50 = vmax.f32 %v3558_v62, 0.0  ;;  %v3722_v2 = vcombine.low %v3679_v13, %v3680_v28  ;;  %v3723_v21 = vcombine.low %v3681_v61, %v3682_v19  ;;  %v3573_v34 = vrot.slane %v3559_v41, %v11605_v11 }
 0xa42   :  { %v3693_v32 = vmax.f32 %v12236_v35, 0.0  ;;  %v3698_v58 = vmax.f32 %v3652_v59, 0.0  ;;  %v3574_v39 = vcombine.high %v3566_v3, %v3566_v3  ;;  %v3582_v46 = vrot.slane %v3566_v3, %v11605_v11 }
 0xa43   :  { %v3724_v9 = vcombine.low %v3683_v37, %v3684_v50  ;;  %v3738_v38 = vrot.slane %v3722_v2, %v11605_v11  ;;  %v3745_v7 = vrot.slane %v3723_v21, %v11605_v11  ;;  %v3575_v45 = vcombine.high %v3573_v34, %v3573_v34 }
 0xa44   :  { %v3849_v6 = vrot.slane %v3842_v54, %v11605_v11  ;;  %v3731_v47 = vrot.slane %v3721_v1, %v11605_v11  ;;  %v3589_v29 = vrot.slane %v3573_v34, %v11605_v11  ;;  %v3596_v48 = vrot.slane %v3574_v39, %v11605_v11 }
 0xa45   :  { %v3752_v43 = vrot.slane %v3724_v9, %v11605_v11  ;;  %v3796_v51 = vcombine.low %v3694_v26, %v3695_v8  ;;  %v3603_v40 = vrot.slane %v3575_v45, %v11605_v11  ;;  %v3604_v14 = vcombine.high %v3582_v46, %v3582_v46 }
 0xa46   :  { %v3856_v22 = vrot.slane %v3698_v58, %v11605_v11  ;;  %v3753_v31 = vcombine.low %v3731_v47, %v3738_v38  ;;  %v3605_v49 = vcombine.high %v3589_v29, %v3589_v29  ;;  %v3606_v53 = vcombine.high %v3596_v48, %v3596_v48 }
 0xa47   :  { %v3754_v52 = vcombine.low %v3745_v7, %v3752_v43  ;;  %v3607_v0 = vcombine.high %v3603_v40, %v3603_v40  ;;  %v3685_v35 = vmax.f32 %v3582_v46, 0.0  ;;  %v3686_v30 = vmax.f32 %v3596_v48, 0.0 }
 0xa48   :  { %v3687_v55 = vmax.f32 %v3604_v14, 0.0  ;;  %v3857_v15 = vcombine.low %v3849_v6, %v3856_v22  ;;  %v3688_v16 = vmax.f32 %v3606_v53, 0.0  ;;  %v3689_v12 = vmax.f32 %v3589_v29, 0.0 }
 0xa49   :  { %v3690_v27 = vmax.f32 %v3603_v40, 0.0  ;;  %v3768_v60 = vrot.slane %v3754_v52, %v11605_v11  ;;  %v3691_v44 = vmax.f32 %v3605_v49, 0.0  ;;  %v3692_v23 = vmax.f32 %v3607_v0, 0.0 }
 0xa4a   :  { %v3770_v20 = vcombine.low %v3685_v35, %v3686_v30  ;;  %v3761_v25 = vrot.slane %v3753_v31, %v11605_v11  ;;  %v3793_v63 = vcombine.low %v3688_v16, %v3689_v12  ;;  %v3784_v24 = vrot.slane %v3687_v55, %v11605_v11 }
 0xa4b   :  { %v3794_v41 = vcombine.low %v3690_v27, %v3691_v44  ;;  %v3795_v59 = vcombine.low %v3692_v23, %v3693_v32  ;;  %v3824_v26 = vrot.slane %v3796_v51, %v11605_v11  ;;  %v3864_v62 = vrot.slane %v3857_v15, %v11605_v11 }
 0xa4c   :  { %v3777_v57 = vrot.slane %v3770_v20, %v11605_v11  ;;  %v3803_v18 = vrot.slane %v3793_v63, %v11605_v11  ;;  %v3769_v4 = vcombine.low %v3761_v25, %v3768_v60 }
 0xa4d   :  { %v3810_v13 = vrot.slane %v3794_v41, %v11605_v11  ;;  %v3817_v28 = vrot.slane %v3795_v59, %v11605_v11  ;;  %v10034_v50 = vpack.c.bf16 %v3864_v62, %v3864_v62 }
 0xa4e   :  { %v3785_v56 = vcombine.low %v3777_v57, %v3784_v24 }
 0xa4f   :  { %v3825_v19 = vcombine.low %v3803_v18, %v3810_v13  ;;  %v3826_v37 = vcombine.low %v3817_v28, %v3824_v26  ;;  %v3948_v34 = vrot.slane %v10034_v50, %v11605_v11 }
 0xa50   :  { %v3792_v61 = vrot.slane %v3785_v56, %v11605_v11 }
 0xa51   :  { %v3833_v54 = vrot.slane %v3825_v19, %v11605_v11  ;;  %v3840_v1 = vrot.slane %v3826_v37, %v11605_v11  ;;  %v3950_v45 = vcombine.high %v3948_v34, %v3948_v34  ;;  %v3964_v29 = vrot.slane %v3948_v34, %v11605_v11 }
 0xa52   :  { %v3869_v2 = vpack.c.bf16 %v3792_v61, %v3769_v4  ;;  %v10033_v3 = vpack.c.bf16 %v3792_v61, %v3792_v61  ;;  %v10032_v61 = vld [vmem:[#allocation21] ss:$0 sm:$0xff] }
 0xa53   :  { %v3841_v8 = vcombine.low %v3833_v54, %v3840_v1  ;;  %v3978_v35 = vrot.slane %v3950_v45, %v11605_v11  ;;  %v4001_v55 = vunpack.i.h.s16 %v3964_v29  ;;  %v4003_v19 = vcombine.high %v10032_v61, %v10032_v61 }
 0xa54   :  { %v3894_v21 = vrot.slane %v3869_v2, %v11605_v11  ;;  %v3901_v9 = vrot.slane %v10033_v3, %v11605_v11  ;;  %v4010_v50 = vrot.slane %v10032_v61, %v11605_v11 }
 0xa55   :  { %v3870_v32 = vpack.c.bf16 %v3864_v62, %v3841_v8  ;;  %v10040_v25 = vpack.i.b16 %v3978_v35, %v4001_v55  ;;  %v4017_v37 = vrot.slane %v4003_v19, %v11605_v11 }
 0xa56   :  { %v3902_v58 = vcombine.high %v3894_v21, %v3894_v21  ;;  %v3903_v38 = vcombine.high %v3901_v9, %v3901_v9  ;;  %v3910_v43 = vrot.slane %v3894_v21, %v11605_v11  ;;  %v3917_v48 = vrot.slane %v3901_v9, %v11605_v11 }
 0xa57   :  { %v3941_v39 = vrot.slane %v3870_v32, %v11605_v11  ;;  %v4126_v62 = vrot.slane %v10040_v25, %v11605_v11  ;;  %v4019_v54 = vcombine.high %v4017_v37, %v4017_v37  ;;  %v4018_v1 = vcombine.high %v4010_v50, %v4010_v50 }
 0xa58   :  { %v3924_v7 = vrot.slane %v3902_v58, %v11605_v11  ;;  %v3931_v46 = vrot.slane %v3903_v38, %v11605_v11  ;;  %v4033_v2 = vrot.slane %v4017_v37, %v11605_v11  ;;  %v4026_v8 = vrot.slane %v4010_v50, %v11605_v11 }
 0xa59   :  { %v3949_v6 = vcombine.high %v3941_v39, %v3941_v39  ;;  %v3957_v47 = vrot.slane %v3941_v39, %v11605_v11  ;;  %v4047_v3 = vrot.slane %v4019_v54, %v11605_v11  ;;  %v4040_v21 = vrot.slane %v4018_v1, %v11605_v11 }
 0xa5a   :  { %v4063_v51 = vcombine.low %v3910_v43, %v3924_v7  ;;  %v10041_v52 = vcombine.high %v3910_v43, %v3924_v7  ;;  %v4049_v9 = vcombine.high %v4033_v2, %v4033_v2  ;;  %v4048_v32 = vcombine.high %v4026_v8, %v4026_v8 }
 0xa5b   :  { %v3971_v40 = vrot.slane %v3949_v6, %v11605_v11  ;;  %v3979_v14 = vcombine.high %v3957_v47, %v3957_v47  ;;  %v3993_v22 = vunpack.i.h.s16 %v3957_v47  ;;  %v10035_v31 = vpack.i.b16 %v3957_v47, %v3931_v46 }
 0xa5c   :  { %v4073_v12 = vrot.slane %v4063_v51, %v11605_v11  ;;  %v4080_v27 = vrot.slane %v10041_v52, %v11605_v11  ;;  %v4051_v34 = vcombine.high %v4047_v3, %v4047_v3  ;;  %v4050_v58 = vcombine.high %v4040_v21, %v4040_v21 }
 0xa5d   :  { %v3995_v49 = vunpack.i.h.s16 %v3971_v40  ;;  %v4065_v53 = vcombine.low %v3917_v48, %v10035_v31  ;;  %v3997_v0 = vunpack.i.h.s16 %v3979_v14  ;;  %v3980_v30 = vcombine.high %v3971_v40, %v3971_v40 }
 0xa5e   :  { %v10036_v15 = vpack.i.b16 %v3971_v40, %v3993_v22  ;;  %v4095_v24 = vcombine.low %v4073_v12, %v4080_v27  ;;  %v4249_v38 = vcombine.low %v4047_v3, %v4049_v9  ;;  %v4250_v39 = vcombine.low %v4051_v34, %v4026_v8 }
 0xa5f   :  { %v10037_v16 = vpack.i.b16 %v3979_v14, %v3995_v49  ;;  %v3999_v60 = vunpack.i.h.s16 %v3980_v30  ;;  %v10038_v23 = vpack.i.b16 %v3980_v30, %v3997_v0  ;;  %v4087_v63 = vrot.slane %v4065_v53, %v11605_v11 }
 0xa60   :  { %v4103_v18 = vrot.slane %v4095_v24, %v11605_v11  ;;  %v4159_v7 = vcombine.low %v4026_v8, %v4040_v21  ;;  %v10046_v43 = vcombine.high %v4026_v8, %v4040_v21  ;;  %v4161_v45 = vcombine.low %v4033_v2, %v4047_v3 }
 0xa61   :  { %v4066_v44 = vcombine.low %v10036_v15, %v10037_v16  ;;  %v10039_v20 = vpack.i.b16 %v3964_v29, %v3999_v60  ;;  %v10047_v46 = vcombine.high %v4033_v2, %v4047_v3  ;;  %v4209_v6 = vcombine.low %v4040_v21, %v4048_v32 }
 0xa62   :  { %v4208_v47 = vcombine.low %v4048_v32, %v4026_v8  ;;  %v4210_v29 = vcombine.low %v4050_v58, %v4033_v2  ;;  %v4257_v48 = vrot.slane %v4249_v38, %v11605_v11  ;;  %v4264_v51 = vrot.slane %v4250_v39, %v11605_v11 }
 0xa63   :  { %v4094_v57 = vrot.slane %v4066_v44, %v11605_v11  ;;  %v4112_v41 = vcombine.low %v10038_v23, %v10039_v20  ;;  %v4169_v52 = vrot.slane %v4159_v7, %v11605_v11  ;;  %v4176_v40 = vrot.slane %v10046_v43, %v11605_v11 }
 0xa64   :  { %v4183_v14 = vrot.slane %v4161_v45, %v11605_v11  ;;  %v4190_v22 = vrot.slane %v10047_v46, %v11605_v11  ;;  %v4224_v31 = vrot.slane %v4209_v6, %v11605_v11  ;;  %v4217_v49 = vrot.slane %v4208_v47, %v11605_v11 }
 0xa65   :  { %v4096_v59 = vcombine.low %v4087_v63, %v4094_v57  ;;  %v4119_v26 = vrot.slane %v4112_v41, %v11605_v11  ;;  %v4231_v53 = vrot.slane %v4210_v29, %v11605_v11  ;;  %v4265_v0 = vcombine.low %v4257_v48, %v4264_v51 }
 0xa66   :  { %v4191_v35 = vcombine.low %v4169_v52, %v4176_v40  ;;  %v4192_v30 = vcombine.low %v4183_v14, %v4190_v22  ;;  %v4232_v55 = vcombine.low %v4169_v52, %v4217_v49  ;;  %v4279_v12 = vrot.slane %v4224_v31, %v11605_v11 }
 0xa67   :  { %v4110_v4 = vrot.slane %v4096_v59, %v11605_v11  ;;  %v4127_v56 = vcombine.low %v4119_v26, %v4126_v62  ;;  %v4233_v15 = vcombine.low %v4224_v31, %v4231_v53  ;;  %v4272_v16 = vrot.slane %v4265_v0, %v11605_v11 }
 0xa68   :  { %v4199_v27 = vrot.slane %v4191_v35, %v11605_v11  ;;  %v4206_v60 = vrot.slane %v4192_v30, %v11605_v11  ;;  %v4240_v44 = vrot.slane %v4232_v55, %v11605_v11 }
 0xa69   :  { %v4111_v13 = vcombine.low %v4103_v18, %v4110_v4  ;;  %v4134_v28 = vrot.slane %v4127_v56, %v11605_v11  ;;  %v4247_v23 = vrot.slane %v4233_v15, %v11605_v11  ;;  %v4280_v20 = vcombine.low %v4272_v16, %v4279_v12 }
 0xa6a   :  { %v4207_v25 = vcombine.low %v4199_v27, %v4206_v60 }
 0xa6b   :  { %10322 = vmatprep.mubr.msk.bf16.mxu1 %vm4284_vm8, %v4111_v13  ;;  %v4248_v57 = vcombine.low %v4240_v44, %v4247_v23 }
 0xa6c   :  { %10323 = vmatmul.mubr.msk.bf16.vlgmr.msra.gmra.mrb[20].mxu1 %vm4284_vm8, %v4134_v28 }
 0xa6d   :  { %10342 = vmatprep.mubr.msk.bf16.mxu1 %vm11146_vm1, %v11145_v33 }
 0xb3f   :  { %v10324_v63 = vpop.f32.mrb[20].mxu1 }
 0xb40   :  { %v4334_v24 = vadd.f32 %v10324_v63, %v4280_v20  ;;  %v4325_v41 = vpop.f32.mrb[21].mxu1 }
 0xb41   :  { %v4326_v59 = vadd.f32 %v4325_v41, %v4207_v25  ;;  %v10325_v26 = vpop.f32.mrb[22].mxu1 }
 0xb42   :  { %v4440_v62 = vcombine.high %v4334_v24, %v4334_v24  ;;  %v4447_v18 = vrot.slane %v4334_v24, %v11605_v11  ;;  %v4328_v4 = vpop.f32.mrb[23].mxu1 }
 0xb43   :  { %v4342_v56 = vcombine.high %v4326_v59, %v4326_v59  ;;  %v4349_v13 = vrot.slane %v4326_v59, %v11605_v11  ;;  %v4329_v28 = vadd.f32 %v4328_v4, %v4248_v57 }
 0xb44   :  { %v4454_v61 = vrot.slane %v4440_v62, %v11605_v11  ;;  %v4455_v19 = vcombine.high %v4447_v18, %v4447_v18  ;;  %v4463_v37 = vrot.slane %v4447_v18, %v11605_v11 }
 0xb45   :  { %v4356_v50 = vrot.slane %v4342_v56, %v11605_v11  ;;  %v4357_v54 = vcombine.high %v4349_v13, %v4349_v13  ;;  %v4365_v1 = vrot.slane %v4349_v13, %v11605_v11  ;;  %v4391_v2 = vcombine.high %v4329_v28, %v4329_v28 }
 0xb46   :  { %v4456_v3 = vcombine.high %v4454_v61, %v4454_v61  ;;  %v4470_v8 = vrot.slane %v4454_v61, %v11605_v11  ;;  %v4477_v21 = vrot.slane %v4455_v19, %v11605_v11  ;;  %v4485_v9 = vcombine.high %v4463_v37, %v4463_v37 }
 0xb47   :  { %v4358_v34 = vcombine.high %v4356_v50, %v4356_v50  ;;  %v4372_v32 = vrot.slane %v4356_v50, %v11605_v11  ;;  %v4379_v58 = vrot.slane %v4357_v54, %v11605_v11  ;;  %v4398_v38 = vrot.slane %v4329_v28, %v11605_v11 }
 0xb48   :  { %v4484_v39 = vrot.slane %v4456_v3, %v11605_v11  ;;  %v4486_v7 = vcombine.high %v4477_v21, %v4477_v21  ;;  %v4562_v43 = vcombine.low %v4477_v21, %v4485_v9  ;;  %v4405_v45 = vrot.slane %v4391_v2, %v11605_v11 }
 0xb49   :  { %v4386_v46 = vrot.slane %v4358_v34, %v11605_v11  ;;  %v4487_v6 = vcombine.low %v4365_v1, %v4379_v58  ;;  %v10050_v47 = vcombine.high %v4365_v1, %v4379_v58  ;;  %v4406_v29 = vcombine.high %v4398_v38, %v4398_v38 }
 0xb4a   :  { %v4608_v48 = vcombine.low %v4486_v7, %v4470_v8  ;;  %v4407_v51 = vcombine.high %v4405_v45, %v4405_v45  ;;  %v4414_v52 = vrot.slane %v4398_v38, %v11605_v11  ;;  %v4421_v40 = vrot.slane %v4405_v45, %v11605_v11 }
 0xb4b   :  { %v4489_v14 = vcombine.low %v4372_v32, %v4386_v46  ;;  %v10051_v22 = vcombine.high %v4372_v32, %v4386_v46  ;;  %v4497_v31 = vrot.slane %v4487_v6, %v11605_v11  ;;  %v4504_v49 = vrot.slane %v10050_v47, %v11605_v11 }
 0xb4c   :  { %v4428_v53 = vrot.slane %v4406_v29, %v11605_v11  ;;  %v4435_v0 = vrot.slane %v4407_v51, %v11605_v11  ;;  %v4436_v35 = vcombine.high %v4414_v52, %v4414_v52  ;;  %v4437_v30 = vcombine.high %v4421_v40, %v4421_v40 }
 0xb4d   :  { %v4615_v55 = vrot.slane %v4608_v48, %v11605_v11  ;;  %v4622_v15 = vrot.slane %v4484_v39, %v11605_v11  ;;  %v4511_v16 = vrot.slane %v4489_v14, %v11605_v11  ;;  %v4518_v12 = vrot.slane %v10051_v22, %v11605_v11 }
 0xb4e   :  { %v4438_v27 = vcombine.high %v4428_v53, %v4428_v53  ;;  %v4439_v60 = vcombine.high %v4435_v0, %v4435_v0  ;;  %v4536_v44 = vcombine.low %v4414_v52, %v4428_v53  ;;  %v4560_v23 = vcombine.low %v4435_v0, %v4437_v30  ;;  %v10488_v0 = vld [vmem:[#allocation8 + $0x10] sm:$0xff]  }
 0xb4f   :  { %v4623_v20 = vcombine.low %v4615_v55, %v4622_v15  ;;  %v4519_v25 = vcombine.low %v4497_v31, %v4504_v49  ;;  %v4520_v63 = vcombine.low %v4511_v16, %v4518_v12  ;;  %v4590_v13 = vrot.slane %v4562_v43, %v11605_v11  ;;  %10326 = vmatprep.subr.bf16.mxu0 %v10488_v0 }
 0xb50   :  { %v4559_v57 = vcombine.low %v4438_v27, %v4421_v40  ;;  %v4561_v24 = vcombine.low %v4439_v60, %v4463_v37  ;;  %v4576_v41 = vrot.slane %v4560_v23, %v11605_v11  ;;  %v4543_v59 = vrot.slane %v4536_v44, %v11605_v11  ;;  %10327 = vmatpush3.bf16.msra.mxu0 %v10488_v0 }
 0xb51   :  { %v4630_v26 = vrot.slane %v4623_v20, %v11605_v11  ;;  %v4527_v62 = vrot.slane %v4519_v25, %v11605_v11  ;;  %v4534_v18 = vrot.slane %v4520_v63, %v11605_v11  ;;  %v4550_v28 = vrot.slane %v4436_v35, %v11605_v11  ;;  %v10489_v35 = vld [vmem:[#allocation8 + $0x18] sm:$0xff]  }
 0xb52   :  { %v4569_v4 = vrot.slane %v4559_v57, %v11605_v11  ;;  %v4583_v56 = vrot.slane %v4561_v24, %v11605_v11  ;;  %10328 = vmatprep.subr.bf16.mxu0 %v10489_v35  ;;  %v10052_v24 = vld [vmem:[#allocation23] ss:$0 sm:$0xff] }
 0xb53   :  { %v4638_v61 = vadd.f32 %v4630_v26, %v12169_v10  ;;  %v4535_v19 = vcombine.low %v4527_v62, %v4534_v18  ;;  %v4551_v54 = vcombine.low %v4543_v59, %v4550_v28  ;;  %v10053_v59 = vld [vmem:[#allocation24] ss:$0 sm:$0xff] }
 0xb54   :  { %v4591_v37 = vcombine.low %v4569_v4, %v4576_v41  ;;  %v4592_v50 = vcombine.low %v4583_v56, %v4590_v13  ;;  %10329 = vmatpush3.bf16.msra.mxu0 %v10489_v35 }
 0xb55   :  { %v4650_v1 = vsel %vm2983_vm7, %v4638_v61, 0.0  ;;  %v4635_v2 = vadd.f32 %v4535_v19, %v12181_v5  ;;  %v4558_v34 = vrot.slane %v4551_v54, %v11605_v11  ;;  %10334 = vmatprep.subr.bf16.mxu0 %v11145_v33 }
 0xb56   :  { %4651 = vadd.xlane.f32.xlu1 %v4650_v1  ;;  %v4599_v3 = vrot.slane %v4591_v37, %v11605_v11  ;;  %v4606_v8 = vrot.slane %v4592_v50, %v11605_v11 }
 0xb57   :  { %v4641_v21 = vsel %vm731_vm0, %v4635_v2, 0.0  ;;  %v4636_v58 = vadd.f32 %v4558_v34, %v12179_v36 }
 0xb58   :  { %v4607_v9 = vcombine.low %v4599_v3, %v4606_v8 }
 0xb59   :  { %v4644_v5 = vsel %vm2983_vm7, %v4636_v58, 0.0 }
 0xb5a   :  { %4642 = vadd.xlane.f32.xlu1 %v4641_v21  ;;  %v4637_v10 = vadd.f32 %v4607_v9, %v12173_v17 }
 0xb5c   :  { %v4647_v32 = vsel %vm731_vm0, %v4637_v10, 0.0 }
 0xb5d   :  { %4648 = vadd.xlane.f32.xlu0 %v4647_v32 }
 0xb61   :  { %4645 = vadd.xlane.f32.xlu0 %v4644_v5 }
 0xbe3   :  { %v4652_v38 = vpop.xlane.xlu1 %4651 }
 0xbe4   :  { %v4656_v39 = vmul.f32 0.03125, %v4652_v38 }
 0xbe6   :  { %v4660_v7 = vsub.f32 %v4638_v61, %v4656_v39 }
 0xbe7   :  { %v4643_v43 = vpop.xlane.xlu1 %4642 }
 0xbe8   :  { %v4653_v45 = vmul.f32 0.03125, %v4643_v43  ;;  %v4664_v46 = vmul.f32 %v4660_v7, %v4660_v7 }
 0xbea   :  { %v4657_v6 = vsub.f32 %v4635_v2, %v4653_v45  ;;  %v4649_v47 = vpop.xlane.xlu0 %4648  ;;  %v4674_v29 = vsel %vm2983_vm7, %v4664_v46, 0.0 }
 0xbeb   :  { %v4655_v48 = vmul.f32 0.03125, %v4649_v47  ;;  %4675 = vadd.xlane.f32.xlu1 %v4674_v29 }
 0xbec   :  { %v4661_v17 = vmul.f32 %v4657_v6, %v4657_v6 }
 0xbed   :  { %v4659_v51 = vsub.f32 %v4637_v10, %v4655_v48 }
 0xbee   :  { %v4646_v52 = vpop.xlane.xlu0 %4645  ;;  %v4665_v36 = vsel %vm731_vm0, %v4661_v17, 0.0 }
 0xbef   :  { %v4654_v40 = vmul.f32 0.03125, %v4646_v52  ;;  %4666 = vadd.xlane.f32.xlu1 %v4665_v36  ;;  %v4663_v14 = vmul.f32 %v4659_v51, %v4659_v51 }
 0xbf1   :  { %v4658_v22 = vsub.f32 %v4636_v58, %v4654_v40  ;;  %v4671_v31 = vsel %vm731_vm0, %v4663_v14, 0.0 }
 0xbf2   :  { %4672 = vadd.xlane.f32.xlu0 %v4671_v31 }
 0xbf3   :  { %v4662_v49 = vmul.f32 %v4658_v22, %v4658_v22 }
 0xbf5   :  { %v4668_v53 = vsel %vm2983_vm7, %v4662_v49, 0.0 }
 0xbf6   :  { %4669 = vadd.xlane.f32.xlu0 %v4668_v53 }
 0xc78   :  { %v4676_v30 = vpop.xlane.xlu1 %4675 }
 0xc79   :  { %v4680_v55 = vmul.f32 0.03125, %v4676_v30 }
 0xc7b   :  { %v4684_v15 = vadd.f32 1e-05, %v4680_v55 }
 0xc7c   :  { %v4667_v16 = vpop.xlane.xlu1 %4666 }
 0xc7d   :  { %10544 = vrsqrt.f32 %v4684_v15  ;;  %v4677_v12 = vmul.f32 0.03125, %v4667_v16 }
 0xc7f   :  { %v4681_v27 = vadd.f32 1e-05, %v4677_v12  ;;  %v4673_v60 = vpop.xlane.xlu0 %4672 }
 0xc80   :  { %v4679_v44 = vmul.f32 0.03125, %v4673_v60 }
 0xc81   :  { %10546 = vrsqrt.f32 %v4681_v27 }
 0xc82   :  { %v4683_v23 = vadd.f32 1e-05, %v4679_v44 }
 0xc83   :  { %v4670_v20 = vpop.xlane.xlu0 %4669 }
 0xc84   :  { %10548 = vrsqrt.f32 %v4683_v23  ;;  %v4678_v25 = vmul.f32 0.03125, %v4670_v20 }
 0xc86   :  { %v4682_v63 = vadd.f32 1e-05, %v4678_v25 }
 0xc87   :  { %v10545_v57 = vpop.eup %10544 }
 0xc88   :  { %v4692_v41 = vmul.f32 %v10545_v57, %v4660_v7  ;;  %10550 = vrsqrt.f32 %v4682_v63 }
 0xc8a   :  { %v4702_v26 = vmul.f32 %v10052_v24, %v4692_v41 }
 0xc8b   :  { %v10547_v62 = vpop.eup %10546 }
 0xc8c   :  { %v12366_v18 = vadd.f32 %v10053_v59, %v4702_v26  ;;  %v4689_v56 = vmul.f32 %v10547_v62, %v4657_v6 }
 0xc8e   :  { %v10549_v4 = vpop.eup %10548  ;;  %v10056_v28 = vpack.c.bf16 %v12366_v18, %v12366_v18  ;;  %v4699_v37 = vmul.f32 %v10052_v24, %v4689_v56 }
 0xc8f   :  { %v4691_v13 = vmul.f32 %v10549_v4, %v4659_v51 }
 0xc90   :  { %v4790_v1 = vrot.slane %v10056_v28, %v11605_v11  ;;  %v12375_v8 = vadd.f32 %v10053_v59, %v4699_v37 }
 0xc91   :  { %v4701_v61 = vmul.f32 %v10052_v24, %v4691_v13  ;;  %v10054_v13 = vld [vmem:[#allocation9 + $0x1] ss:$0 sm:$0xff] }
 0xc92   :  { %v10551_v19 = vpop.eup %10550  ;;  %v4792_v34 = vcombine.high %v4790_v1, %v4790_v1  ;;  %v4806_v38 = vrot.slane %v4790_v1, %v11605_v11  ;;  %v4845_v28 = vcombine.high %v10054_v13, %v10054_v13 }
 0xc93   :  { %v12370_v50 = vadd.f32 %v10053_v59, %v4701_v61  ;;  %v4690_v54 = vmul.f32 %v10551_v19, %v4658_v22  ;;  %v4852_v19 = vrot.slane %v10054_v13, %v11605_v11 }
 0xc94   :  { %v4820_v29 = vrot.slane %v4792_v34, %v11605_v11  ;;  %v4843_v52 = vunpack.i.h.s16 %v4806_v38  ;;  %v4859_v61 = vrot.slane %v4845_v28, %v11605_v11 }
 0xc95   :  { %v4714_v2 = vpack.c.bf16 %v12366_v18, %v12370_v50  ;;  %v4700_v3 = vmul.f32 %v10052_v24, %v4690_v54  ;;  %v4860_v54 = vcombine.high %v4852_v19, %v4852_v19 }
 0xc96   :  { %v10062_v12 = vpack.i.b16 %v4820_v29, %v4843_v52  ;;  %v4861_v37 = vcombine.high %v4859_v61, %v4859_v61  ;;  %v4875_v1 = vrot.slane %v4859_v61, %v11605_v11 }
 0xc97   :  { %v4783_v21 = vrot.slane %v4714_v2, %v11605_v11  ;;  %v12378_v9 = vadd.f32 %v10053_v59, %v4700_v3  ;;  %v4868_v3 = vrot.slane %v4852_v19, %v11605_v11 }
 0xc98   :  { %v4968_v24 = vrot.slane %v10062_v12, %v11605_v11  ;;  %v4889_v2 = vrot.slane %v4861_v37, %v11605_v11  ;;  %v4891_v34 = vcombine.high %v4875_v1, %v4875_v1 }
 0xc99   :  { %v4791_v10 = vcombine.high %v4783_v21, %v4783_v21  ;;  %v4713_v32 = vpack.c.bf16 %v12378_v9, %v12375_v8  ;;  %v10055_v58 = vpack.c.bf16 %v12378_v9, %v12378_v9  ;;  %v4799_v5 = vrot.slane %v4783_v21, %v11605_v11 }
 0xc9a   :  { %v4882_v21 = vrot.slane %v4860_v54, %v11605_v11 }
 0xc9b   :  { %v4736_v39 = vrot.slane %v4713_v32, %v11605_v11  ;;  %v4743_v7 = vrot.slane %v10055_v58, %v11605_v11  ;;  %v4813_v43 = vrot.slane %v4791_v10, %v11605_v11  ;;  %v4821_v45 = vcombine.high %v4799_v5, %v4799_v5 }
 0xc9c   :  { %v4835_v46 = vunpack.i.h.s16 %v4799_v5  ;;  %v4893_v10 = vcombine.high %v4889_v2, %v4889_v2  ;;  %v4890_v32 = vcombine.high %v4868_v3, %v4868_v3  ;;  %v4892_v58 = vcombine.high %v4882_v21, %v4882_v21 }
 0xc9d   :  { %v4744_v6 = vcombine.high %v4736_v39, %v4736_v39  ;;  %v4745_v47 = vcombine.high %v4743_v7, %v4743_v7  ;;  %v4837_v48 = vunpack.i.h.s16 %v4813_v43  ;;  %v4839_v17 = vunpack.i.h.s16 %v4821_v45 }
 0xc9e   :  { %v4822_v51 = vcombine.high %v4813_v43, %v4813_v43  ;;  %v4752_v36 = vrot.slane %v4736_v39, %v11605_v11  ;;  %v10058_v22 = vpack.i.b16 %v4813_v43, %v4835_v46  ;;  %v4759_v53 = vrot.slane %v4743_v7, %v11605_v11 }
 0xc9f   :  { %v4766_v40 = vrot.slane %v4744_v6, %v11605_v11  ;;  %v4773_v14 = vrot.slane %v4745_v47, %v11605_v11  ;;  %v10059_v31 = vpack.i.b16 %v4821_v45, %v4837_v48  ;;  %v4989_v39 = vcombine.low %v4868_v3, %v4882_v21 }
 0xca0   :  { %v4841_v49 = vunpack.i.h.s16 %v4822_v51  ;;  %v10060_v15 = vpack.i.b16 %v4822_v51, %v4839_v17  ;;  %v10066_v7 = vcombine.high %v4868_v3, %v4882_v21  ;;  %v4991_v43 = vcombine.low %v4875_v1, %v4889_v2 }
 0xca1   :  { %v10057_v0 = vpack.i.b16 %v4799_v5, %v4773_v14  ;;  %v4905_v35 = vcombine.low %v4752_v36, %v4766_v40  ;;  %v10063_v30 = vcombine.high %v4752_v36, %v4766_v40  ;;  %v4908_v55 = vcombine.low %v10058_v22, %v10059_v31 }
 0xca2   :  { %v10061_v16 = vpack.i.b16 %v4806_v38, %v4841_v49  ;;  %v5079_v5 = vcombine.low %v4889_v2, %v4891_v34  ;;  %v5080_v38 = vcombine.low %v4893_v10, %v4868_v3  ;;  %v10067_v45 = vcombine.high %v4875_v1, %v4889_v2 }
 0xca3   :  { %v4907_v27 = vcombine.low %v4759_v53, %v10057_v0  ;;  %v4915_v60 = vrot.slane %v4905_v35, %v11605_v11  ;;  %v4922_v44 = vrot.slane %v10063_v30, %v11605_v11  ;;  %v4936_v25 = vrot.slane %v4908_v55, %v11605_v11 }
 0xca4   :  { %v4954_v23 = vcombine.low %v10060_v15, %v10061_v16  ;;  %v5039_v46 = vcombine.low %v4882_v21, %v4890_v32  ;;  %v5038_v6 = vcombine.low %v4890_v32, %v4868_v3  ;;  %v5040_v47 = vcombine.low %v4892_v58, %v4875_v1 }
 0xca5   :  { %v4929_v20 = vrot.slane %v4907_v27, %v11605_v11  ;;  %v4937_v63 = vcombine.low %v4915_v60, %v4922_v44  ;;  %v5087_v29 = vrot.slane %v5079_v5, %v11605_v11  ;;  %v5094_v48 = vrot.slane %v5080_v38, %v11605_v11 }
 0xca6   :  { %v4961_v57 = vrot.slane %v4954_v23, %v11605_v11  ;;  %v4999_v17 = vrot.slane %v4989_v39, %v11605_v11  ;;  %v5006_v51 = vrot.slane %v10066_v7, %v11605_v11  ;;  %v5013_v52 = vrot.slane %v4991_v43, %v11605_v11 }
 0xca7   :  { %v4938_v41 = vcombine.low %v4929_v20, %v4936_v25  ;;  %v4945_v26 = vrot.slane %v4937_v63, %v11605_v11  ;;  %v5020_v36 = vrot.slane %v10067_v45, %v11605_v11  ;;  %v5054_v40 = vrot.slane %v5039_v46, %v11605_v11 }
 0xca8   :  { %v4969_v59 = vcombine.low %v4961_v57, %v4968_v24  ;;  %v5047_v14 = vrot.slane %v5038_v6, %v11605_v11  ;;  %v5061_v22 = vrot.slane %v5040_v47, %v11605_v11  ;;  %v5095_v31 = vcombine.low %v5087_v29, %v5094_v48 }
 0xca9   :  { %v4952_v62 = vrot.slane %v4938_v41, %v11605_v11  ;;  %v5021_v49 = vcombine.low %v4999_v17, %v5006_v51  ;;  %v5022_v53 = vcombine.low %v5013_v52, %v5020_v36  ;;  %v5109_v55 = vrot.slane %v5054_v40, %v11605_v11 }
 0xcaa   :  { %v4976_v56 = vrot.slane %v4969_v59, %v11605_v11  ;;  %v5062_v0 = vcombine.low %v4999_v17, %v5047_v14  ;;  %v5063_v35 = vcombine.low %v5054_v40, %v5061_v22  ;;  %v5102_v30 = vrot.slane %v5095_v31, %v11605_v11 }
 0xcab   :  { %v4953_v4 = vcombine.low %v4945_v26, %v4952_v62  ;;  %v5029_v15 = vrot.slane %v5021_v49, %v11605_v11  ;;  %v5036_v16 = vrot.slane %v5022_v53, %v11605_v11 }
 0xcac   :  { %v5070_v12 = vrot.slane %v5062_v0, %v11605_v11  ;;  %v5077_v27 = vrot.slane %v5063_v35, %v11605_v11  ;;  %v5110_v60 = vcombine.low %v5102_v30, %v5109_v55 }
 0xcad   :  { %10330 = vmatprep.mubr.msk.bf16.mxu0 %vm731_vm0, %v4953_v4  ;;  %v5037_v44 = vcombine.low %v5029_v15, %v5036_v16 }
 0xcae   :  { %10331 = vmatmul.mubr.msk.bf16.vlgmr.msra.gmra.mrb[24].mxu0 %vm731_vm0, %v4976_v56  ;;  %v5078_v20 = vcombine.low %v5070_v12, %v5077_v27 }
 0xcaf   :  { %10336 = vmatprep.mubr.msk.bf16.mxu0 %vm11146_vm1, %v11145_v33 }
 0xd81   :  { %v10332_v23 = vpop.f32.mrb[24].mxu0 }
 0xd82   :  { %v5163_v25 = vadd.f32 %v10332_v23, %v5110_v60  ;;  %v5154_v63 = vpop.f32.mrb[25].mxu0 }
 0xd83   :  { %v5155_v57 = vadd.f32 %v5154_v63, %v5037_v44  ;;  %v10333_v24 = vpop.f32.mrb[26].mxu0 }
 0xd84   :  { %v5269_v41 = vcombine.high %v5163_v25, %v5163_v25  ;;  %v5276_v59 = vrot.slane %v5163_v25, %v11605_v11  ;;  %v5157_v26 = vpop.f32.mrb[27].mxu0 }
 0xd85   :  { %v5171_v62 = vcombine.high %v5155_v57, %v5155_v57  ;;  %v5178_v4 = vrot.slane %v5155_v57, %v11605_v11  ;;  %v5158_v56 = vadd.f32 %v5157_v26, %v5078_v20 }
 0xd86   :  { %v12431_v13 = vrot.slane %v5269_v41, %v11605_v11  ;;  %v5284_v28 = vcombine.high %v5276_v59, %v5276_v59  ;;  %v12434_v61 = vrot.slane %v5276_v59, %v11605_v11 }
 0xd87   :  { %v5185_v19 = vrot.slane %v5171_v62, %v11605_v11  ;;  %v5186_v37 = vcombine.high %v5178_v4, %v5178_v4  ;;  %v12438_v54 = vrot.slane %v5178_v4, %v11605_v11  ;;  %v5220_v1 = vcombine.high %v5158_v56, %v5158_v56 }
 0xd88   :  { %v5306_v2 = vrot.slane %v5284_v28, %v11605_v11  ;;  %v5227_v3 = vrot.slane %v5158_v56, %v11605_v11  ;;  %5370 = vrot.lane.b32.xlu0 %v12434_v61, %s11144_s19  ;;  %v5314_v21 = vcombine.high %v12434_v61, %v12434_v61  ;;  %v12448_v34 = vrot.slane %v12431_v13, %v11605_v11 }
 0xd89   :  { %v5187_v10 = vcombine.high %v5185_v19, %v5185_v19  ;;  %v12451_v32 = vrot.slane %v5185_v19, %v11605_v11  ;;  %v12454_v58 = vrot.slane %v5186_v37, %v11605_v11  ;;  %v5404_v5 = vmul.f32 0.25, %v12438_v54  ;;  %5338 = vrot.lane.b32.xlu1 %v12438_v54, %s11144_s19 }
 0xd8a   :  { %v5234_v38 = vrot.slane %v5220_v1, %v11605_v11  ;;  %v5235_v39 = vcombine.high %v5227_v3, %v5227_v3  ;;  %v12461_v7 = vrot.slane %v5227_v3, %v11605_v11  ;;  %v5421_v43 = vmul.f32 0.25, %v5306_v2 }
 0xd8b   :  { %v12464_v45 = vrot.slane %v5187_v10, %v11605_v11  ;;  %v5422_v46 = vmul.f32 0.25, %v5314_v21  ;;  %v5867_v6 = vcombine.low %v5306_v2, %v5314_v21  ;;  %v5424_v47 = vmul.f32 0.25, %v12448_v34 }
 0xd8c   :  { %v5236_v29 = vcombine.high %v5234_v38, %v5234_v38  ;;  %v12468_v48 = vrot.slane %v5234_v38, %v11605_v11  ;;  %v12471_v17 = vrot.slane %v5235_v39, %v11605_v11  ;;  %v5412_v51 = vmul.f32 0.25, %v12461_v7  ;;  %5374 = vrot.lane.b32.xlu0 %v5314_v21, %s11144_s19 }
 0xd8d   :  { %v5567_v52 = vcombine.low %v5421_v43, %v5422_v46  ;;  %v12476_v36 = vrot.slane %v5867_v6, %v11605_v11  ;;  %5372 = vrot.lane.b32.xlu1 %v5306_v2, %s11144_s19  ;;  %v5216_v40 = vcombine.high %v12438_v54, %v12438_v54  ;;  %v5218_v14 = vcombine.high %v12454_v58, %v12454_v58 }
 0xd8e   :  { %v5413_v22 = vmul.f32 0.25, %v12471_v17  ;;  %v5405_v31 = vmul.f32 0.25, %v12454_v58  ;;  %v12485_v49 = vcombine.high %v5306_v2, %v5306_v2  ;;  %v12489_v53 = vcombine.high %v12471_v17, %v12471_v17 }
 0xd8f   :  { %v12492_v0 = vrot.slane %v5567_v52, %v11605_v11  ;;  %v5406_v35 = vmul.f32 0.25, %v5216_v40  ;;  %v5407_v30 = vmul.f32 0.25, %v5218_v14  ;;  %v5416_v55 = vmul.f32 0.25, %v12468_v48 }
 0xd90   :  { %v5541_v15 = vcombine.low %v5412_v51, %v5413_v22  ;;  %5378 = vrot.lane.b32.xlu0 %v12448_v34, %s11144_s19  ;;  %v5492_v16 = vcombine.low %v5404_v5, %v5405_v31  ;;  %v5423_v12 = vmul.f32 0.25, %v12485_v49  ;;  %v5913_v27 = vcombine.low %v12485_v49, %v12448_v34 }
 0xd91   :  { %5342 = vrot.lane.b32.xlu1 %v5216_v40, %s11144_s19  ;;  %v5493_v60 = vcombine.low %v5406_v35, %v5407_v30  ;;  %v5415_v44 = vmul.f32 0.25, %v12489_v53  ;;  %v5864_v23 = vcombine.low %v12489_v53, %v12468_v48  ;;  %v12506_v20 = vcombine.high %v12451_v32, %v12451_v32 }
 0xd92   :  { %v5502_v25 = vrot.slane %v5492_v16, %v11605_v11  ;;  %v5613_v63 = vcombine.low %v5423_v12, %v5424_v47  ;;  %v12511_v57 = vcombine.high %v12468_v48, %v12468_v48  ;;  %v12514_v24 = vrot.slane %v5236_v29, %v11605_v11 }
 0xd93   :  { %v5509_v41 = vrot.slane %v5493_v60, %v11605_v11  ;;  %v5564_v59 = vcombine.low %v5415_v44, %v5416_v55  ;;  %v12518_v26 = vrot.slane %v5864_v23, %v11605_v11  ;;  %v5410_v62 = vmul.f32 0.25, %v12506_v20 }
 0xd94   :  { %5340 = vrot.lane.b32.xlu0 %v12454_v58, %s11144_s19  ;;  %v5620_v4 = vrot.slane %v5613_v63, %v11605_v11  ;;  %v5418_v56 = vmul.f32 0.25, %v12511_v57  ;;  %v5417_v28 = vmul.f32 0.25, %v12514_v24  ;;  %v12528_v19 = vcombine.high %v12464_v45, %v12464_v45 }
 0xd95   :  { %5346 = vrot.lane.b32.xlu1 %v12451_v32, %s11144_s19  ;;  %v5524_v37 = vcombine.low %v5502_v25, %v5509_v41  ;;  %v12533_v1 = vrot.slane %v5564_v59, %v11605_v11  ;;  %v5408_v2 = vmul.f32 0.25, %v12451_v32  ;;  %v5409_v3 = vmul.f32 0.25, %v12464_v45 }
 0xd96   :  { %v5565_v21 = vcombine.low %v5417_v28, %v5418_v56  ;;  %v5411_v10 = vmul.f32 0.25, %v12528_v19  ;;  %v12540_v5 = vcombine.high %v12514_v24, %v12514_v24  ;;  %v5420_v38 = vmul.f32 0.25, %v12434_v61 }
 0xd97   :  { %v5532_v39 = vrot.slane %v5524_v37, %v11605_v11  ;;  %v5494_v43 = vcombine.low %v5408_v2, %v5409_v3  ;;  %v12546_v46 = vcombine.high %v12461_v7, %v12461_v7  ;;  %v5548_v6 = vrot.slane %v5541_v15, %v11605_v11 }
 0xd98   :  { %5344 = vrot.lane.b32.xlu0 %v5218_v14, %s11144_s19  ;;  %v5581_v47 = vrot.slane %v5565_v21, %v11605_v11  ;;  %v5495_v29 = vcombine.low %v5410_v62, %v5411_v10  ;;  %v5419_v51 = vmul.f32 0.25, %v12540_v5  ;;  %v5866_v52 = vcombine.low %v12540_v5, %v12434_v61 }
 0xd99   :  { %5354 = vrot.lane.b32.xlu1 %v12461_v7, %s11144_s19  ;;  %v5516_v40 = vrot.slane %v5494_v43, %v11605_v11  ;;  %v5414_v22 = vmul.f32 0.25, %v12546_v46  ;;  %v5855_v31 = vrot.slane %v12546_v46, %v11605_v11  ;;  %v5285_v14 = vcombine.high %v12431_v13, %v12431_v13 }
 0xd9a   :  { %v5523_v35 = vrot.slane %v5495_v29, %v11605_v11  ;;  %v5566_v30 = vcombine.low %v5419_v51, %v5420_v38  ;;  %v5888_v55 = vrot.slane %v5866_v52, %v11605_v11  ;;  %v5792_v61 = vcombine.low %v12438_v54, %v12454_v58 }
 0xd9b   :  { %v5555_v15 = vrot.slane %v5414_v22, %v11605_v11  ;;  %v5313_v16 = vrot.slane %v5285_v14, %v11605_v11  ;;  %v10070_v12 = vcombine.high %v12438_v54, %v12454_v58  ;;  %v5794_v60 = vcombine.low %v12451_v32, %v12464_v45 }
 0xd9c   :  { %5348 = vrot.lane.b32.xlu0 %v12464_v45, %s11144_s19  ;;  %v5525_v13 = vcombine.low %v5516_v40, %v5523_v35  ;;  %v5588_v44 = vrot.slane %v5566_v30, %v11605_v11  ;;  %v10071_v23 = vcombine.high %v12451_v32, %v12464_v45  ;;  %v5802_v25 = vrot.slane %v5792_v61, %v11605_v11 }
 0xd9d   :  { %5376 = vrot.lane.b32.xlu1 %v12485_v49, %s11144_s19  ;;  %v5556_v63 = vcombine.low %v5548_v6, %v5555_v15  ;;  %v5425_v41 = vmul.f32 0.25, %v5313_v16  ;;  %v5927_v54 = vrot.slane %v5313_v16, %v11605_v11  ;;  %v5809_v58 = vrot.slane %v10070_v12, %v11605_v11 }
 0xd9e   :  { %v5539_v59 = vrot.slane %v5525_v13, %v11605_v11  ;;  %v5597_v62 = vcombine.low %v5588_v44, %v12492_v0  ;;  %v5816_v56 = vrot.slane %v5794_v60, %v11605_v11  ;;  %v5823_v28 = vrot.slane %v10071_v23, %v11605_v11 }
 0xd9f   :  { %v5627_v32 = vrot.slane %v5425_v41, %v11605_v11  ;;  %v5824_v45 = vcombine.low %v5802_v25, %v5809_v58  ;;  %v5841_v37 = vcombine.low %v12461_v7, %v12471_v17  ;;  %v5865_v2 = vcombine.low %v12514_v24, %v12511_v57 }
 0xda0   :  { %5356 = vrot.lane.b32.xlu0 %v12471_v17, %s11144_s19  ;;  %v5825_v3 = vcombine.low %v5816_v56, %v5823_v28  ;;  %v5897_v21 = vcombine.low %v5888_v55, %v12476_v36  ;;  %v5920_v0 = vrot.slane %v5913_v27, %v11605_v11  ;;  %v5540_v10 = vcombine.low %v5532_v39, %v5539_v59 }
 0xda1   :  { %5362 = vrot.lane.b32.xlu1 %v12468_v48, %s11144_s19  ;;  %v5628_v38 = vcombine.low %v5620_v4, %v5627_v32  ;;  %v5832_v7 = vrot.slane %v5824_v45, %v11605_v11  ;;  %v5848_v43 = vrot.slane %v5841_v37, %v11605_v11  ;;  %v5881_v6 = vrot.slane %v5865_v2, %v11605_v11 }
 0xda2   :  { %v5839_v17 = vrot.slane %v5825_v3, %v11605_v11  ;;  %v5911_v36 = vrot.slane %v5897_v21, %v11605_v11  ;;  %v5928_v29 = vcombine.low %v5920_v0, %v5927_v54  ;;  %v5563_v51 = vrot.slane %v5556_v63, %v11605_v11 }
 0xda3   :  { %v5856_v34 = vcombine.low %v5848_v43, %v5855_v31  ;;  %v5896_v49 = vcombine.low %v12518_v26, %v5881_v6  ;;  %v5596_v27 = vcombine.low %v12533_v1, %v5581_v47  ;;  %v5611_v48 = vrot.slane %v5597_v62, %v11605_v11 }
 0xda4   :  { %5360 = vrot.lane.b32.xlu0 %v12489_v53, %s11144_s19  ;;  %v5840_v4 = vcombine.low %v5832_v7, %v5839_v17  ;;  %v12611_v39 = vpack.c.bf16 %v5563_v51, %v5540_v10  ;;  %v5935_v26 = vrot.slane %v5928_v29, %v11605_v11  ;;  %v5635_v53 = vrot.slane %v5628_v38, %v11605_v11 }
 0xda5   :  { %5350 = vrot.lane.b32.xlu1 %v12506_v20, %s11144_s19  ;;  %v5863_v52 = vrot.slane %v5856_v34, %v11605_v11  ;;  %v5904_v40 = vrot.slane %v5896_v49, %v11605_v11  ;;  %v5604_v22 = vrot.slane %v5596_v27, %v11605_v11 }
 0xda7   :  { %v12619_v1 = vpack.c.bf16 %v5863_v52, %v5840_v4  ;;  %v5912_v47 = vcombine.low %v5904_v40, %v5911_v36  ;;  %v5612_v31 = vcombine.low %v5604_v22, %v5611_v48 }
 0xda8   :  { %5366 = vrot.lane.b32.xlu0 %v12511_v57, %s11144_s19 }
 0xda9   :  { %5364 = vrot.lane.b32.xlu1 %v12514_v24, %s11144_s19  ;;  %v12626_v20 = vpack.c.bf16 %v5935_v26, %v5912_v47  ;;  %v12628_v14 = vpack.c.bf16 %v5635_v53, %v5612_v31 }
 0xdac   :  { %5352 = vrot.lane.b32.xlu0 %v12528_v19, %s11144_s19 }
 0xdad   :  { %5368 = vrot.lane.b32.xlu1 %v12540_v5, %s11144_s19 }
 0xdb0   :  { %5358 = vrot.lane.b32.xlu0 %v12546_v46, %s11144_s19 }
 0xdb1   :  { %5380 = vrot.lane.b32.xlu1 %v5313_v16, %s11144_s19 }
 0xdb4   :  { %6093 = vrot.lane.b32.xlu0 %v12619_v1, %s11147_s1 }
 0xdb5   :  { %6143 = vrot.lane.b32.xlu1 %v12626_v20, %s11147_s1 }
 0xdfa   :  { %v12641_v57 = vpop.permute.xlu0 %5370 }
 0xdfb   :  { %v5339_v24 = vpop.permute.xlu1 %5338  ;;  %v5442_v47 = vmul.f32 0.25, %v12641_v57 }
 0xdfc   :  { %v5426_v46 = vmul.f32 0.25, %v5339_v24 }
 0xdfe   :  { %v5375_v35 = vpop.permute.xlu0 %5374 }
 0xdff   :  { %v5444_v30 = vmul.f32 0.25, %v5375_v35  ;;  %v5373_v19 = vpop.permute.xlu1 %5372 }
 0xe00   :  { %v5443_v55 = vmul.f32 0.25, %v5373_v19  ;;  %v6011_v51 = vcombine.low %v5373_v19, %v5375_v35 }
 0xe02   :  { %v5711_v61 = vcombine.low %v5443_v55, %v5444_v30  ;;  %v5379_v5 = vpop.permute.xlu0 %5378  ;;  %v6039_v53 = vrot.slane %v6011_v51, %v11605_v11 }
 0xe03   :  { %v5343_v15 = vpop.permute.xlu1 %5342  ;;  %v5446_v32 = vmul.f32 0.25, %v5379_v5 }
 0xe04   :  { %v5428_v23 = vmul.f32 0.25, %v5343_v15  ;;  %v5739_v31 = vrot.slane %v5711_v61, %v11605_v11 }
 0xe06   :  { %v5341_v12 = vpop.permute.xlu0 %5340 }
 0xe07   :  { %v5427_v60 = vmul.f32 0.25, %v5341_v12  ;;  %v5347_v16 = vpop.permute.xlu1 %5346  ;;  %v5936_v21 = vcombine.low %v5339_v24, %v5341_v12 }
 0xe08   :  { %v5430_v59 = vmul.f32 0.25, %v5347_v16 }
 0xe09   :  { %v5636_v13 = vcombine.low %v5426_v46, %v5427_v60  ;;  %v5946_v36 = vrot.slane %v5936_v21, %v11605_v11 }
 0xe0a   :  { %v5345_v44 = vpop.permute.xlu0 %5344 }
 0xe0b   :  { %v5429_v25 = vmul.f32 0.25, %v5345_v44  ;;  %v5355_v63 = vpop.permute.xlu1 %5354  ;;  %v5646_v58 = vrot.slane %v5636_v13, %v11605_v11  ;;  %v5937_v45 = vcombine.low %v5343_v15, %v5345_v44 }
 0xe0c   :  { %v5434_v38 = vmul.f32 0.25, %v5355_v63 }
 0xe0d   :  { %v5637_v41 = vcombine.low %v5428_v23, %v5429_v25  ;;  %v5953_v6 = vrot.slane %v5937_v45, %v11605_v11 }
 0xe0e   :  { %v5349_v54 = vpop.permute.xlu0 %5348 }
 0xe0f   :  { %v5653_v62 = vrot.slane %v5637_v41, %v11605_v11  ;;  %v5431_v56 = vmul.f32 0.25, %v5349_v54  ;;  %v5377_v28 = vpop.permute.xlu1 %5376  ;;  %v5968_v48 = vcombine.low %v5946_v36, %v5953_v6  ;;  %v5938_v4 = vcombine.low %v5347_v16, %v5349_v54 }
 0xe10   :  { %v5445_v37 = vmul.f32 0.25, %v5377_v28  ;;  %v6057_v52 = vcombine.low %v5377_v28, %v5379_v5 }
 0xe11   :  { %v5668_v2 = vcombine.low %v5646_v58, %v5653_v62  ;;  %v5638_v3 = vcombine.low %v5430_v59, %v5431_v56  ;;  %v12651_v55 = vrot.slane %v5968_v48, %v11605_v11  ;;  %v5960_v35 = vrot.slane %v5938_v4, %v11605_v11 }
 0xe12   :  { %v5757_v0 = vcombine.low %v5445_v37, %v5446_v32  ;;  %v5357_v10 = vpop.permute.xlu0 %5356  ;;  %v6064_v46 = vrot.slane %v6057_v52, %v11605_v11 }
 0xe13   :  { %v5435_v7 = vmul.f32 0.25, %v5357_v10  ;;  %v5363_v43 = vpop.permute.xlu1 %5362  ;;  %v12655_v5 = vrot.slane %v5668_v2, %v11605_v11  ;;  %v5660_v12 = vrot.slane %v5638_v3, %v11605_v11  ;;  %v5985_v60 = vcombine.low %v5355_v63, %v5357_v10 }
 0xe14   :  { %v5438_v34 = vmul.f32 0.25, %v5363_v43  ;;  %v5764_v61 = vrot.slane %v5757_v0, %v11605_v11 }
 0xe15   :  { %v5685_v17 = vcombine.low %v5434_v38, %v5435_v7  ;;  %v5992_v45 = vrot.slane %v5985_v60, %v11605_v11 }
 0xe16   :  { %v5361_v29 = vpop.permute.xlu0 %5360 }
 0xe17   :  { %v5437_v49 = vmul.f32 0.25, %v5361_v29  ;;  %v5351_v27 = vpop.permute.xlu1 %5350  ;;  %v6008_v22 = vcombine.low %v5361_v29, %v5363_v43  ;;  %v5692_v32 = vrot.slane %v5685_v17, %v11605_v11 }
 0xe18   :  { %v5432_v41 = vmul.f32 0.25, %v5351_v27 }
 0xe19   :  { %v5708_v40 = vcombine.low %v5437_v49, %v5438_v34  ;;  %v6018_v16 = vrot.slane %v6008_v22, %v11605_v11 }
 0xe1a   :  { %v5367_v26 = vpop.permute.xlu0 %5366 }
 0xe1b   :  { %v5440_v24 = vmul.f32 0.25, %v5367_v26  ;;  %v5365_v30 = vpop.permute.xlu1 %5364  ;;  %v5718_v25 = vrot.slane %v5708_v40, %v11605_v11 }
 0xe1c   :  { %v5439_v19 = vmul.f32 0.25, %v5365_v30  ;;  %v6009_v15 = vcombine.low %v5365_v30, %v5367_v26 }
 0xe1e   :  { %v5709_v13 = vcombine.low %v5439_v19, %v5440_v24  ;;  %v6025_v44 = vrot.slane %v6009_v15, %v11605_v11  ;;  %v5353_v23 = vpop.permute.xlu0 %5352 }
 0xe1f   :  { %v5433_v54 = vmul.f32 0.25, %v5353_v23  ;;  %v5939_v58 = vcombine.low %v5351_v27, %v5353_v23  ;;  %v5369_v59 = vpop.permute.xlu1 %5368 }
 0xe20   :  { %v5725_v62 = vrot.slane %v5709_v13, %v11605_v11  ;;  %v6040_v56 = vcombine.low %v6018_v16, %v6025_v44  ;;  %v5441_v28 = vmul.f32 0.25, %v5369_v59  ;;  %v6010_v63 = vcombine.low %v5369_v59, %v12641_v57 }
 0xe21   :  { %v5639_v37 = vcombine.low %v5432_v41, %v5433_v54  ;;  %v5967_v2 = vrot.slane %v5939_v58, %v11605_v11 }
 0xe22   :  { %v5740_v3 = vcombine.low %v5718_v25, %v5725_v62  ;;  %v6048_v21 = vrot.slane %v6040_v56, %v11605_v11  ;;  %v5710_v0 = vcombine.low %v5441_v28, %v5442_v47  ;;  %v6032_v10 = vrot.slane %v6010_v63, %v11605_v11  ;;  %v5359_v38 = vpop.permute.xlu0 %5358  ;;  %v10608_v63 = vld [vmem:[#allocation6] sm:$0xff] }
 0xe23   :  { %v5667_v7 = vrot.slane %v5639_v37, %v11605_v11  ;;  %v5969_v43 = vcombine.low %v5960_v35, %v5967_v2  ;;  %v5436_v6 = vmul.f32 0.25, %v5359_v38  ;;  %v5999_v57 = vrot.slane %v5359_v38, %v11605_v11  ;;  %v5381_v36 = vpop.permute.xlu1 %5380 }
 0xe24   :  { %v5748_v17 = vrot.slane %v5740_v3, %v11605_v11  ;;  %v5732_v29 = vrot.slane %v5710_v0, %v11605_v11  ;;  %v6041_v51 = vcombine.low %v6032_v10, %v6039_v53  ;;  %v5447_v34 = vmul.f32 0.25, %v5381_v36 }
 0xe25   :  { %v5669_v49 = vcombine.low %v5660_v12, %v5667_v7  ;;  %v5983_v27 = vrot.slane %v5969_v43, %v11605_v11  ;;  %v5699_v48 = vrot.slane %v5436_v6, %v11605_v11  ;;  %v6000_v4 = vcombine.low %v5992_v45, %v5999_v57 }
 0xe26   :  { %v5741_v52 = vcombine.low %v5732_v29, %v5739_v31  ;;  %v6055_v40 = vrot.slane %v6041_v51, %v11605_v11  ;;  %v5771_v22 = vrot.slane %v5447_v34, %v11605_v11  ;;  %v6071_v26 = vrot.slane %v5381_v36, %v11605_v11  ;;  %v6094_v47 = vpop.permute.xlu0 %6093 }
 0xe27   :  { %v5683_v24 = vrot.slane %v5669_v49, %v11605_v11  ;;  %v5700_v30 = vcombine.low %v5692_v32, %v5699_v48  ;;  %v6007_v53 = vrot.slane %v6000_v4, %v11605_v11  ;;  %v6099_v35 = vsel %vm1713_vm2, %v6094_v47, 0  ;;  %v6144_v19 = vpop.permute.xlu1 %6143 }
 0xe28   :  { %v5755_v15 = vrot.slane %v5741_v52, %v11605_v11  ;;  %v5772_v12 = vcombine.low %v5764_v61, %v5771_v22  ;;  %v6072_v60 = vcombine.low %v6064_v46, %v6071_v26  ;;  %v6149_v31 = vsel %vm1713_vm2, %v6144_v19, 0  ;;  %10335 = vmatpush3.bf16.xpose.msra.mxu0 %v6099_v35 }
 0xe29   :  { %v5684_v16 = vcombine.low %v12655_v5, %v5683_v24  ;;  %v5707_v13 = vrot.slane %v5700_v30, %v11605_v11  ;;  %10341 = vmatpush3.bf16.xpose.msra.mxu1 %v6149_v31  ;;  %v5984_v44 = vcombine.low %v12651_v55, %v5983_v27  ;;  %v6056_v23 = vcombine.low %v6048_v21, %v6055_v40  ;;  %v10609_v21 = vld [vmem:[#allocation6 + $0x8] sm:$0x7] }
 0xe2a   :  { %v5756_v25 = vcombine.low %v5748_v17, %v5755_v15  ;;  %v5779_v41 = vrot.slane %v5772_v12, %v11605_v11  ;;  %v6079_v54 = vrot.slane %v6072_v60, %v11605_v11  ;;  %10346 = vmatprep.subr.bf16.mxu0 %v11145_v33  ;;  %10352 = vmatprep.subr.bf16.mxu1 %v11145_v33 }
 0xe2b   :  { %v5790_v46 = vpack.c.bf16 %v5707_v13, %v5684_v16  ;;  %v12691_v61 = vpack.c.bf16 %v6007_v53, %v5984_v44 }
 0xe2c   :  { %v5791_v58 = vpack.c.bf16 %v5779_v41, %v5756_v25  ;;  %v12693_v5 = vpack.c.bf16 %v6079_v54, %v6056_v23 }
 0xe2d   :  { %6193 = vrot.lane.b32.xlu0 %v12691_v61, %s11147_s1 }
 0xe2e   :  { %6243 = vrot.lane.b32.xlu1 %v12693_v5, %s11147_s1 }
 0xe2f   :  { %10337 = vmatmul.mubr.msk.bf16.vlgmr.msra.gmra.mrb[28].mxu0 %vm1713_vm2, %v12611_v39 }
 0xe30   :  { %10343 = vmatmul.mubr.msk.bf16.vlgmr.msra.gmra.mrb[24].mxu1 %vm1713_vm2, %v12628_v14  ;;  %10348 = vmatprep.mubr.msk.bf16.mxu0 %vm11146_vm1, %v11145_v33 }
 0xe31   :  { %10354 = vmatprep.mubr.msk.bf16.mxu1 %vm11146_vm1, %v11145_v33 }
 0xe9f   :  { %v6194_v55 = vpop.permute.xlu0 %6193 }
 0xea0   :  { %v6199_v59 = vsel %vm1713_vm2, %v6194_v55, 0  ;;  %v6244_v62 = vpop.permute.xlu1 %6243 }
 0xea1   :  { %v6249_v56 = vsel %vm1713_vm2, %v6244_v62, 0  ;;  %10347 = vmatpush3.bf16.xpose.msra.mxu0 %v6199_v59 }
 0xea2   :  { %10353 = vmatpush3.bf16.xpose.msra.mxu1 %v6249_v56  ;;  %10358 = vmatprep.subr.bf16.mxu0 %v11145_v33 }
 0xea3   :  { %10364 = vmatprep.subr.bf16.mxu1 %v11145_v33 }
 0xea8   :  { %10349 = vmatmul.mubr.msk.bf16.vlgmr.msra.gmra.mrb[32].mxu0 %vm1713_vm2, %v5790_v46 }
 0xea9   :  { %10355 = vmatmul.mubr.msk.bf16.vlgmr.msra.gmra.mrb[28].mxu1 %vm1713_vm2, %v5791_v58  ;;  %10360 = vmatprep.mubr.msk.bf16.mxu0 %vm11146_vm1, %v11145_v33 }
 0xeaa   :  { %10366 = vmatprep.mubr.msk.bf16.mxu1 %vm11146_vm1, %v11145_v33 }
 0xf02   :  { %v6135_v39 = vpop.f32.mrb[28].mxu0 }
 0xf03   :  { %v10338_v14 = vpop.f32.mrb[29].mxu0  ;;  %v6185_v28 = vpop.f32.mrb[24].mxu1  ;;  %v6136_v43 = vadd.f32 %v10608_v63, %v6135_v39 }
 0xf04   :  { %v6186_v32 = vadd.f32 %v10608_v63, %v6185_v28  ;;  %v6138_v45 = vpop.f32.mrb[30].mxu0  ;;  %v10344_v37 = vpop.f32.mrb[25].mxu1 }
 0xf05   :  { %v10339_v2 = vpop.f32.mrb[31].mxu0  ;;  %v6188_v3 = vpop.f32.mrb[26].mxu1  ;;  %v6139_v0 = vadd.f32 %v10609_v21, %v6138_v45  ;;  %v6292_v36 = vsel %vm1911_vm3, %v6136_v43, -inf }
 0xf06   :  { %v6189_v10 = vadd.f32 %v10609_v21, %v6188_v3  ;;  %v10345_v38 = vpop.f32.mrb[27].mxu1  ;;  %v6298_v7 = vsel %vm1911_vm3, %v6186_v32, -inf }
 0xf07   :  { %6299 = vmax.xlane.f32.xlu1 %v6298_v7  ;;  %v6295_v57 = vsel %vm1915_vm4, %v6139_v0, -inf }
 0xf08   :  { %v6301_v6 = vsel %vm1915_vm4, %v6189_v10, -inf }
 0xf09   :  { %6302 = vmax.xlane.f32.xlu0 %v6301_v6 }
 0xf0b   :  { %6296 = vmax.xlane.f32.xlu1 %v6295_v57 }
 0xf0d   :  { %6293 = vmax.xlane.f32.xlu0 %v6292_v36 }
 0xf7b   :  { %v6235_v17 = vpop.f32.mrb[32].mxu0 }
 0xf7c   :  { %v10350_v29 = vpop.f32.mrb[33].mxu0  ;;  %v6285_v51 = vpop.f32.mrb[28].mxu1  ;;  %v6236_v52 = vadd.f32 %v10608_v63, %v6235_v17 }
 0xf7d   :  { %v6286_v34 = vadd.f32 %v10608_v63, %v6285_v51  ;;  %v6238_v49 = vpop.f32.mrb[34].mxu0  ;;  %v10356_v27 = vpop.f32.mrb[29].mxu1 }
 0xf7e   :  { %v10351_v48 = vpop.f32.mrb[35].mxu0  ;;  %v6288_v4 = vpop.f32.mrb[30].mxu1  ;;  %v6239_v47 = vadd.f32 %v10609_v21, %v6238_v49  ;;  %v6304_v30 = vsel %vm1911_vm3, %v6236_v52, -inf }
 0xf7f   :  { %v6289_v40 = vadd.f32 %v10609_v21, %v6288_v4  ;;  %v10357_v22 = vpop.f32.mrb[31].mxu1  ;;  %v6310_v26 = vsel %vm1911_vm3, %v6286_v34, -inf }
 0xf80   :  { %6311 = vmax.xlane.f32.xlu0 %v6310_v26  ;;  %v6307_v53 = vsel %vm1915_vm4, %v6239_v47, -inf }
 0xf81   :  { %v6313_v24 = vsel %vm1915_vm4, %v6289_v40, -inf }
 0xf82   :  { %6314 = vmax.xlane.f32.xlu1 %v6313_v24 }
 0xf84   :  { %6305 = vmax.xlane.f32.xlu0 %v6304_v30 }
 0xf86   :  { %6308 = vmax.xlane.f32.xlu1 %v6307_v53 }
 0xf94   :  { %v6300_v19 = vpop.xlane.xlu1 %6299 }
 0xf95   :  { %v6318_v16 = vsub.f32 %v6186_v32, %v6300_v19 }
 0xf96   :  { %v6303_v35 = vpop.xlane.xlu0 %6302 }
 0xf97   :  { %6384 = vrot.lane.b32.xlu1 %v12619_v1, %s11132_s4  ;;  %v6319_v44 = vsub.f32 %v6189_v10, %v6303_v35  ;;  %v6328_v25 = vmul.f32 1.442695, %v6318_v16 }
 0xf98   :  { %v6297_v12 = vpop.xlane.xlu1 %6296 }
 0xf99   :  { %v6317_v31 = vsub.f32 %v6139_v0, %v6297_v12  ;;  %v6330_v41 = vmul.f32 1.442695, %v6319_v44 }
 0xf9a   :  { %6433 = vrot.lane.b32.xlu0 %v12626_v20, %s11132_s4  ;;  %v6294_v15 = vpop.xlane.xlu0 %6293 }
 0xf9b   :  { %v6316_v60 = vsub.f32 %v6136_v43, %v6294_v15  ;;  %v6326_v23 = vmul.f32 1.442695, %v6317_v31 }
 0xf9d   :  { %v6324_v13 = vmul.f32 1.442695, %v6316_v60 }
 0xf9f   :  { %10552 = vpow2.f32 %v6324_v13 }
 0xfa0   :  { %10554 = vpow2.f32 %v6326_v23 }
 0xfa1   :  { %10556 = vpow2.f32 %v6328_v25 }
 0xfa2   :  { %10558 = vpow2.f32 %v6330_v41 }
 0xfa9   :  { %v10553_v1 = vpop.eup %10552 }
 0xfaa   :  { %v10555_v54 = vpop.eup %10554  ;;  %v6340_v46 = vsel %vm1911_vm3, %v10553_v1, 0.0 }
 0xfab   :  { %v10557_v20 = vpop.eup %10556  ;;  %v6343_v58 = vsel %vm1915_vm4, %v10555_v54, 0.0 }
 0xfac   :  { %v10559_v55 = vpop.eup %10558  ;;  %v6346_v59 = vsel %vm1911_vm3, %v10557_v20, 0.0 }
 0xfad   :  { %v6349_v62 = vsel %vm1915_vm4, %v10559_v55, 0.0 }
 0xfb9   :  { %6341 = vadd.xlane.f32.xlu0 %v6340_v46 }
 0xfbb   :  { %6344 = vadd.xlane.f32.xlu1 %v6343_v58 }
 0xfbd   :  { %6347 = vadd.xlane.f32.xlu0 %v6346_v59 }
 0xfbf   :  { %6350 = vadd.xlane.f32.xlu1 %v6349_v62 }
0x100d   :  { %v6312_v56 = vpop.xlane.xlu0 %6311 }
0x100e   :  { %v6322_v39 = vsub.f32 %v6286_v34, %v6312_v56 }
0x100f   :  { %v6315_v14 = vpop.xlane.xlu1 %6314 }
0x1010   :  { %v6323_v63 = vsub.f32 %v6289_v40, %v6315_v14  ;;  %v6336_v45 = vmul.f32 1.442695, %v6322_v39 }
0x1011   :  { %v6306_v28 = vpop.xlane.xlu0 %6305 }
0x1012   :  { %v6320_v32 = vsub.f32 %v6236_v52, %v6306_v28  ;;  %v6338_v0 = vmul.f32 1.442695, %v6323_v63 }
0x1013   :  { %v6309_v37 = vpop.xlane.xlu1 %6308 }
0x1014   :  { %v6332_v2 = vmul.f32 1.442695, %v6320_v32  ;;  %v6321_v3 = vsub.f32 %v6239_v47, %v6309_v37 }
0x1015   :  { %v6434_v21 = vpop.permute.xlu0 %6433 }
0x1016   :  { %10560 = vpow2.f32 %v6332_v2  ;;  %v6334_v10 = vmul.f32 1.442695, %v6321_v3  ;;  %v6439_v38 = vand.u32 %v6434_v21, %v12046_v42 }
0x1017   :  { %10562 = vpow2.f32 %v6336_v45  ;;  %v6385_v7 = vpop.permute.xlu1 %6384 }
0x1018   :  { %10564 = vpow2.f32 %v6334_v10  ;;  %v6390_v43 = vand.u32 %v6385_v7, %v12046_v42  ;;  %10365 = vmatpush3.bf16.msra.mxu1 %v6439_v38 }
0x1019   :  { %10376 = vmatprep.subr.bf16.mxu1 %v11145_v33  ;;  %10566 = vpow2.f32 %v6338_v0 }
0x101a   :  { %10359 = vmatpush3.bf16.msra.mxu0 %v6390_v43  ;;  %v10490_v43 = vld [vmem:[#allocation11 + $0x10] sm:$0xff]  }
0x101b   :  { %10370 = vmatprep.subr.bf16.mxu0 %v11145_v33 }
0x1020   :  { %v10561_v6 = vpop.eup %10560 }
0x1021   :  { %v10563_v57 = vpop.eup %10562  ;;  %v6352_v36 = vsel %vm1911_vm3, %v10561_v6, 0.0 }
0x1022   :  { %v10565_v17 = vpop.eup %10564  ;;  %6353 = vadd.xlane.f32.xlu0 %v6352_v36  ;;  %v6358_v34 = vsel %vm1911_vm3, %v10563_v57, 0.0 }
0x1023   :  { %v6355_v29 = vsel %vm1915_vm4, %v10565_v17, 0.0  ;;  %v10567_v51 = vpop.eup %10566 }
0x1024   :  { %6356 = vadd.xlane.f32.xlu1 %v6355_v29  ;;  %v6361_v49 = vsel %vm1915_vm4, %v10567_v51, 0.0 }
0x1026   :  { %6359 = vadd.xlane.f32.xlu0 %v6358_v34 }
0x1028   :  { %6362 = vadd.xlane.f32.xlu1 %v6361_v49 }
0x1039   :  { %6531 = vrot.lane.b32.xlu1 %v12693_v5, %s11132_s4 }
0x103c   :  { %6482 = vrot.lane.b32.xlu0 %v12691_v61, %s11132_s4 }
0x1046   :  { %v6342_v27 = vpop.xlane.xlu0 %6341 }
0x1047   :  { %10568 = vrcp.f32 %v6342_v27 }
0x1048   :  { %v6345_v48 = vpop.xlane.xlu1 %6344 }
0x1049   :  { %10570 = vrcp.f32 %v6345_v48 }
0x104a   :  { %v6348_v4 = vpop.xlane.xlu0 %6347 }
0x104b   :  { %10572 = vrcp.f32 %v6348_v4 }
0x104c   :  { %v6351_v52 = vpop.xlane.xlu1 %6350 }
0x104d   :  { %10574 = vrcp.f32 %v6351_v52 }
0x1051   :  { %v10569_v40 = vpop.eup %10568 }
0x1052   :  { %v6372_v26 = vmul.f32 %v10569_v40, %v10553_v1 }
0x1053   :  { %v10571_v22 = vpop.eup %10570 }
0x1054   :  { %v6373_v47 = vmul.f32 %v10571_v22, %v10555_v54 }
0x1055   :  { %v10573_v24 = vpop.eup %10572 }
0x1056   :  { %v6380_v30 = vpack.c.bf16 %v6373_v47, %v6372_v26  ;;  %v6374_v35 = vmul.f32 %v10573_v24, %v10557_v20 }
0x1057   :  { %v10575_v53 = vpop.eup %10574 }
0x1058   :  { %v6375_v5 = vmul.f32 %v10575_v53, %v10559_v55  ;;  %10361 = vmatmul.mubr.msk.bf16.vlgmr.msra.gmra.mrb[36].mxu0 %vm1911_vm3, %v6380_v30 }
0x1059   :  { %10372 = vmatprep.mubr.msk.bf16.mxu0 %vm11146_vm1, %v11145_v33 }
0x105a   :  { %v6381_v61 = vpack.c.bf16 %v6375_v5, %v6374_v35 }
0x105c   :  { %10367 = vmatmul.mubr.msk.bf16.vlgmr.msra.gmra.mrb[32].mxu1 %vm1911_vm3, %v6381_v61 }
0x105d   :  { %10378 = vmatprep.mubr.msk.bf16.mxu1 %vm11146_vm1, %v11145_v33 }
0x10af   :  { %v6354_v19 = vpop.xlane.xlu0 %6353 }
0x10b0   :  { %10576 = vrcp.f32 %v6354_v19 }
0x10b1   :  { %v6357_v15 = vpop.xlane.xlu1 %6356 }
0x10b2   :  { %10578 = vrcp.f32 %v6357_v15 }
0x10b3   :  { %v6360_v12 = vpop.xlane.xlu0 %6359 }
0x10b4   :  { %10580 = vrcp.f32 %v6360_v12 }
0x10b5   :  { %v6363_v60 = vpop.xlane.xlu1 %6362 }
0x10b6   :  { %10582 = vrcp.f32 %v6363_v60 }
0x10b7   :  { %v6483_v31 = vpop.permute.xlu0 %6482 }
0x10b8   :  { %v6488_v16 = vand.u32 %v6483_v31, %v12046_v42 }
0x10b9   :  { %v6532_v13 = vpop.permute.xlu1 %6531 }
0x10ba   :  { %v10577_v44 = vpop.eup %10576  ;;  %v6537_v23 = vand.u32 %v6532_v13, %v12046_v42  ;;  %10371 = vmatpush3.bf16.msra.mxu0 %v6488_v16 }
0x10bb   :  { %v6376_v41 = vmul.f32 %v10577_v44, %v10561_v6  ;;  %v10491_v6 = vld [vmem:[#allocation11 + $0x18] sm:$0xff]   ;;  %10382 = vmatprep.subr.bf16.mxu0 %v10490_v43 }
0x10bc   :  { %v10579_v25 = vpop.eup %10578  ;;  %10377 = vmatpush3.bf16.msra.mxu1 %v6537_v23 }
0x10bd   :  { %v6377_v1 = vmul.f32 %v10579_v25, %v10565_v17 }
0x10be   :  { %v10581_v54 = vpop.eup %10580 }
0x10bf   :  { %v6382_v46 = vpack.c.bf16 %v6377_v1, %v6376_v41  ;;  %v6378_v58 = vmul.f32 %v10581_v54, %v10563_v57 }
0x10c0   :  { %v10583_v20 = vpop.eup %10582 }
0x10c1   :  { %v6379_v55 = vmul.f32 %v10583_v20, %v10567_v51  ;;  %10373 = vmatmul.mubr.msk.bf16.vlgmr.msra.gmra.mrb[40].mxu0 %vm1911_vm3, %v6382_v46 }
0x10c2   :  { %10383 = vmatpush3.bf16.msra.mxu0 %v10490_v43 }
0x10c3   :  { %v6383_v59 = vpack.c.bf16 %v6379_v55, %v6378_v58  ;;  %10384 = vmatprep.subr.bf16.mxu0 %v10491_v6 }
0x10c5   :  { %10379 = vmatmul.mubr.msk.bf16.vlgmr.msra.gmra.mrb[36].mxu1 %vm1911_vm3, %v6383_v59 }
0x10c6   :  { %10385 = vmatpush3.bf16.msra.mxu0 %v10491_v6 }
0x112b   :  { %v6426_v62 = vpop.f32.mrb[36].mxu0 }
0x112c   :  { %v10362_v56 = vpop.f32.mrb[37].mxu0 }
0x112d   :  { %v6429_v39 = vpop.f32.mrb[38].mxu0 }
0x112e   :  { %v10363_v14 = vpop.f32.mrb[39].mxu0 }
0x112f   :  { %v6475_v42 = vpop.f32.mrb[32].mxu1 }
0x1130   :  { %v10368_v28 = vpop.f32.mrb[33].mxu1 }
0x1131   :  { %v6478_v63 = vpop.f32.mrb[34].mxu1 }
0x1132   :  { %v10369_v32 = vpop.f32.mrb[35].mxu1 }
0x1194   :  { %v6524_v45 = vpop.f32.mrb[40].mxu0 }
0x1195   :  { %v10374_v37 = vpop.f32.mrb[41].mxu0 }
0x1196   :  { %v6527_v2 = vpop.f32.mrb[42].mxu0 }
0x1197   :  { %6586 = vrot.lane.b32.xlu0 %v6527_v2, %s11122_s30  ;;  %v10375_v3 = vpop.f32.mrb[43].mxu0 }
0x1198   :  { %v6573_v21 = vpop.f32.mrb[36].mxu1 }
0x1199   :  { %v10380_v0 = vpop.f32.mrb[37].mxu1 }
0x119a   :  { %v6576_v10 = vpop.f32.mrb[38].mxu1 }
0x119b   :  { %v10473_v38 = vpack.i.bf16 %v6576_v10, %v6573_v21  ;;  %v10381_v7 = vpop.f32.mrb[39].mxu1 }
0x119d   :  { %10474 = vrot.lane.b32.xlu1 %v10473_v38, %s11122_s30 }
0x11a1   :  { %6584 = vrot.lane.b32.xlu1 %v6524_v45, %s11122_s30  ;;  %s11149_s30 = smov [#allocation34]  }
0x11a2   :  { %s9933_s4 = sshll.u32 %s11149_s30, 4  ;;  %s9934_s4 = int_to_ptr.vmem [resolvable:$true] %s9933_s4 }
0x11a3   :  { %s11028_s20 = scalar_lea.vmem %s9934_s4, 32  ;;  %p11033_p13 = scmp.lt.s32.totalorder %s9934_s4, %s9934_s4 }
0x11a4   :  { %p11029_p12 = scmp.ne.s32.totalorder %s9934_s4, %s11028_s20  ;;  %p11034_p0 = scmp.lt.s32.totalorder %s11028_s20, %s11028_s20 }
0x11a6   :  { %p11035_p1 = por %p11034_p0, %p11033_p13 }
0x11a8   :  { %p11036_p2 = pnand %p11035_p1, %p11029_p12 }
0x1209   :  { %v6587_v57 = vpop.permute.xlu0 %6586 }
0x120a   :  { %v6597_v36 = vsel %vm1713_vm2, %v6429_v39, %v6587_v57 }
0x120b   :  { %v10081_v17 = vpack.c.bf16 %v6597_v36, %v6597_v36 }
0x120d   :  { %v6630_v51 = vrot.slane %v10081_v17, %v11605_v11  ;;  %v10080_v17 = vld [vmem:[#allocation12 + $0x1] ss:$0 sm:$0xff] }
0x120f   :  { %v10475_v29 = vpop.permute.xlu1 %10474  ;;  %v6632_v22 = vcombine.high %v6630_v51, %v6630_v51  ;;  %v6646_v12 = vrot.slane %v6630_v51, %v11605_v11 }
0x1210   :  { %v10477_v34 = vunpack.i.h.bf16 %v10475_v29  ;;  %v10476_v49 = vunpack.i.l.bf16 %v10475_v29  ;;  %v6732_v29 = vcombine.high %v10080_v17, %v10080_v17 }
0x1211   :  { %v6660_v19 = vrot.slane %v6632_v22, %v11605_v11 }
0x1212   :  { %v6599_v27 = vsel %vm1713_vm2, %v6478_v63, %v10477_v34  ;;  %v6598_v48 = vsel %vm1713_vm2, %v6475_v42, %v10476_v49  ;;  %v6746_v51 = vrot.slane %v6732_v29, %v11605_v11  ;;  %v6739_v34 = vrot.slane %v10080_v17, %v11605_v11 }
0x1213   :  { %v10082_v4 = vpack.c.bf16 %v6599_v27, %v6599_v27  ;;  %v6601_v52 = vpack.c.bf16 %v6599_v27, %v6598_v48  ;;  %v6585_v40 = vpop.permute.xlu1 %6584 }
0x1214   :  { %v6596_v26 = vsel %vm1713_vm2, %v6426_v62, %v6585_v40  ;;  %v6748_v49 = vcombine.high %v6746_v51, %v6746_v51  ;;  %v6747_v27 = vcombine.high %v6739_v34, %v6739_v34  ;;  %v6762_v48 = vrot.slane %v6746_v51, %v11605_v11 }
0x1215   :  { %v6677_v47 = vrot.slane %v10082_v4, %v11605_v11  ;;  %v6670_v24 = vrot.slane %v6601_v52, %v11605_v11  ;;  %v6600_v30 = vpack.c.bf16 %v6597_v36, %v6596_v26  ;;  %v6755_v52 = vrot.slane %v6739_v34, %v11605_v11 }
0x1216   :  { %v6776_v4 = vrot.slane %v6748_v49, %v11605_v11  ;;  %v6769_v40 = vrot.slane %v6747_v27, %v11605_v11  ;;  %v6778_v22 = vcombine.high %v6762_v48, %v6762_v48 }
0x1217   :  { %v6679_v53 = vcombine.high %v6677_v47, %v6677_v47  ;;  %v6693_v35 = vrot.slane %v6677_v47, %v11605_v11  ;;  %v6678_v5 = vcombine.high %v6670_v24, %v6670_v24  ;;  %v6686_v61 = vrot.slane %v6670_v24, %v11605_v11 }
0x1218   :  { %v6623_v15 = vrot.slane %v6600_v30, %v11605_v11  ;;  %v6780_v26 = vcombine.high %v6776_v4, %v6776_v4  ;;  %v6777_v47 = vcombine.high %v6755_v52, %v6755_v52  ;;  %v6779_v24 = vcombine.high %v6769_v40, %v6769_v40 }
0x1219   :  { %v6700_v60 = vrot.slane %v6678_v5, %v11605_v11  ;;  %v6708_v31 = vcombine.high %v6686_v61, %v6686_v61  ;;  %v6707_v16 = vrot.slane %v6679_v53, %v11605_v11  ;;  %v6722_v13 = vunpack.i.h.s16 %v6686_v61 }
0x121a   :  { %v10083_v44 = vpack.i.b16 %v6686_v61, %v6660_v19  ;;  %v6631_v23 = vcombine.high %v6623_v15, %v6623_v15  ;;  %v6730_v25 = vunpack.i.h.s16 %v6693_v35  ;;  %v6639_v46 = vrot.slane %v6623_v15, %v11605_v11 }
0x121b   :  { %v6709_v41 = vcombine.high %v6700_v60, %v6700_v60  ;;  %v6724_v1 = vunpack.i.h.s16 %v6700_v60  ;;  %v6726_v54 = vunpack.i.h.s16 %v6708_v31  ;;  %v10084_v59 = vpack.i.b16 %v6700_v60, %v6722_v13 }
0x121c   :  { %v6653_v20 = vrot.slane %v6631_v23, %v11605_v11  ;;  %v6794_v58 = vcombine.low %v6646_v12, %v10083_v44  ;;  %v10088_v14 = vpack.i.b16 %v6707_v16, %v6730_v25  ;;  %v6966_v30 = vcombine.low %v6776_v4, %v6778_v22 }
0x121d   :  { %v6728_v55 = vunpack.i.h.s16 %v6709_v41  ;;  %v10085_v62 = vpack.i.b16 %v6708_v31, %v6724_v1  ;;  %v10086_v42 = vpack.i.b16 %v6709_v41, %v6726_v54  ;;  %v6967_v53 = vcombine.low %v6780_v26, %v6755_v52 }
0x121e   :  { %v6792_v56 = vcombine.low %v6639_v46, %v6653_v20  ;;  %v10089_v39 = vcombine.high %v6639_v46, %v6653_v20  ;;  %v6816_v2 = vrot.slane %v6794_v58, %v11605_v11  ;;  %v6855_v38 = vrot.slane %v10088_v14, %v11605_v11 }
0x121f   :  { %v10087_v28 = vpack.i.b16 %v6693_v35, %v6728_v55  ;;  %v6795_v63 = vcombine.low %v10084_v59, %v10085_v62  ;;  %v6876_v35 = vcombine.low %v6755_v52, %v6769_v40  ;;  %v10092_v5 = vcombine.high %v6755_v52, %v6769_v40 }
0x1220   :  { %v6802_v32 = vrot.slane %v6792_v56, %v11605_v11  ;;  %v6809_v45 = vrot.slane %v10089_v39, %v11605_v11  ;;  %v6878_v61 = vcombine.low %v6762_v48, %v6776_v4  ;;  %v10093_v19 = vcombine.high %v6762_v48, %v6776_v4 }
0x1221   :  { %v6841_v37 = vcombine.low %v10086_v42, %v10087_v28  ;;  %v6823_v3 = vrot.slane %v6795_v63, %v11605_v11  ;;  %v6926_v15 = vcombine.low %v6769_v40, %v6777_v47  ;;  %v6925_v12 = vcombine.low %v6777_v47, %v6755_v52 }
0x1222   :  { %v6824_v21 = vcombine.low %v6802_v32, %v6809_v45  ;;  %v6927_v60 = vcombine.low %v6779_v24, %v6762_v48  ;;  %v6974_v31 = vrot.slane %v6966_v30, %v11605_v11  ;;  %v6981_v16 = vrot.slane %v6967_v53, %v11605_v11 }
0x1223   :  { %v6825_v0 = vcombine.low %v6816_v2, %v6823_v3  ;;  %v6848_v10 = vrot.slane %v6841_v37, %v11605_v11  ;;  %v6886_v13 = vrot.slane %v6876_v35, %v11605_v11  ;;  %v6893_v44 = vrot.slane %v10092_v5, %v11605_v11 }
0x1224   :  { %v6832_v7 = vrot.slane %v6824_v21, %v11605_v11  ;;  %v6900_v23 = vrot.slane %v6878_v61, %v11605_v11  ;;  %v6907_v25 = vrot.slane %v10093_v19, %v11605_v11  ;;  %v6941_v41 = vrot.slane %v6926_v15, %v11605_v11 }
0x1225   :  { %v6839_v43 = vrot.slane %v6825_v0, %v11605_v11  ;;  %v6856_v6 = vcombine.low %v6848_v10, %v6855_v38  ;;  %v6934_v1 = vrot.slane %v6925_v12, %v11605_v11  ;;  %v6948_v54 = vrot.slane %v6927_v60, %v11605_v11 }
0x1226   :  { %v6982_v46 = vcombine.low %v6974_v31, %v6981_v16  ;;  %v6908_v20 = vcombine.low %v6886_v13, %v6893_v44  ;;  %v6909_v58 = vcombine.low %v6900_v23, %v6907_v25  ;;  %v6996_v56 = vrot.slane %v6941_v41, %v11605_v11 }
0x1227   :  { %v6840_v57 = vcombine.low %v6832_v7, %v6839_v43  ;;  %v6863_v36 = vrot.slane %v6856_v6, %v11605_v11  ;;  %v6949_v55 = vcombine.low %v6886_v13, %v6934_v1  ;;  %v6950_v59 = vcombine.low %v6941_v41, %v6948_v54 }
0x1228   :  { %v6989_v62 = vrot.slane %v6982_v46, %v11605_v11  ;;  %v6916_v39 = vrot.slane %v6908_v20, %v11605_v11  ;;  %v6923_v14 = vrot.slane %v6909_v58, %v11605_v11 }
0x1229   :  { %10386 = vmatprep.mubr.msk.bf16.mxu0 %vm731_vm0, %v6840_v57  ;;  %v6957_v42 = vrot.slane %v6949_v55, %v11605_v11  ;;  %v6964_v28 = vrot.slane %v6950_v59, %v11605_v11 }
0x122a   :  { %10387 = vmatmul.mubr.msk.bf16.vlgmr.msra.gmra.mrb[44].mxu0 %vm731_vm0, %v6863_v36  ;;  %v6997_v63 = vcombine.low %v6989_v62, %v6996_v56  ;;  %v6924_v32 = vcombine.low %v6916_v39, %v6923_v14 }
0x122b   :  { %v6965_v37 = vcombine.low %v6957_v42, %v6964_v28 }
0x12fd   :  { %v10388_v45 = vpop.f32.mrb[44].mxu0 }
0x12fe   :  { %v7050_v2 = vadd.f32 %v10388_v45, %v6997_v63  ;;  %v7041_v3 = vpop.f32.mrb[45].mxu0 }
0x12ff   :  { %v7042_v21 = vadd.f32 %v7041_v3, %v6924_v32  ;;  %v10389_v0 = vpop.f32.mrb[46].mxu0 }
0x1300   :  { %v7156_v10 = vcombine.high %v7050_v2, %v7050_v2  ;;  %v7163_v38 = vrot.slane %v7050_v2, %v11605_v11  ;;  %v7044_v7 = vpop.f32.mrb[47].mxu0 }
0x1301   :  { %v7058_v43 = vcombine.high %v7042_v21, %v7042_v21  ;;  %v7065_v6 = vrot.slane %v7042_v21, %v11605_v11  ;;  %v7045_v57 = vadd.f32 %v7044_v7, %v6965_v37 }
0x1302   :  { %v7170_v36 = vrot.slane %v7156_v10, %v11605_v11  ;;  %v7171_v17 = vcombine.high %v7163_v38, %v7163_v38  ;;  %v7179_v29 = vrot.slane %v7163_v38, %v11605_v11 }
0x1303   :  { %v7072_v51 = vrot.slane %v7058_v43, %v11605_v11  ;;  %v7073_v34 = vcombine.high %v7065_v6, %v7065_v6  ;;  %v7107_v49 = vcombine.high %v7045_v57, %v7045_v57  ;;  %v7081_v52 = vrot.slane %v7065_v6, %v11605_v11 }
0x1304   :  { %v7172_v27 = vcombine.high %v7170_v36, %v7170_v36  ;;  %v7193_v48 = vrot.slane %v7171_v17, %v11605_v11  ;;  %v7201_v4 = vcombine.high %v7179_v29, %v7179_v29  ;;  %v7186_v40 = vrot.slane %v7170_v36, %v11605_v11 }
0x1305   :  { %v7074_v22 = vcombine.high %v7072_v51, %v7072_v51  ;;  %v7095_v26 = vrot.slane %v7073_v34, %v11605_v11  ;;  %v7114_v47 = vrot.slane %v7045_v57, %v11605_v11  ;;  %v7088_v53 = vrot.slane %v7072_v51, %v11605_v11 }
0x1306   :  { %v7200_v24 = vrot.slane %v7172_v27, %v11605_v11  ;;  %v7202_v30 = vcombine.high %v7193_v48, %v7193_v48  ;;  %v7121_v35 = vrot.slane %v7107_v49, %v11605_v11  ;;  %v7278_v12 = vcombine.low %v7193_v48, %v7201_v4 }
0x1307   :  { %v7102_v5 = vrot.slane %v7074_v22, %v11605_v11  ;;  %v7203_v61 = vcombine.low %v7081_v52, %v7095_v26  ;;  %v10096_v19 = vcombine.high %v7081_v52, %v7095_v26  ;;  %v7122_v15 = vcombine.high %v7114_v47, %v7114_v47 }
0x1308   :  { %v7324_v60 = vcombine.low %v7202_v30, %v7186_v40  ;;  %v7123_v31 = vcombine.high %v7121_v35, %v7121_v35  ;;  %v7130_v16 = vrot.slane %v7114_v47, %v11605_v11  ;;  %v7137_v41 = vrot.slane %v7121_v35, %v11605_v11 }
0x1309   :  { %v7205_v13 = vcombine.low %v7088_v53, %v7102_v5  ;;  %v10097_v44 = vcombine.high %v7088_v53, %v7102_v5  ;;  %v7213_v23 = vrot.slane %v7203_v61, %v11605_v11  ;;  %v7220_v25 = vrot.slane %v10096_v19, %v11605_v11 }
0x130a   :  { %v7144_v1 = vrot.slane %v7122_v15, %v11605_v11  ;;  %v7151_v54 = vrot.slane %v7123_v31, %v11605_v11  ;;  %v7152_v46 = vcombine.high %v7130_v16, %v7130_v16  ;;  %v7331_v55 = vrot.slane %v7324_v60, %v11605_v11 }
0x130b   :  { %v7227_v20 = vrot.slane %v7205_v13, %v11605_v11  ;;  %v7234_v58 = vrot.slane %v10097_v44, %v11605_v11  ;;  %v7338_v59 = vrot.slane %v7200_v24, %v11605_v11  ;;  %v7153_v62 = vcombine.high %v7137_v41, %v7137_v41 }
0x130c   :  { %v7154_v56 = vcombine.high %v7144_v1, %v7144_v1  ;;  %v7155_v39 = vcombine.high %v7151_v54, %v7151_v54  ;;  %v7252_v14 = vcombine.low %v7130_v16, %v7144_v1  ;;  %v7266_v42 = vrot.slane %v7152_v46, %v11605_v11  ;;  %v10492_v1 = vld [vmem:[#allocation17 + $0x10] sm:$0xff]  }
0x130d   :  { %v7339_v28 = vcombine.low %v7331_v55, %v7338_v59  ;;  %v7236_v63 = vcombine.low %v7227_v20, %v7234_v58  ;;  %v7276_v37 = vcombine.low %v7151_v54, %v7153_v62  ;;  %v7306_v3 = vrot.slane %v7278_v12, %v11605_v11  ;;  %v10493_v54 = vld [vmem:[#allocation17 + $0x18] sm:$0xff]   ;;  %10390 = vmatprep.subr.bf16.mxu1 %v10492_v1 }
0x130e   :  { %v7259_v32 = vrot.slane %v7252_v14, %v11605_v11  ;;  %v7275_v45 = vcombine.low %v7154_v56, %v7137_v41  ;;  %v7277_v2 = vcombine.low %v7155_v39, %v7179_v29  ;;  %v7235_v0 = vcombine.low %v7213_v23, %v7220_v25  ;;  %10391 = vmatpush3.bf16.msra.mxu1 %v10492_v1 }
0x130f   :  { %v7346_v21 = vrot.slane %v7339_v28, %v11605_v11  ;;  %v7292_v7 = vrot.slane %v7276_v37, %v11605_v11  ;;  %v7250_v29 = vrot.slane %v7236_v63, %v11605_v11  ;;  %10392 = vmatprep.subr.bf16.mxu1 %v10493_v54 }
0x1310   :  { %v7285_v10 = vrot.slane %v7275_v45, %v11605_v11  ;;  %v7267_v38 = vcombine.low %v7259_v32, %v7266_v42  ;;  %v7299_v43 = vrot.slane %v7277_v2, %v11605_v11  ;;  %v7243_v48 = vrot.slane %v7235_v0, %v11605_v11  ;;  %v10098_v45 = vld [vmem:[#allocation14 + $0x1] ss:$0 sm:$0xff]  ;;  %v10099_v2 = vld [vmem:[#allocation15 + $0x1] ss:$0 sm:$0xff] }
0x1311   :  { %v7354_v6 = vadd.f32 %v7346_v21, %v12366_v18 }
0x1312   :  { %v7274_v57 = vrot.slane %v7267_v38, %v11605_v11  ;;  %v7307_v36 = vcombine.low %v7285_v10, %v7292_v7  ;;  %v7308_v17 = vcombine.low %v7299_v43, %v7306_v3  ;;  %v7251_v52 = vcombine.low %v7243_v48, %v7250_v29  ;;  %10393 = vmatpush3.bf16.msra.mxu1 %v10493_v54 }
0x1313   :  { %v7368_v51 = vsel %vm2983_vm7, %v7354_v6, 0.0  ;;  %10410 = vmatprep.subr.bf16.mxu1 %v11145_v33 }
0x1314   :  { %7369 = vadd.xlane.f32.xlu1 %v7368_v51  ;;  %v7352_v34 = vadd.f32 %v7274_v57, %v12378_v9  ;;  %v7315_v49 = vrot.slane %v7307_v36, %v11605_v11  ;;  %v7322_v27 = vrot.slane %v7308_v17, %v11605_v11  ;;  %v7351_v26 = vadd.f32 %v7251_v52, %v12375_v8 }
0x1316   :  { %v7362_v4 = vsel %vm2983_vm7, %v7352_v34, 0.0  ;;  %v7323_v18 = vcombine.low %v7315_v49, %v7322_v27  ;;  %v7359_v9 = vsel %vm731_vm0, %v7351_v26, 0.0 }
0x1317   :  { %7363 = vadd.xlane.f32.xlu0 %v7362_v4 }
0x1318   :  { %v7353_v40 = vadd.f32 %v7323_v18, %v12370_v50 }
0x131a   :  { %v7365_v22 = vsel %vm731_vm0, %v7353_v40, 0.0 }
0x131b   :  { %7366 = vadd.xlane.f32.xlu0 %v7365_v22 }
0x131f   :  { %7360 = vadd.xlane.f32.xlu0 %v7359_v9 }
0x13a1   :  { %v7370_v47 = vpop.xlane.xlu1 %7369 }
0x13a2   :  { %v7374_v24 = vmul.f32 0.03125, %v7370_v47 }
0x13a4   :  { %v7378_v30 = vsub.f32 %v7354_v6, %v7374_v24  ;;  %v7364_v53 = vpop.xlane.xlu0 %7363 }
0x13a5   :  { %v7372_v5 = vmul.f32 0.03125, %v7364_v53 }
0x13a6   :  { %v7382_v35 = vmul.f32 %v7378_v30, %v7378_v30 }
0x13a7   :  { %v7376_v50 = vsub.f32 %v7352_v34, %v7372_v5 }
0x13a8   :  { %v7367_v61 = vpop.xlane.xlu0 %7366  ;;  %v7392_v19 = vsel %vm2983_vm7, %v7382_v35, 0.0 }
0x13a9   :  { %v7373_v15 = vmul.f32 0.03125, %v7367_v61  ;;  %7393 = vadd.xlane.f32.xlu0 %v7392_v19  ;;  %v7380_v44 = vmul.f32 %v7376_v50, %v7376_v50 }
0x13ab   :  { %v7377_v12 = vsub.f32 %v7353_v40, %v7373_v15  ;;  %v7386_v25 = vsel %vm2983_vm7, %v7380_v44, 0.0 }
0x13ac   :  { %v7361_v60 = vpop.xlane.xlu0 %7360 }
0x13ad   :  { %v7371_v31 = vmul.f32 0.03125, %v7361_v60  ;;  %v7381_v8 = vmul.f32 %v7377_v12, %v7377_v12 }
0x13af   :  { %v7375_v16 = vsub.f32 %v7351_v26, %v7371_v31  ;;  %v7389_v13 = vsel %vm731_vm0, %v7381_v8, 0.0 }
0x13b0   :  { %7390 = vadd.xlane.f32.xlu1 %v7389_v13 }
0x13b1   :  { %v7379_v23 = vmul.f32 %v7375_v16, %v7375_v16 }
0x13b3   :  { %v7383_v41 = vsel %vm731_vm0, %v7379_v23, 0.0 }
0x13b4   :  { %7387 = vadd.xlane.f32.xlu1 %v7386_v25  ;;  %7384 = vadd.xlane.f32.xlu0 %v7383_v41 }
0x1436   :  { %v7394_v46 = vpop.xlane.xlu0 %7393 }
0x1437   :  { %v7398_v20 = vmul.f32 0.03125, %v7394_v46 }
0x1439   :  { %v7402_v58 = vadd.f32 1e-05, %v7398_v20 }
0x143b   :  { %10584 = vrsqrt.f32 %v7402_v58 }
0x143d   :  { %v7391_v55 = vpop.xlane.xlu1 %7390 }
0x143e   :  { %v7397_v59 = vmul.f32 0.03125, %v7391_v55 }
0x1440   :  { %v7401_v62 = vadd.f32 1e-05, %v7397_v59 }
0x1441   :  { %v7388_v56 = vpop.xlane.xlu1 %7387  ;;  %v7385_v39 = vpop.xlane.xlu0 %7384 }
0x1442   :  { %10586 = vrsqrt.f32 %v7401_v62  ;;  %v7396_v14 = vmul.f32 0.03125, %v7388_v56  ;;  %v7395_v42 = vmul.f32 0.03125, %v7385_v39 }
0x1444   :  { %v7400_v28 = vadd.f32 1e-05, %v7396_v14  ;;  %v7399_v63 = vadd.f32 1e-05, %v7395_v42 }
0x1445   :  { %v10585_v32 = vpop.eup %10584 }
0x1446   :  { %v7410_v37 = vmul.f32 %v10585_v32, %v7378_v30  ;;  %10588 = vrsqrt.f32 %v7400_v28 }
0x1447   :  { %10590 = vrsqrt.f32 %v7399_v63 }
0x1448   :  { %v7420_v3 = vmul.f32 %v10098_v45, %v7410_v37 }
0x144a   :  { %v12855_v21 = vadd.f32 %v10099_v2, %v7420_v3 }
0x144c   :  { %v10587_v0 = vpop.eup %10586  ;;  %v10102_v38 = vpack.c.bf16 %v12855_v21, %v12855_v21 }
0x144d   :  { %v7409_v10 = vmul.f32 %v10587_v0, %v7377_v12 }
0x144e   :  { %v7508_v17 = vrot.slane %v10102_v38, %v11605_v11  ;;  %v10494_v38 = vld [vmem:[#allocation20 + $0x20] sm:$0xff]  }
0x144f   :  { %v7419_v7 = vmul.f32 %v10098_v45, %v7409_v10  ;;  %10398 = vmatprep.subr.bf16.mxu0 %v10494_v38 }
0x1450   :  { %v10589_v43 = vpop.eup %10588  ;;  %v7510_v18 = vcombine.high %v7508_v17, %v7508_v17  ;;  %v7524_v26 = vrot.slane %v7508_v17, %v11605_v11  ;;  %10399 = vmatpush3.bf16.msra.mxu0 %v10494_v38 }
0x1451   :  { %v10591_v6 = vpop.eup %10590  ;;  %v12859_v57 = vadd.f32 %v10099_v2, %v7419_v7  ;;  %v7408_v36 = vmul.f32 %v10589_v43, %v7376_v50  ;;  %v10495_v7 = vld [vmem:[#allocation20 + $0x28] sm:$0xff]   ;;  %v10496_v43 = vld [vmem:[#allocation20 + $0x30] sm:$0xff]  }
0x1452   :  { %v7407_v29 = vmul.f32 %v10591_v6, %v7375_v16  ;;  %v7538_v19 = vrot.slane %v7510_v18, %v11605_v11  ;;  %v7561_v15 = vunpack.i.h.s16 %v7524_v26  ;;  %10400 = vmatprep.subr.bf16.mxu0 %v10495_v7  ;;  %v10497_v6 = vld [vmem:[#allocation20 + $0x38] sm:$0xff]  }
0x1453   :  { %v7432_v51 = vpack.c.bf16 %v12855_v21, %v12859_v57  ;;  %v7418_v34 = vmul.f32 %v10098_v45, %v7408_v36  ;;  %v10100_v36 = vld [vmem:[#allocation18 + $0x1] ss:$0 sm:$0xff] }
0x1454   :  { %v7417_v49 = vmul.f32 %v10098_v45, %v7407_v29  ;;  %v10108_v54 = vpack.i.b16 %v7538_v19, %v7561_v15  ;;  %10401 = vmatpush3.bf16.msra.mxu0 %v10495_v7  ;;  %v7563_v17 = vcombine.high %v10100_v36, %v10100_v36 }
0x1455   :  { %v7501_v27 = vrot.slane %v7432_v51, %v11605_v11  ;;  %v12865_v48 = vadd.f32 %v10099_v2, %v7418_v34  ;;  %10402 = vmatprep.subr.bf16.mxu0 %v10496_v43  ;;  %v7570_v34 = vrot.slane %v10100_v36, %v11605_v11 }
0x1456   :  { %v12867_v4 = vadd.f32 %v10099_v2, %v7417_v49  ;;  %v7686_v32 = vrot.slane %v10108_v54, %v11605_v11  ;;  %v7577_v29 = vrot.slane %v7563_v17, %v11605_v11 }
0x1457   :  { %v7509_v52 = vcombine.high %v7501_v27, %v7501_v27  ;;  %v10101_v40 = vpack.c.bf16 %v12865_v48, %v12865_v48  ;;  %v7517_v22 = vrot.slane %v7501_v27, %v11605_v11  ;;  %v7578_v18 = vcombine.high %v7570_v34, %v7570_v34 }
0x1458   :  { %v7431_v9 = vpack.c.bf16 %v12865_v48, %v12867_v4  ;;  %10403 = vmatpush3.bf16.msra.mxu0 %v10496_v43  ;;  %v7579_v51 = vcombine.high %v7577_v29, %v7577_v29  ;;  %v7593_v49 = vrot.slane %v7577_v29, %v11605_v11 }
0x1459   :  { %v7461_v47 = vrot.slane %v10101_v40, %v11605_v11  ;;  %v7531_v24 = vrot.slane %v7509_v52, %v11605_v11  ;;  %v7539_v30 = vcombine.high %v7517_v22, %v7517_v22  ;;  %v7553_v53 = vunpack.i.h.s16 %v7517_v22  ;;  %10404 = vmatprep.subr.bf16.mxu0 %v10497_v6 }
0x145a   :  { %v7454_v35 = vrot.slane %v7431_v9, %v11605_v11  ;;  %v7607_v27 = vrot.slane %v7579_v51, %v11605_v11  ;;  %v7586_v52 = vrot.slane %v7570_v34, %v11605_v11  ;;  %v7609_v40 = vcombine.high %v7593_v49, %v7593_v49 }
0x145b   :  { %v7463_v5 = vcombine.high %v7461_v47, %v7461_v47  ;;  %v7555_v61 = vunpack.i.h.s16 %v7531_v24  ;;  %v7557_v12 = vunpack.i.h.s16 %v7539_v30  ;;  %v7540_v60 = vcombine.high %v7531_v24, %v7531_v24 }
0x145c   :  { %v7462_v50 = vcombine.high %v7454_v35, %v7454_v35  ;;  %v10104_v8 = vpack.i.b16 %v7531_v24, %v7553_v53  ;;  %v7470_v13 = vrot.slane %v7454_v35, %v11605_v11  ;;  %v7477_v25 = vrot.slane %v7461_v47, %v11605_v11  ;;  %10405 = vmatpush3.bf16.msra.mxu0 %v10497_v6 }
0x145d   :  { %v7491_v31 = vrot.slane %v7463_v5, %v11605_v11  ;;  %v10105_v16 = vpack.i.b16 %v7539_v30, %v7555_v61  ;;  %v7559_v23 = vunpack.i.h.s16 %v7540_v60  ;;  %v10106_v58 = vpack.i.b16 %v7540_v60, %v7557_v12 }
0x145e   :  { %v7484_v44 = vrot.slane %v7462_v50, %v11605_v11  ;;  %v7608_v9 = vcombine.high %v7586_v52, %v7586_v52  ;;  %v7797_v47 = vcombine.low %v7607_v27, %v7609_v40  ;;  %v7709_v35 = vcombine.low %v7593_v49, %v7607_v27 }
0x145f   :  { %v10103_v41 = vpack.i.b16 %v7517_v22, %v7491_v31  ;;  %v7626_v1 = vcombine.low %v10104_v8, %v10105_v16  ;;  %v10107_v55 = vpack.i.b16 %v7524_v26, %v7559_v23  ;;  %v7611_v22 = vcombine.high %v7607_v27, %v7607_v27 }
0x1460   :  { %v7623_v46 = vcombine.low %v7470_v13, %v7484_v44  ;;  %v10109_v20 = vcombine.high %v7470_v13, %v7484_v44  ;;  %v7600_v26 = vrot.slane %v7578_v18, %v11605_v11  ;;  %v10113_v5 = vcombine.high %v7593_v49, %v7607_v27 }
0x1461   :  { %v7625_v59 = vcombine.low %v7477_v25, %v10103_v41  ;;  %v7672_v39 = vcombine.low %v10106_v58, %v10107_v55  ;;  %v7654_v42 = vrot.slane %v7626_v1, %v11605_v11  ;;  %v7798_v24 = vcombine.low %v7611_v22, %v7586_v52 }
0x1462   :  { %v7633_v62 = vrot.slane %v7623_v46, %v11605_v11  ;;  %v7640_v56 = vrot.slane %v10109_v20, %v11605_v11  ;;  %v7707_v30 = vcombine.low %v7586_v52, %v7600_v26  ;;  %v10112_v53 = vcombine.high %v7586_v52, %v7600_v26 }
0x1463   :  { %v7647_v14 = vrot.slane %v7625_v59, %v11605_v11  ;;  %v7679_v63 = vrot.slane %v7672_v39, %v11605_v11  ;;  %v7610_v61 = vcombine.high %v7600_v26, %v7600_v26  ;;  %v7757_v19 = vcombine.low %v7600_v26, %v7608_v9 }
0x1464   :  { %v7655_v28 = vcombine.low %v7633_v62, %v7640_v56  ;;  %v7805_v15 = vrot.slane %v7797_v47, %v11605_v11  ;;  %v7812_v50 = vrot.slane %v7798_v24, %v11605_v11  ;;  %v7717_v12 = vrot.slane %v7707_v30, %v11605_v11 }
0x1465   :  { %v7656_v45 = vcombine.low %v7647_v14, %v7654_v42  ;;  %v7687_v37 = vcombine.low %v7679_v63, %v7686_v32  ;;  %v7724_v60 = vrot.slane %v10112_v53, %v11605_v11  ;;  %v7731_v31 = vrot.slane %v7709_v35, %v11605_v11 }
0x1466   :  { %v7663_v2 = vrot.slane %v7655_v28, %v11605_v11  ;;  %v7738_v8 = vrot.slane %v10113_v5, %v11605_v11  ;;  %v7756_v16 = vcombine.low %v7608_v9, %v7586_v52  ;;  %v7758_v13 = vcombine.low %v7610_v61, %v7593_v49 }
0x1467   :  { %v7670_v3 = vrot.slane %v7656_v45, %v11605_v11  ;;  %v7694_v10 = vrot.slane %v7687_v37, %v11605_v11  ;;  %v7772_v44 = vrot.slane %v7757_v19, %v11605_v11  ;;  %v7813_v23 = vcombine.low %v7805_v15, %v7812_v50 }
0x1468   :  { %v7739_v25 = vcombine.low %v7717_v12, %v7724_v60  ;;  %v7740_v41 = vcombine.low %v7731_v31, %v7738_v8  ;;  %v7765_v1 = vrot.slane %v7756_v16, %v11605_v11  ;;  %v7779_v54 = vrot.slane %v7758_v13, %v11605_v11 }
0x1469   :  { %v7671_v0 = vcombine.low %v7663_v2, %v7670_v3  ;;  %v7820_v46 = vrot.slane %v7813_v23, %v11605_v11  ;;  %v7827_v20 = vrot.slane %v7772_v44, %v11605_v11 }
0x146a   :  { %v7747_v58 = vrot.slane %v7739_v25, %v11605_v11  ;;  %v7754_v55 = vrot.slane %v7740_v41, %v11605_v11  ;;  %v7780_v59 = vcombine.low %v7717_v12, %v7765_v1  ;;  %v7781_v62 = vcombine.low %v7772_v44, %v7779_v54 }
0x146b   :  { %10394 = vmatprep.mubr.msk.bf16.mxu1 %vm731_vm0, %v7671_v0  ;;  %v7828_v56 = vcombine.low %v7820_v46, %v7827_v20 }
0x146c   :  { %10395 = vmatmul.mubr.msk.bf16.vlgmr.msra.gmra.mrb[40].mxu1 %vm731_vm0, %v7694_v10  ;;  %v7755_v39 = vcombine.low %v7747_v58, %v7754_v55  ;;  %v7788_v14 = vrot.slane %v7780_v59, %v11605_v11  ;;  %v7795_v42 = vrot.slane %v7781_v62, %v11605_v11 }
0x146d   :  { %10414 = vmatprep.mubr.msk.bf16.mxu1 %vm11146_vm1, %v11145_v33 }
0x146e   :  { %v7796_v0 = vcombine.low %v7788_v14, %v7795_v42 }
0x153f   :  { %v10396_v28 = vpop.f32.mrb[40].mxu1 }
0x1540   :  { %v7881_v63 = vadd.f32 %v10396_v28, %v7828_v56  ;;  %v7872_v32 = vpop.f32.mrb[41].mxu1 }
0x1541   :  { %v7873_v45 = vadd.f32 %v7872_v32, %v7755_v39  ;;  %v10397_v37 = vpop.f32.mrb[42].mxu1 }
0x1542   :  { %v7987_v2 = vcombine.high %v7881_v63, %v7881_v63  ;;  %v7994_v3 = vrot.slane %v7881_v63, %v11605_v11  ;;  %v7875_v10 = vpop.f32.mrb[43].mxu1 }
0x1543   :  { %v7889_v38 = vcombine.high %v7873_v45, %v7873_v45  ;;  %v7896_v7 = vrot.slane %v7873_v45, %v11605_v11  ;;  %v7876_v49 = vadd.f32 %v7875_v10, %v7796_v0 }
0x1544   :  { %v8001_v43 = vrot.slane %v7987_v2, %v11605_v11  ;;  %v8002_v6 = vcombine.high %v7994_v3, %v7994_v3  ;;  %v12923_v51 = vrot.slane %v7994_v3, %v11605_v11 }
0x1545   :  { %v7903_v36 = vrot.slane %v7889_v38, %v11605_v11  ;;  %v7904_v17 = vcombine.high %v7896_v7, %v7896_v7  ;;  %v7912_v29 = vrot.slane %v7896_v7, %v11605_v11  ;;  %v7938_v5 = vcombine.high %v7876_v49, %v7876_v49 }
0x1546   :  { %v8024_v34 = vrot.slane %v8002_v6, %v11605_v11  ;;  %v8003_v27 = vcombine.high %v8001_v43, %v8001_v43  ;;  %v8017_v22 = vrot.slane %v8001_v43, %v11605_v11  ;;  %v8032_v30 = vcombine.high %v12923_v51, %v12923_v51 }
0x1547   :  { %v7905_v18 = vcombine.high %v7903_v36, %v7903_v36  ;;  %v7919_v52 = vrot.slane %v7903_v36, %v11605_v11  ;;  %v7926_v40 = vrot.slane %v7904_v17, %v11605_v11  ;;  %v7934_v47 = vcombine.high %v7912_v29, %v7912_v29 }
0x1548   :  { %v8033_v26 = vcombine.high %v8024_v34, %v8024_v34  ;;  %v8031_v61 = vrot.slane %v8003_v27, %v11605_v11  ;;  %v8073_v19 = vmax.f32 %v8024_v34, 0.0  ;;  %v8076_v12 = vmax.f32 %v8017_v22, 0.0 }
0x1549   :  { %v7933_v9 = vrot.slane %v7905_v18, %v11605_v11  ;;  %v7935_v24 = vcombine.high %v7919_v52, %v7919_v52  ;;  %v7936_v35 = vcombine.high %v7926_v40, %v7926_v40  ;;  %v8057_v50 = vmax.f32 %v7926_v40, 0.0 }
0x154a   :  { %v8075_v53 = vmax.f32 %v8033_v26, 0.0  ;;  %v8056_v60 = vmax.f32 %v7912_v29, 0.0  ;;  %v8058_v31 = vmax.f32 %v7934_v47, 0.0  ;;  %v8060_v16 = vmax.f32 %v7919_v52, 0.0 }
0x154b   :  { %v7937_v15 = vcombine.high %v7933_v9, %v7933_v9  ;;  %v8059_v8 = vmax.f32 %v7936_v35, 0.0  ;;  %v8061_v13 = vmax.f32 %v7933_v9, 0.0  ;;  %v8062_v44 = vmax.f32 %v7935_v24, 0.0 }
0x154c   :  { %v8221_v25 = vcombine.low %v8075_v53, %v8076_v12  ;;  %v8100_v41 = vcombine.low %v8056_v60, %v8057_v50  ;;  %v7945_v54 = vrot.slane %v7876_v49, %v11605_v11  ;;  %v8074_v46 = vmax.f32 %v8032_v30, 0.0 }
0x154d   :  { %v8063_v23 = vmax.f32 %v7937_v15, 0.0  ;;  %v8101_v1 = vcombine.low %v8058_v31, %v8059_v8  ;;  %v8102_v20 = vcombine.low %v8060_v16, %v8061_v13  ;;  %v7952_v55 = vrot.slane %v7938_v5, %v11605_v11 }
0x154e   :  { %v8072_v59 = vmax.f32 %v12923_v51, 0.0  ;;  %v8077_v62 = vmax.f32 %v8031_v61, 0.0  ;;  %v7953_v39 = vcombine.high %v7945_v54, %v7945_v54  ;;  %v7961_v63 = vrot.slane %v7945_v54, %v11605_v11 }
0x154f   :  { %v8103_v58 = vcombine.low %v8062_v44, %v8063_v23  ;;  %v8117_v56 = vrot.slane %v8101_v1, %v11605_v11  ;;  %v8124_v14 = vrot.slane %v8102_v20, %v11605_v11  ;;  %v7954_v28 = vcombine.high %v7952_v55, %v7952_v55 }
0x1550   :  { %v8228_v32 = vrot.slane %v8221_v25, %v11605_v11  ;;  %v8110_v45 = vrot.slane %v8100_v41, %v11605_v11  ;;  %v7968_v37 = vrot.slane %v7952_v55, %v11605_v11  ;;  %v7975_v2 = vrot.slane %v7953_v39, %v11605_v11 }
0x1551   :  { %v8131_v42 = vrot.slane %v8103_v58, %v11605_v11  ;;  %v8175_v3 = vcombine.low %v8073_v19, %v8074_v46  ;;  %v7982_v10 = vrot.slane %v7954_v28, %v11605_v11  ;;  %v7983_v38 = vcombine.high %v7961_v63, %v7961_v63 }
0x1552   :  { %v8235_v7 = vrot.slane %v8077_v62, %v11605_v11  ;;  %v8132_v43 = vcombine.low %v8110_v45, %v8117_v56  ;;  %v7984_v6 = vcombine.high %v7968_v37, %v7968_v37  ;;  %v7985_v36 = vcombine.high %v7975_v2, %v7975_v2 }
0x1553   :  { %v8133_v0 = vcombine.low %v8124_v14, %v8131_v42  ;;  %v7986_v17 = vcombine.high %v7982_v10, %v7982_v10  ;;  %v8064_v29 = vmax.f32 %v7961_v63, 0.0  ;;  %v8065_v51 = vmax.f32 %v7975_v2, 0.0 }
0x1554   :  { %v8066_v34 = vmax.f32 %v7983_v38, 0.0  ;;  %v8236_v49 = vcombine.low %v8228_v32, %v8235_v7  ;;  %v8067_v27 = vmax.f32 %v7985_v36, 0.0  ;;  %v8068_v18 = vmax.f32 %v7968_v37, 0.0 }
0x1555   :  { %v8069_v52 = vmax.f32 %v7982_v10, 0.0  ;;  %v8147_v40 = vrot.slane %v8133_v0, %v11605_v11  ;;  %v8070_v22 = vmax.f32 %v7984_v6, 0.0  ;;  %v8071_v26 = vmax.f32 %v7986_v17, 0.0 }
0x1556   :  { %v8149_v9 = vcombine.low %v8064_v29, %v8065_v51  ;;  %v8140_v47 = vrot.slane %v8132_v43, %v11605_v11  ;;  %v8172_v24 = vcombine.low %v8067_v27, %v8068_v18  ;;  %v8163_v53 = vrot.slane %v8066_v34, %v11605_v11 }
0x1557   :  { %v8173_v35 = vcombine.low %v8069_v52, %v8070_v22  ;;  %v8174_v5 = vcombine.low %v8071_v26, %v8072_v59  ;;  %v8203_v61 = vrot.slane %v8175_v3, %v11605_v11  ;;  %v8243_v19 = vrot.slane %v8236_v49, %v11605_v11 }
0x1558   :  { %v8156_v30 = vrot.slane %v8149_v9, %v11605_v11  ;;  %v8182_v15 = vrot.slane %v8172_v24, %v11605_v11  ;;  %v8148_v50 = vcombine.low %v8140_v47, %v8147_v40 }
0x1559   :  { %v8189_v60 = vrot.slane %v8173_v35, %v11605_v11  ;;  %v8196_v31 = vrot.slane %v8174_v5, %v11605_v11  ;;  %v10118_v44 = vpack.c.bf16 %v8243_v19, %v8243_v19 }
0x155a   :  { %v8164_v12 = vcombine.low %v8156_v30, %v8163_v53 }
0x155b   :  { %v8204_v16 = vcombine.low %v8182_v15, %v8189_v60  ;;  %v8205_v13 = vcombine.low %v8196_v31, %v8203_v61  ;;  %v8329_v58 = vrot.slane %v10118_v44, %v11605_v11  ;;  %v10116_v31 = vld [vmem:[#allocation21 + $0x1] ss:$0 sm:$0xff] }
0x155c   :  { %v8171_v8 = vrot.slane %v8164_v12, %v11605_v11 }
0x155d   :  { %v8212_v23 = vrot.slane %v8204_v16, %v11605_v11  ;;  %v8219_v25 = vrot.slane %v8205_v13, %v11605_v11  ;;  %v8331_v42 = vcombine.high %v8329_v58, %v8329_v58  ;;  %v8345_v45 = vrot.slane %v8329_v58, %v11605_v11 }
0x155e   :  { %v8248_v41 = vpack.c.bf16 %v8171_v8, %v8148_v50  ;;  %v10117_v1 = vpack.c.bf16 %v8171_v8, %v8171_v8  ;;  %v8384_v8 = vcombine.high %v10116_v31, %v10116_v31  ;;  %v8391_v13 = vrot.slane %v10116_v31, %v11605_v11 }
0x155f   :  { %v8220_v54 = vcombine.low %v8212_v23, %v8219_v25  ;;  %v8359_v17 = vrot.slane %v8331_v42, %v11605_v11  ;;  %v8382_v51 = vunpack.i.h.s16 %v8345_v45 }
0x1560   :  { %v8275_v46 = vrot.slane %v8248_v41, %v11605_v11  ;;  %v8282_v20 = vrot.slane %v10117_v1, %v11605_v11  ;;  %v8398_v16 = vrot.slane %v8384_v8, %v11605_v11  ;;  %v8399_v23 = vcombine.high %v8391_v13, %v8391_v13 }
0x1561   :  { %v8249_v55 = vpack.c.bf16 %v8243_v19, %v8220_v54  ;;  %v10124_v9 = vpack.i.b16 %v8359_v17, %v8382_v51  ;;  %v8407_v1 = vrot.slane %v8391_v13, %v11605_v11 }
0x1562   :  { %v8283_v59 = vcombine.high %v8275_v46, %v8275_v46  ;;  %v8284_v62 = vcombine.high %v8282_v20, %v8282_v20  ;;  %v8291_v14 = vrot.slane %v8275_v46, %v11605_v11  ;;  %v8298_v37 = vrot.slane %v8282_v20, %v11605_v11 }
0x1563   :  { %v8322_v56 = vrot.slane %v8249_v55, %v11605_v11  ;;  %v8507_v61 = vrot.slane %v10124_v9, %v11605_v11  ;;  %v8400_v44 = vcombine.high %v8398_v16, %v8398_v16  ;;  %v8414_v25 = vrot.slane %v8398_v16, %v11605_v11 }
0x1564   :  { %v8305_v39 = vrot.slane %v8283_v59, %v11605_v11  ;;  %v8312_v28 = vrot.slane %v8284_v62, %v11605_v11  ;;  %v8421_v54 = vrot.slane %v8399_v23, %v11605_v11  ;;  %v8429_v58 = vcombine.high %v8407_v1, %v8407_v1 }
0x1565   :  { %v8330_v63 = vcombine.high %v8322_v56, %v8322_v56  ;;  %v8338_v32 = vrot.slane %v8322_v56, %v11605_v11  ;;  %v8428_v41 = vrot.slane %v8400_v44, %v11605_v11  ;;  %v8430_v46 = vcombine.high %v8414_v25, %v8414_v25 }
0x1566   :  { %v8444_v2 = vcombine.low %v8291_v14, %v8305_v39  ;;  %v10125_v3 = vcombine.high %v8291_v14, %v8305_v39  ;;  %v8431_v55 = vcombine.high %v8421_v54, %v8421_v54  ;;  %v8540_v56 = vcombine.low %v8407_v1, %v8421_v54 }
0x1567   :  { %v8352_v0 = vrot.slane %v8330_v63, %v11605_v11  ;;  %v8360_v10 = vcombine.high %v8338_v32, %v8338_v32  ;;  %v8374_v38 = vunpack.i.h.s16 %v8338_v32  ;;  %v10119_v7 = vpack.i.b16 %v8338_v32, %v8312_v28 }
0x1568   :  { %v8454_v27 = vrot.slane %v8444_v2, %v11605_v11  ;;  %v8461_v18 = vrot.slane %v10125_v3, %v11605_v11  ;;  %v8432_v20 = vcombine.high %v8428_v41, %v8428_v41  ;;  %v8630_v59 = vcombine.low %v8428_v41, %v8430_v46 }
0x1569   :  { %v8376_v43 = vunpack.i.h.s16 %v8352_v0  ;;  %v8446_v6 = vcombine.low %v8298_v37, %v10119_v7  ;;  %v8378_v36 = vunpack.i.h.s16 %v8360_v10  ;;  %v8361_v29 = vcombine.high %v8352_v0, %v8352_v0 }
0x156a   :  { %v10120_v34 = vpack.i.b16 %v8352_v0, %v8374_v38  ;;  %v8476_v30 = vcombine.low %v8454_v27, %v8461_v18  ;;  %v8631_v62 = vcombine.low %v8432_v20, %v8407_v1  ;;  %v10130_v39 = vcombine.high %v8407_v1, %v8421_v54 }
0x156b   :  { %v10121_v49 = vpack.i.b16 %v8360_v10, %v8376_v43  ;;  %v8380_v52 = vunpack.i.h.s16 %v8361_v29  ;;  %v10122_v22 = vpack.i.b16 %v8361_v29, %v8378_v36  ;;  %v8468_v47 = vrot.slane %v8446_v6, %v11605_v11 }
0x156c   :  { %v8484_v19 = vrot.slane %v8476_v30, %v11605_v11  ;;  %v8542_v14 = vcombine.low %v8414_v25, %v8428_v41  ;;  %v10131_v42 = vcombine.high %v8414_v25, %v8428_v41  ;;  %v8590_v28 = vcombine.low %v8421_v54, %v8429_v58 }
0x156d   :  { %v8447_v40 = vcombine.low %v10120_v34, %v10121_v49  ;;  %v10123_v26 = vpack.i.b16 %v8345_v45, %v8380_v52  ;;  %v8589_v63 = vcombine.low %v8429_v58, %v8407_v1  ;;  %v8591_v32 = vcombine.low %v8431_v55, %v8414_v25 }
0x156e   :  { %v8638_v45 = vrot.slane %v8630_v59, %v11605_v11  ;;  %v8645_v37 = vrot.slane %v8631_v62, %v11605_v11  ;;  %v8550_v2 = vrot.slane %v8540_v56, %v11605_v11  ;;  %v8557_v3 = vrot.slane %v10130_v39, %v11605_v11 }
0x156f   :  { %v8475_v24 = vrot.slane %v8447_v40, %v11605_v11  ;;  %v8493_v53 = vcombine.low %v10122_v22, %v10123_v26  ;;  %v8564_v0 = vrot.slane %v8542_v14, %v11605_v11  ;;  %v8571_v10 = vrot.slane %v10131_v42, %v11605_v11 }
0x1570   :  { %v8605_v38 = vrot.slane %v8590_v28, %v11605_v11  ;;  %v8598_v7 = vrot.slane %v8589_v63, %v11605_v11  ;;  %v8612_v43 = vrot.slane %v8591_v32, %v11605_v11  ;;  %v8646_v6 = vcombine.low %v8638_v45, %v8645_v37 }
0x1571   :  { %v8477_v35 = vcombine.low %v8468_v47, %v8475_v24  ;;  %v8500_v5 = vrot.slane %v8493_v53, %v11605_v11  ;;  %v8572_v36 = vcombine.low %v8550_v2, %v8557_v3  ;;  %v8573_v17 = vcombine.low %v8564_v0, %v8571_v10 }
0x1572   :  { %v8613_v29 = vcombine.low %v8550_v2, %v8598_v7  ;;  %v8614_v51 = vcombine.low %v8605_v38, %v8612_v43  ;;  %v8653_v34 = vrot.slane %v8646_v6, %v11605_v11  ;;  %v8660_v49 = vrot.slane %v8605_v38, %v11605_v11 }
0x1573   :  { %v8491_v15 = vrot.slane %v8477_v35, %v11605_v11  ;;  %v8508_v50 = vcombine.low %v8500_v5, %v8507_v61  ;;  %v8580_v27 = vrot.slane %v8572_v36, %v11605_v11  ;;  %v8587_v18 = vrot.slane %v8573_v17, %v11605_v11 }
0x1574   :  { %v8621_v52 = vrot.slane %v8613_v29, %v11605_v11  ;;  %v8628_v40 = vrot.slane %v8614_v51, %v11605_v11  ;;  %v8661_v22 = vcombine.low %v8653_v34, %v8660_v49 }
0x1575   :  { %v8492_v12 = vcombine.low %v8484_v19, %v8491_v15  ;;  %v8515_v60 = vrot.slane %v8508_v50, %v11605_v11  ;;  %v8588_v26 = vcombine.low %v8580_v27, %v8587_v18 }
0x1576   :  { %v8629_v47 = vcombine.low %v8621_v52, %v8628_v40 }
0x1577   :  { %10406 = vmatprep.mubr.msk.bf16.mxu0 %vm4284_vm8, %v8492_v12 }
0x1578   :  { %10407 = vmatmul.mubr.msk.bf16.vlgmr.msra.gmra.mrb[48].mxu0 %vm4284_vm8, %v8515_v60 }
0x164b   :  { %v10408_v9 = vpop.f32.mrb[48].mxu0 }
0x164c   :  { %v8714_v24 = vadd.f32 %v10408_v9, %v8661_v22  ;;  %v8705_v30 = vpop.f32.mrb[49].mxu0 }
0x164d   :  { %v8706_v53 = vadd.f32 %v8705_v30, %v8588_v26  ;;  %v10409_v35 = vpop.f32.mrb[50].mxu0 }
0x164e   :  { %v8820_v5 = vcombine.high %v8714_v24, %v8714_v24  ;;  %v8827_v61 = vrot.slane %v8714_v24, %v11605_v11  ;;  %v8708_v19 = vpop.f32.mrb[51].mxu0 }
0x164f   :  { %v8722_v15 = vcombine.high %v8706_v53, %v8706_v53  ;;  %v8729_v50 = vrot.slane %v8706_v53, %v11605_v11  ;;  %v8709_v12 = vadd.f32 %v8708_v19, %v8629_v47 }
0x1650   :  { %v8834_v60 = vrot.slane %v8820_v5, %v11605_v11  ;;  %v8835_v31 = vcombine.high %v8827_v61, %v8827_v61  ;;  %v8843_v8 = vrot.slane %v8827_v61, %v11605_v11 }
0x1651   :  { %v8736_v16 = vrot.slane %v8722_v15, %v11605_v11  ;;  %v8737_v13 = vcombine.high %v8729_v50, %v8729_v50  ;;  %v8771_v44 = vcombine.high %v8709_v12, %v8709_v12  ;;  %v8745_v1 = vrot.slane %v8729_v50, %v11605_v11 }
0x1652   :  { %v8836_v23 = vcombine.high %v8834_v60, %v8834_v60  ;;  %v8857_v25 = vrot.slane %v8835_v31, %v11605_v11  ;;  %v8865_v41 = vcombine.high %v8843_v8, %v8843_v8  ;;  %v8850_v54 = vrot.slane %v8834_v60, %v11605_v11 }
0x1653   :  { %v8738_v46 = vcombine.high %v8736_v16, %v8736_v16  ;;  %v8759_v20 = vrot.slane %v8737_v13, %v11605_v11  ;;  %v8778_v58 = vrot.slane %v8709_v12, %v11605_v11  ;;  %v8752_v62 = vrot.slane %v8736_v16, %v11605_v11 }
0x1654   :  { %v8864_v55 = vrot.slane %v8836_v23, %v11605_v11  ;;  %v8866_v59 = vcombine.high %v8857_v25, %v8857_v25  ;;  %v8785_v56 = vrot.slane %v8771_v44, %v11605_v11  ;;  %v8942_v63 = vcombine.low %v8857_v25, %v8865_v41 }
0x1655   :  { %v8766_v39 = vrot.slane %v8738_v46, %v11605_v11  ;;  %v8867_v14 = vcombine.low %v8745_v1, %v8759_v20  ;;  %v10134_v42 = vcombine.high %v8745_v1, %v8759_v20  ;;  %v8786_v28 = vcombine.high %v8778_v58, %v8778_v58 }
0x1656   :  { %v8988_v32 = vcombine.low %v8866_v59, %v8850_v54  ;;  %v8787_v45 = vcombine.high %v8785_v56, %v8785_v56  ;;  %v8794_v37 = vrot.slane %v8778_v58, %v11605_v11  ;;  %v8801_v38 = vrot.slane %v8785_v56, %v11605_v11 }
0x1657   :  { %v8869_v2 = vcombine.low %v8752_v62, %v8766_v39  ;;  %v10135_v3 = vcombine.high %v8752_v62, %v8766_v39  ;;  %v8877_v0 = vrot.slane %v8867_v14, %v11605_v11  ;;  %v8884_v10 = vrot.slane %v10134_v42, %v11605_v11 }
0x1658   :  { %v8808_v7 = vrot.slane %v8786_v28, %v11605_v11  ;;  %v8815_v43 = vrot.slane %v8787_v45, %v11605_v11  ;;  %v8816_v6 = vcombine.high %v8794_v37, %v8794_v37  ;;  %v8995_v51 = vrot.slane %v8988_v32, %v11605_v11  ;;  %v10498_v32 = vld [vmem:[#allocation26] sm:$0xff]   ;;  %v10499_v45 = vld [vmem:[#allocation26 + $0x8] sm:$0xff]  }
0x1659   :  { %v8891_v36 = vrot.slane %v8869_v2, %v11605_v11  ;;  %v8898_v17 = vrot.slane %v10135_v3, %v11605_v11  ;;  %v8899_v29 = vcombine.low %v8877_v0, %v8884_v10  ;;  %v8817_v34 = vcombine.high %v8801_v38, %v8801_v38  ;;  %10411 = vmatpush3.bf16.msra.mxu1 %v10498_v32 }
0x165a   :  { %v8818_v49 = vcombine.high %v8808_v7, %v8808_v7  ;;  %v8819_v27 = vcombine.high %v8815_v43, %v8815_v43  ;;  %v8916_v18 = vcombine.low %v8794_v37, %v8808_v7  ;;  %v8930_v52 = vrot.slane %v8816_v6, %v11605_v11  ;;  %10412 = vmatprep.subr.bf16.mxu1 %v11145_v33 }
0x165b   :  { %v8900_v40 = vcombine.low %v8891_v36, %v8898_v17  ;;  %v9002_v22 = vrot.slane %v8864_v55, %v11605_v11  ;;  %v8940_v47 = vcombine.low %v8815_v43, %v8817_v34  ;;  %v8970_v30 = vrot.slane %v8942_v63, %v11605_v11 }
0x165c   :  { %v8923_v26 = vrot.slane %v8916_v18, %v11605_v11  ;;  %v8939_v9 = vcombine.low %v8818_v49, %v8801_v38  ;;  %v8941_v24 = vcombine.low %v8819_v27, %v8843_v8  ;;  %v8907_v53 = vrot.slane %v8899_v29, %v11605_v11  ;;  %v10136_v49 = vld [vmem:[#allocation23 + $0x1] ss:$0 sm:$0xff] }
0x165d   :  { %v8914_v35 = vrot.slane %v8900_v40, %v11605_v11  ;;  %v9003_v5 = vcombine.low %v8995_v51, %v9002_v22  ;;  %v8956_v19 = vrot.slane %v8940_v47, %v11605_v11  ;;  %10413 = vmatpush3.bf16.msra.mxu1 %v10499_v45 }
0x165e   :  { %v8949_v61 = vrot.slane %v8939_v9, %v11605_v11  ;;  %v8963_v15 = vrot.slane %v8941_v24, %v11605_v11  ;;  %v8931_v50 = vcombine.low %v8923_v26, %v8930_v52  ;;  %10418 = vmatprep.subr.bf16.mxu1 %v11145_v33  ;;  %v10137_v52 = vld [vmem:[#allocation24 + $0x1] ss:$0 sm:$0xff] }
0x165f   :  { %v8915_v12 = vcombine.low %v8907_v53, %v8914_v35  ;;  %v9010_v20 = vrot.slane %v9003_v5, %v11605_v11 }
0x1660   :  { %v8971_v60 = vcombine.low %v8949_v61, %v8956_v19  ;;  %v8972_v31 = vcombine.low %v8963_v15, %v8970_v30  ;;  %v8938_v39 = vrot.slane %v8931_v50, %v11605_v11  ;;  %v10500_v50 = vld [vmem:[#allocation30] sm:$0xff]  }
0x1661   :  { %v9015_v16 = vadd.f32 %v8915_v12, %v12867_v4  ;;  %v9018_v62 = vadd.f32 %v9010_v20, %v12855_v21  ;;  %v10501_v12 = vld [vmem:[#allocation30 + $0x8] sm:$0xff]   ;;  %10426 = vmatprep.subr.bf16.mxu0 %v10500_v50 }
0x1662   :  { %v8979_v8 = vrot.slane %v8971_v60, %v11605_v11  ;;  %v8986_v13 = vrot.slane %v8972_v31, %v11605_v11  ;;  %v9016_v28 = vadd.f32 %v8938_v39, %v12865_v48  ;;  %10427 = vmatpush3.bf16.msra.mxu0 %v10500_v50  ;;  %v10502_v60 = vld [vmem:[#allocation29] sm:$0xff]   ;;  %v10503_v31 = vld [vmem:[#allocation29 + $0x8] sm:$0xff]  }
0x1663   :  { %v9023_v44 = vsel %vm731_vm0, %v9015_v16, 0.0  ;;  %v9032_v14 = vsel %vm2983_vm7, %v9018_v62, 0.0  ;;  %10428 = vmatprep.subr.bf16.mxu0 %v10501_v12 }
0x1664   :  { %9024 = vadd.xlane.f32.xlu1 %v9023_v44  ;;  %v8987_v23 = vcombine.low %v8979_v8, %v8986_v13  ;;  %v9026_v63 = vsel %vm2983_vm7, %v9016_v28, 0.0 }
0x1666   :  { %v9017_v25 = vadd.f32 %v8987_v23, %v12859_v57  ;;  %10429 = vmatpush3.bf16.msra.mxu0 %v10501_v12 }
0x1668   :  { %v9029_v41 = vsel %vm731_vm0, %v9017_v25, 0.0 }
0x1669   :  { %9030 = vadd.xlane.f32.xlu0 %v9029_v41 }
0x16f1   :  { %v9025_v1 = vpop.xlane.xlu1 %9024 }
0x16f2   :  { %v9035_v54 = vmul.f32 0.03125, %v9025_v1 }
0x16f4   :  { %v9039_v46 = vsub.f32 %v9015_v16, %v9035_v54 }
0x16f6   :  { %v9031_v58 = vpop.xlane.xlu0 %9030  ;;  %v9043_v4 = vmul.f32 %v9039_v46, %v9039_v46 }
0x16f7   :  { %v9037_v55 = vmul.f32 0.03125, %v9031_v58 }
0x16f8   :  { %v9047_v59 = vsel %vm731_vm0, %v9043_v4, 0.0 }
0x16f9   :  { %v9041_v56 = vsub.f32 %v9017_v25, %v9037_v55  ;;  %9048 = vadd.xlane.f32.xlu1 %v9047_v59 }
0x16fb   :  { %v9045_v57 = vmul.f32 %v9041_v56, %v9041_v56 }
0x16fd   :  { %v9053_v42 = vsel %vm731_vm0, %v9045_v57, 0.0  ;;  %9033 = vadd.xlane.f32.xlu1 %v9032_v14 }
0x16fe   :  { %9054 = vadd.xlane.f32.xlu0 %v9053_v42 }
0x1702   :  { %9027 = vadd.xlane.f32.xlu0 %v9026_v63 }
0x1786   :  { %v9049_v21 = vpop.xlane.xlu1 %9048 }
0x1787   :  { %v9059_v37 = vmul.f32 0.03125, %v9049_v21 }
0x1789   :  { %v9063_v2 = vadd.f32 1e-05, %v9059_v37 }
0x178a   :  { %v9034_v3 = vpop.xlane.xlu1 %9033 }
0x178b   :  { %10592 = vrsqrt.f32 %v9063_v2  ;;  %v9055_v0 = vpop.xlane.xlu0 %9054  ;;  %v9038_v10 = vmul.f32 0.03125, %v9034_v3 }
0x178c   :  { %v9061_v48 = vmul.f32 0.03125, %v9055_v0 }
0x178d   :  { %v9042_v38 = vsub.f32 %v9018_v62, %v9038_v10 }
0x178e   :  { %v9065_v7 = vadd.f32 1e-05, %v9061_v48 }
0x178f   :  { %v9028_v43 = vpop.xlane.xlu0 %9027  ;;  %v9046_v6 = vmul.f32 %v9042_v38, %v9042_v38 }
0x1790   :  { %10594 = vrsqrt.f32 %v9065_v7  ;;  %v9036_v36 = vmul.f32 0.03125, %v9028_v43 }
0x1791   :  { %v9056_v17 = vsel %vm2983_vm7, %v9046_v6, 0.0 }
0x1792   :  { %v9040_v29 = vsub.f32 %v9016_v28, %v9036_v36  ;;  %9057 = vadd.xlane.f32.xlu1 %v9056_v17 }
0x1794   :  { %v9044_v51 = vmul.f32 %v9040_v29, %v9040_v29 }
0x1795   :  { %v10593_v34 = vpop.eup %10592 }
0x1796   :  { %v9071_v27 = vmul.f32 %v10593_v34, %v9039_v46  ;;  %v9050_v18 = vsel %vm2983_vm7, %v9044_v51, 0.0 }
0x1797   :  { %9051 = vadd.xlane.f32.xlu0 %v9050_v18 }
0x1798   :  { %v9081_v40 = vmul.f32 %v10136_v49, %v9071_v27 }
0x179a   :  { %v10595_v22 = vpop.eup %10594  ;;  %v9091_v26 = vadd.f32 %v10137_v52, %v9081_v40 }
0x179b   :  { %v9073_v9 = vmul.f32 %v10595_v22, %v9041_v56 }
0x179c   :  { %v9095_v47 = vpack.c.bf16 %v9091_v26, %v9091_v26 }
0x179d   :  { %v9083_v24 = vmul.f32 %v10136_v49, %v9073_v9 }
0x179e   :  { %v9110_v53 = vunpack.c.l.b16 %v9095_v47 }
0x179f   :  { %v9093_v30 = vadd.f32 %v10137_v52, %v9083_v24 }
0x17a0   :  { %v9112_v61 = vrot.slane %v9110_v53, 1 }
0x17a1   :  { %v9096_v35 = vpack.c.bf16 %v9093_v30, %v9093_v30 }
0x17a3   :  { %v9111_v5 = vunpack.c.l.b16 %v9096_v35 }
0x17a5   :  { %v9114_v19 = vsel %vm9113_vm9, %v9111_v5, %v9112_v61 }
0x17a6   :  { %v9115_v15 = vpack.c.b16 %v9114_v19, %v9114_v19 }
0x17a8   :  { %10415 = vmatmul.mubr.msk.bf16.vlgmr.msra.gmra.mrb[44].mxu1 %vm731_vm0, %v9115_v15 }
0x17a9   :  { %10422 = vmatprep.mubr.msk.bf16.mxu1 %vm11146_vm1, %v11145_v33  ;;  %10419 = vmatpush3.bf16.msra.mxu1 %v10502_v60 }
0x17aa   :  { %10420 = vmatprep.subr.bf16.mxu1 %v11145_v33 }
0x17ad   :  { %10421 = vmatpush3.bf16.msra.mxu1 %v10503_v31  ;;  %v10138_v31 = vld [vmem:[#allocation27] ss:$0 sm:$0xff] }
0x181f   :  { %v9058_v16 = vpop.xlane.xlu1 %9057 }
0x1820   :  { %v9062_v8 = vmul.f32 0.03125, %v9058_v16 }
0x1822   :  { %v9066_v13 = vadd.f32 1e-05, %v9062_v8 }
0x1824   :  { %10596 = vrsqrt.f32 %v9066_v13  ;;  %v9052_v44 = vpop.xlane.xlu0 %9051 }
0x1825   :  { %v9060_v23 = vmul.f32 0.03125, %v9052_v44 }
0x1827   :  { %v9064_v25 = vadd.f32 1e-05, %v9060_v23 }
0x1829   :  { %10598 = vrsqrt.f32 %v9064_v25 }
0x182e   :  { %v10597_v41 = vpop.eup %10596 }
0x182f   :  { %v9074_v1 = vmul.f32 %v10597_v41, %v9042_v38 }
0x1831   :  { %v9084_v54 = vmul.f32 %v10136_v49, %v9074_v1 }
0x1833   :  { %v10599_v46 = vpop.eup %10598  ;;  %v9094_v20 = vadd.f32 %v10137_v52, %v9084_v54 }
0x1834   :  { %v9072_v58 = vmul.f32 %v10599_v46, %v9040_v29 }
0x1835   :  { %v9247_v4 = vpack.c.bf16 %v9094_v20, %v9093_v30  ;;  %v10149_v55 = vpack.c.bf16 %v9094_v20, %v9094_v20  ;;  %v10147_v20 = vld [vmem:[#allocation32] ss:$0 sm:$0xff] }
0x1836   :  { %v9082_v59 = vmul.f32 %v10136_v49, %v9072_v58  ;;  %v9372_v58 = vcombine.high %v10147_v20, %v10147_v20 }
0x1837   :  { %v9314_v33 = vrot.slane %v9247_v4, %v11605_v11  ;;  %v9321_v62 = vrot.slane %v10149_v55, %v11605_v11  ;;  %v9379_v4 = vrot.slane %v10147_v20, %v11605_v11 }
0x1838   :  { %v9092_v56 = vadd.f32 %v10137_v52, %v9082_v59  ;;  %v9386_v55 = vrot.slane %v9372_v58, %v11605_v11 }
0x1839   :  { %v9322_v39 = vcombine.high %v9314_v33, %v9314_v33  ;;  %v9330_v57 = vrot.slane %v9314_v33, %v11605_v11  ;;  %v9323_v21 = vcombine.high %v9321_v62, %v9321_v62  ;;  %v9337_v37 = vrot.slane %v9321_v62, %v11605_v11 }
0x183a   :  { %v9246_v14 = vpack.c.bf16 %v9092_v56, %v9091_v26  ;;  %v10148_v42 = vpack.c.bf16 %v9092_v56, %v9092_v56  ;;  %v9387_v59 = vcombine.high %v9379_v4, %v9379_v4  ;;  %v9388_v33 = vcombine.high %v9386_v55, %v9386_v55 }
0x183b   :  { %v9344_v28 = vrot.slane %v9322_v39, %v11605_v11  ;;  %v9352_v63 = vcombine.high %v9330_v57, %v9330_v57  ;;  %v9351_v17 = vrot.slane %v9323_v21, %v11605_v11  ;;  %v9370_v49 = vunpack.i.h.s16 %v9337_v37 }
0x183c   :  { %v9267_v32 = vrot.slane %v9246_v14, %v11605_v11  ;;  %v9274_v45 = vrot.slane %v10148_v42, %v11605_v11  ;;  %v9395_v62 = vrot.slane %v9379_v4, %v11605_v11  ;;  %v9402_v56 = vrot.slane %v9386_v55, %v11605_v11 }
0x183d   :  { %v9353_v2 = vcombine.high %v9344_v28, %v9344_v28  ;;  %v9366_v3 = vunpack.i.h.s16 %v9352_v63  ;;  %v9364_v38 = vunpack.i.h.s16 %v9344_v28  ;;  %v10154_v24 = vpack.i.b16 %v9351_v17, %v9370_v49 }
0x183e   :  { %v9275_v0 = vcombine.high %v9267_v32, %v9267_v32  ;;  %v9276_v10 = vcombine.high %v9274_v45, %v9274_v45  ;;  %v9283_v48 = vrot.slane %v9267_v32, %v11605_v11  ;;  %v9290_v29 = vrot.slane %v9274_v45, %v11605_v11 }
0x183f   :  { %v9368_v7 = vunpack.i.h.s16 %v9353_v2  ;;  %v10152_v51 = vpack.i.b16 %v9353_v2, %v9366_v3  ;;  %v10151_v52 = vpack.i.b16 %v9352_v63, %v9364_v38  ;;  %v9485_v19 = vrot.slane %v10154_v24, %v11605_v11 }
0x1840   :  { %v9297_v43 = vrot.slane %v9275_v0, %v11605_v11  ;;  %v9304_v6 = vrot.slane %v9276_v10, %v11605_v11  ;;  %v9305_v36 = vcombine.high %v9283_v48, %v9283_v48  ;;  %v9409_v39 = vrot.slane %v9387_v59, %v11605_v11 }
0x1841   :  { %v10153_v34 = vpack.i.b16 %v9337_v37, %v9368_v7  ;;  %v9492_v60 = vrot.slane %v9485_v19, %v11605_v11  ;;  %v9416_v57 = vrot.slane %v9388_v33, %v11605_v11  ;;  %v9417_v14 = vcombine.high %v9395_v62, %v9395_v62 }
0x1842   :  { %v9306_v27 = vcombine.high %v9297_v43, %v9297_v43  ;;  %v10150_v18 = vpack.i.b16 %v9344_v28, %v9304_v6  ;;  %v9430_v40 = vcombine.low %v9297_v43, %v9305_v36  ;;  %v9418_v42 = vcombine.high %v9402_v56, %v9402_v56 }
0x1843   :  { %v9433_v22 = vcombine.low %v10152_v51, %v10153_v34  ;;  %v9419_v28 = vcombine.high %v9409_v39, %v9409_v39  ;;  %v9505_v63 = vcombine.low %v9395_v62, %v9409_v39  ;;  %v10157_v32 = vcombine.high %v9395_v62, %v9409_v39 }
0x1844   :  { %v9431_v26 = vcombine.low %v9306_v27, %v9290_v29  ;;  %v9432_v9 = vcombine.low %v10150_v18, %v10151_v52  ;;  %v9440_v30 = vrot.slane %v9430_v40, %v11605_v11  ;;  %v9507_v45 = vcombine.low %v9402_v56, %v9416_v57 }
0x1845   :  { %v9461_v47 = vrot.slane %v9433_v22, %v11605_v11  ;;  %v10158_v21 = vcombine.high %v9402_v56, %v9416_v57  ;;  %v9554_v37 = vcombine.low %v9395_v62, %v9395_v62  ;;  %v9555_v2 = vcombine.low %v9409_v39, %v9417_v14 }
0x1846   :  { %v9447_v53 = vrot.slane %v9431_v26, %v11605_v11  ;;  %v9454_v35 = vrot.slane %v9432_v9, %v11605_v11  ;;  %v9556_v3 = vcombine.low %v9419_v28, %v9402_v56  ;;  %v9557_v0 = vcombine.low %v9416_v57, %v9418_v42 }
0x1847   :  { %v9420_v10 = vcombine.high %v9416_v57, %v9416_v57  ;;  %v9515_v48 = vrot.slane %v9505_v63, %v11605_v11  ;;  %v9522_v38 = vrot.slane %v10157_v32, %v11605_v11  ;;  %v9529_v7 = vrot.slane %v9507_v45, %v11605_v11 }
0x1848   :  { %v9462_v5 = vcombine.low %v9440_v30, %v9447_v53  ;;  %v9463_v61 = vcombine.low %v9454_v35, %v9461_v47  ;;  %v9536_v43 = vrot.slane %v10158_v21, %v11605_v11  ;;  %v9564_v6 = vrot.slane %v9554_v37, %v11605_v11 }
0x1849   :  { %v9571_v36 = vrot.slane %v9555_v2, %v11605_v11  ;;  %v9578_v17 = vrot.slane %v9556_v3, %v11605_v11  ;;  %v9585_v29 = vrot.slane %v9557_v0, %v11605_v11  ;;  %v9603_v51 = vcombine.low %v9420_v10, %v9395_v62 }
0x184a   :  { %v9470_v15 = vrot.slane %v9462_v5, %v11605_v11  ;;  %v9477_v50 = vrot.slane %v9463_v61, %v11605_v11  ;;  %v9537_v34 = vcombine.low %v9515_v48, %v9522_v38  ;;  %v9538_v49 = vcombine.low %v9529_v7, %v9536_v43 }
0x184b   :  { %v9586_v27 = vcombine.low %v9564_v6, %v9571_v36  ;;  %v9587_v18 = vcombine.low %v9578_v17, %v9585_v29  ;;  %v9610_v52 = vrot.slane %v9603_v51, %v11605_v11 }
0x184c   :  { %v9478_v12 = vcombine.low %v9470_v15, %v9477_v50  ;;  %v9545_v40 = vrot.slane %v9537_v34, %v11605_v11  ;;  %v9552_v22 = vrot.slane %v9538_v49, %v11605_v11 }
0x184d   :  { %v9594_v26 = vrot.slane %v9586_v27, %v11605_v11  ;;  %v9601_v9 = vrot.slane %v9587_v18, %v11605_v11  ;;  %v9617_v47 = vrot.slane %v9610_v52, %v11605_v11 }
0x184e   :  { %10430 = vmatprep.mubr.msk.bf16.mxu0 %vm731_vm0, %v9478_v12  ;;  %v9553_v24 = vcombine.low %v9545_v40, %v9552_v22 }
0x184f   :  { %10431 = vmatmul.mubr.msk.bf16.vlgmr.msra.gmra.mrb[52].mxu0 %vm731_vm0, %v9492_v60  ;;  %v9602_v53 = vcombine.low %v9594_v26, %v9601_v9 }
0x187b   :  { %v9165_v16 = vpop.f32.mrb[44].mxu1 }
0x187c   :  { %v9166_v8 = vadd.f32 %v10138_v31, %v9165_v16  ;;  %v10416_v13 = vpop.f32.mrb[45].mxu1 }
0x187d   :  { %v9168_v44 = vpop.f32.mrb[46].mxu1 }
0x187e   :  { %v10142_v23 = vmul.f32 -1.442695, %v9166_v8  ;;  %v10417_v25 = vpop.f32.mrb[47].mxu1 }
0x1880   :  { %10600 = vpow2.f32 %v10142_v23 }
0x188a   :  { %v10601_v41 = vpop.eup %10600 }
0x188b   :  { %v9174_v1 = vadd.f32 1.0, %v10601_v41 }
0x188d   :  { %10602 = vrcp.f32 %v9174_v1 }
0x1897   :  { %v10603_v54 = vpop.eup %10602 }
0x1898   :  { %v9177_v46 = vpack.c.bf16 %v10603_v54, %v10603_v54 }
0x189a   :  { %10423 = vmatmul.mubr.msk.bf16.vlgmr.msra.gmra.mrb[48].mxu1 %vm731_vm0, %v9177_v46 }
0x1922   :  { %v10432_v30 = vpop.f32.mrb[52].mxu0 }
0x1923   :  { %v9670_v35 = vadd.f32 %v10432_v30, %v9617_v47  ;;  %v9661_v5 = vpop.f32.mrb[53].mxu0 }
0x1924   :  { %v9662_v61 = vadd.f32 %v9661_v5, %v9553_v24  ;;  %v10433_v19 = vpop.f32.mrb[54].mxu0 }
0x1925   :  { %v9782_v15 = vrot.slane %v9670_v35, %v11605_v11  ;;  %v9664_v50 = vpop.f32.mrb[55].mxu0 }
0x1926   :  { %v9678_v12 = vcombine.high %v9662_v61, %v9662_v61  ;;  %v9685_v60 = vrot.slane %v9662_v61, %v11605_v11  ;;  %v9665_v31 = vadd.f32 %v9664_v50, %v9602_v53 }
0x1927   :  { %v9783_v16 = vcombine.high %v9782_v15, %v9782_v15  ;;  %v9790_v58 = vrot.slane %v9782_v15, %v11605_v11 }
0x1928   :  { %v9692_v8 = vrot.slane %v9678_v12, %v11605_v11  ;;  %v9693_v13 = vcombine.high %v9685_v60, %v9685_v60  ;;  %v9701_v44 = vrot.slane %v9685_v60, %v11605_v11  ;;  %v9727_v23 = vcombine.high %v9665_v31, %v9665_v31 }
0x1929   :  { %v9797_v25 = vrot.slane %v9783_v16, %v11605_v11  ;;  %v9734_v41 = vrot.slane %v9665_v31, %v11605_v11 }
0x192a   :  { %v9694_v1 = vcombine.high %v9692_v8, %v9692_v8  ;;  %v9708_v54 = vrot.slane %v9692_v8, %v11605_v11  ;;  %v9715_v46 = vrot.slane %v9693_v13, %v11605_v11  ;;  %v9723_v20 = vcombine.high %v9701_v44, %v9701_v44 }
0x192b   :  { %v9741_v4 = vrot.slane %v9727_v23, %v11605_v11  ;;  %v9742_v55 = vcombine.high %v9734_v41, %v9734_v41  ;;  %v9750_v57 = vrot.slane %v9734_v41, %v11605_v11  ;;  %v9867_v42 = vcombine.low %v9790_v58, %v9797_v25 }
0x192c   :  { %v9722_v59 = vrot.slane %v9694_v1, %v11605_v11  ;;  %v9724_v33 = vcombine.high %v9708_v54, %v9708_v54  ;;  %v9725_v62 = vcombine.high %v9715_v46, %v9715_v46  ;;  %v9815_v56 = vcombine.low %v9715_v46, %v9723_v20 }
0x192d   :  { %v9743_v39 = vcombine.high %v9741_v4, %v9741_v4  ;;  %v9764_v14 = vrot.slane %v9742_v55, %v11605_v11  ;;  %v9757_v45 = vrot.slane %v9741_v4, %v11605_v11  ;;  %v9895_v17 = vrot.slane %v9867_v42, %v11605_v11 }
0x192e   :  { %v9816_v28 = vcombine.low %v9725_v62, %v9708_v54  ;;  %v9817_v63 = vcombine.low %v9722_v59, %v9724_v33  ;;  %v9726_v32 = vcombine.high %v9722_v59, %v9722_v59  ;;  %v9825_v3 = vrot.slane %v9815_v56, %v11605_v11 }
0x192f   :  { %v9771_v21 = vrot.slane %v9743_v39, %v11605_v11  ;;  %v10162_v37 = vcombine.high %v9750_v57, %v9764_v14  ;;  %v9798_v2 = vcombine.low %v9701_v44, %v9764_v14 }
0x1930   :  { %v9832_v0 = vrot.slane %v9816_v28, %v11605_v11  ;;  %v9818_v10 = vcombine.low %v9726_v32, %v9750_v57  ;;  %v9839_v43 = vrot.slane %v9817_v63, %v11605_v11 }
0x1931   :  { %v9865_v48 = vcombine.low %v9757_v45, %v9771_v21  ;;  %v10163_v38 = vcombine.high %v9757_v45, %v9771_v21  ;;  %v9805_v7 = vrot.slane %v9798_v2, %v11605_v11  ;;  %v9874_v29 = vrot.slane %v10162_v37, %v11605_v11 }
0x1932   :  { %v9846_v6 = vrot.slane %v9818_v10, %v11605_v11  ;;  %v9847_v36 = vcombine.low %v9825_v3, %v9832_v0 }
0x1933   :  { %v9881_v51 = vrot.slane %v9865_v48, %v11605_v11  ;;  %v9888_v34 = vrot.slane %v10163_v38, %v11605_v11  ;;  %10161 = vst.sshfl [vmem:[#allocation34] sm:$0x5 pattern:$0x73625140] %v9805_v7 }
0x1934   :  { %v9848_v49 = vcombine.low %v9839_v43, %v9846_v6 }
0x1935   :  { %11039 = shalt.err (!%p11036_p2)
}
0x1936   :  { %s11040_s11 = scalar_lea.hbm %s13187_s21, 32 }
0x1937   :  { %p11041_p3 = scmp.ne.s32.totalorder %s13187_s21, %s11040_s11  ;;  %p11044_p4 = scmp.lt.u32.totalorder %s11040_s11, %s13187_s21 }
0x1939   :  { %p11046_p5 = pnand %p11044_p4, %p11041_p3 }
0x193b   :  { %11049 = shalt.err (!%p11046_p5)
}
0x193c   :  { %9936 = dma.vmem_to_hbm [thread:$0]  %s9934_s4, 32, %s13187_s21, [#allocation35]   ;;  %v9896_v27 = vcombine.low %v9874_v29, %v9881_v51  ;;  %v9897_v18 = vcombine.low %v9888_v34, %v9895_v17  ;;  %v9855_v52 = vrot.slane %v9847_v36, %v11605_v11  ;;  %v9862_v40 = vrot.slane %v9848_v49, %v11605_v11 }
0x193d   :  { %s11150_s0 = smov [#allocation36]  }
0x193e   :  { %s9942_s7 = sshll.u32 %s11150_s0, 4  ;;  %v9904_v22 = vrot.slane %v9896_v27, %v11605_v11  ;;  %v9911_v26 = vrot.slane %v9897_v18, %v11605_v11  ;;  %v9863_v9 = vcombine.low %v9855_v52, %v9862_v40  ;;  %s9943_s7 = int_to_ptr.vmem [resolvable:$true] %s9942_s7 }
0x193f   :  { %s11050_s13 = scalar_lea.vmem %s9943_s7, 256  ;;  %p11055_p7 = scmp.lt.s32.totalorder %s9943_s7, %s9943_s7 }
0x1940   :  { %v9912_v47 = vcombine.low %v9904_v22, %v9911_v26  ;;  %9915 = vst [vmem:[#allocation36] sm:$0xff] %v9863_v9  ;;  %p11051_p6 = scmp.ne.s32.totalorder %s9943_s7, %s11050_s13  ;;  %p11056_p8 = scmp.lt.s32.totalorder %s11050_s13, %s11050_s13 }
0x1942   :  { %9916 = vst [vmem:[#allocation36 + $0x8] sm:$0xff] %v9912_v47  ;;  %p11057_p9 = por %p11056_p8, %p11055_p7 }
0x1944   :  { %p11058_p10 = pnand %p11057_p9, %p11051_p6 }
0x1946   :  { %11061 = shalt.err (!%p11058_p10)
}
0x1947   :  { %s13220_s22 = sld [smem:[#allocation57_spill]] }
0x194d   :  { %s11062_s8 = scalar_lea.hbm %s13220_s22, 256 }
0x194e   :  { %p11063_p11 = scmp.ne.s32.totalorder %s13220_s22, %s11062_s8  ;;  %p11066_p12 = scmp.lt.u32.totalorder %s11062_s8, %s13220_s22 }
0x1950   :  { %p11068_p13 = pnand %p11066_p12, %p11063_p11 }
0x1952   :  { %11071 = shalt.err (!%p11068_p13)
}
0x1953   :  { %9948 = dma.vmem_to_hbm [thread:$0]  %s9943_s7, 256, %s13220_s22, [#allocation35], %s13216_s6, %s13216_s6, %s13215_s18   ;;  %v10143_v11 = vld [vmem:[#allocation2] ss:$0 sm:$0xff]  ;;  %vm9244_vm10 = vcmask 1024  }
0x1954   :  { %s11151_s9 = smov [#allocation33]  }
0x1955   :  { %s9923_s27 = sshll.u32 %s11151_s9, 4  ;;  %s9924_s27 = int_to_ptr.vmem [resolvable:$true] %s9923_s27 }
0x1956   :  { %s11072_s19 = scalar_lea.vmem %s9924_s27, 32  ;;  %p11077_p1 = scmp.lt.s32.totalorder %s9924_s27, %s9924_s27 }
0x1957   :  { %p11073_p0 = scmp.ne.s32.totalorder %s9924_s27, %s11072_s19  ;;  %p11078_p2 = scmp.lt.s32.totalorder %s11072_s19, %s11072_s19 }
0x1959   :  { %p11079_p3 = por %p11078_p2, %p11077_p1 }
0x195b   :  { %p11080_p4 = pnand %p11079_p3, %p11073_p0 }
0x196d   :  { %v9238_v24 = vpop.f32.mrb[48].mxu1 }
0x196e   :  { %v9239_v30 = vadd.f32 %v10143_v11, %v9238_v24  ;;  %v10424_v53 = vpop.f32.mrb[49].mxu1 }
0x196f   :  { %v9241_v35 = vpop.f32.mrb[50].mxu1 }
0x1970   :  { %v10425_v5 = vpop.f32.mrb[51].mxu1  ;;  %9245 = vst.msk [vmem:[#allocation33] sm:$0x3] %vm9244_vm10, %v9239_v30 }
0x1971   :  { %11083 = shalt.err (!%p11080_p4)
}
0x1972   :  { %s13221_s6 = sld [smem:[#allocation56_spill]] }
0x1978   :  { %s11084_s30 = scalar_lea.hbm %s13221_s6, 32 }
0x1979   :  { %p11085_p5 = scmp.ne.s32.totalorder %s13221_s6, %s11084_s30  ;;  %p11088_p6 = scmp.lt.u32.totalorder %s11084_s30, %s13221_s6 }
0x197b   :  { %p11090_p7 = pnand %p11088_p6, %p11085_p5 }
0x197d   :  { %11093 = shalt.err (!%p11090_p7)
}
0x197e   :  { %9926 = dma.vmem_to_hbm [thread:$0]  %s9924_s27, 32, %s13221_s6, [#allocation5]  }
0x197f   :  { %11114 = dma.done.wait [#allocation5], 32  }
0x1980   :  { %11115 = vsyncadd [#allocation5], 4294967264 }
0x1981   :  { %11116 = dma.done.wait [#allocation35], 288  }
0x1982   :  { %11117 = vsyncadd [#allocation35], 4294967008 }
0x1983   :  { %9958 = vsyncpa [#allocation4], 1 }
0x1984   :  { %9959 = vsyncpa [#allocation7], 1 }
0x1985   :  { %9960 = vsyncpa [#allocation10], 1 }
0x1986   :  { %9961 = vsyncpa [#allocation13], 1 }
0x1987   :  { %9962 = vsyncpa [#allocation16], 1 }
0x1988   :  { %9963 = vsyncpa [#allocation19], 1 }
0x1989   :  { %9964 = vsyncpa [#allocation22], 1 }
0x198a   :  { %9965 = vsyncpa [#allocation25], 1 }
0x198b   :  { %9966 = vsyncpa [#allocation28], 1 }
0x198c   :  { %9967 = vsyncpa [#allocation31], 1 }
0x198d   :  { %9968 = vsyncpa [#allocation5], 1 }
0x198e   :  { %9969 = vsyncpa [#allocation35], 1 }

</bundles_post_ra>
